<compile_context>
chip_gen: v7x
topology: tpu7x:2x2x1
jax: 0.10.0
libtpu: 0.0.40
codegen_flags: <defaults>
</compile_context>

<pallas_src>
import jax
import jax.numpy as jnp
import numpy as np
from jax.experimental import pallas as pl
from jax.experimental.pallas import tpu as pltpu

# ---- model / problem sizes ----
B, T = 2, 8                  # batch, sequence length
C, HS, WS = 3, 16, 16        # per-frame image (NCHW -> C,H,W)
FEAT = C * HS * WS           # flattened frame = 768
D = 128                      # LSTM input dim (stands in for 2048)
H = 32                       # LSTM hidden dim (stands in for 100)
L = 3                        # LSTM layers (layer_dim)
O = 3                        # output dim
OPAD = 128                   # lane-dense padded output width for the fc head


def combine_kernel(x_ref, w0_ref, whh0_ref, b0_ref,
                   wih1_ref, whh1_ref, b1_ref,
                   wih2_ref, whh2_ref, b2_ref,
                   wfc_ref, bfc_ref,
                   o_ref, tops_ref):
    """Whole forward in one invocation: no time grid, fully unrolled recurrence."""
    f32 = jnp.float32

    # --- Phase 1: folded feature-stub + layer-0 input projection, all T*B rows. -
    # TODO(synk): pretrained ResNet-101 backbone (torch.hub checkpoint) has no
    # in-script equivalent; replaced by a deterministic linear feature stub whose
    # weight is pre-folded with the layer-0 input->gates weight (W0 = wfeat @ wih0).
    ih0_all = jnp.dot(x_ref[...], w0_ref[...], preferred_element_type=f32) + b0_ref[...]

    whh0 = whh0_ref[...]
    wih1, whh1 = wih1_ref[...], whh1_ref[...]
    wih2, whh2 = wih2_ref[...], whh2_ref[...]
    # Bias broadcasts hoisted out of the unrolled time loop.
    b1b = jnp.broadcast_to(b1_ref[...], (B, 4 * H))
    b2b = jnp.broadcast_to(b2_ref[...], (B, 4 * H))

    # Lane mask selecting the tanh (g) gate columns of a (B, 4H) gates tile
    # (4H == 128 == one vreg lane width); hoisted out of the loop.
    col = jax.lax.broadcasted_iota(jnp.int32, (B, 4 * H), 1)
    g_mask = (col >= 2 * H) & (col < 3 * H)
    # sigmoid(x) = 0.5*tanh(x/2) + 0.5  ->  pre-scale non-g lanes by 0.5 and do a
    # single tanh pass over the whole gate tile instead of sigmoid + tanh.
    pre_scale = jnp.where(g_mask, f32(1.0), f32(0.5))

    def lstm_cell(gates, c_prev):
        t_act = jnp.tanh(gates * pre_scale)                    # one EUP pass
        act = jnp.where(g_mask, t_act, 0.5 * t_act + 0.5)      # i,f,o: sigmoid; g: tanh
        i_g = act[:, 0 * H:1 * H]
        f_g = act[:, 1 * H:2 * H]
        g_g = act[:, 2 * H:3 * H]
        o_g = act[:, 3 * H:4 * H]
        c_new = f_g * c_prev + i_g * g_g
        h_new = o_g * jnp.tanh(c_new)
        return h_new, c_new

    zeros = jnp.zeros((B, H), f32)
    h0 = h1 = h2 = zeros                     # h0 = zeros(layer_dim, B, H)
    c0 = c1 = c2 = zeros                     # c0 = zeros(layer_dim, B, H)

    # --- Phase 2: the serial recurrence (fully unrolled static time loop). -----
    for t in range(T):
        # hh dots depend only on previous-step state -> issued early, off the
        # intra-step chain (and no per-step lane-concats anymore).
        hh0 = jnp.dot(h0, whh0, preferred_element_type=f32)
        hh1 = jnp.dot(h1, whh1, preferred_element_type=f32)
        hh2 = jnp.dot(h2, whh2, preferred_element_type=f32)

        # PyTorch gate order i, f, g, o; layer-0 input contribution + bias were
        # precomputed in Phase 1.
        gates0 = ih0_all[t * B:(t + 1) * B, :] + hh0
        h0, c0 = lstm_cell(gates0, c0)
        gates1 = jnp.dot(h0, wih1, preferred_element_type=f32) + hh1 + b1b
        h1, c1 = lstm_cell(gates1, c1)
        gates2 = jnp.dot(h1, wih2, preferred_element_type=f32) + hh2 + b2b
        h2, c2 = lstm_cell(gates2, c2)

        # Stage top-layer hidden state into VMEM scratch (bounds vreg pressure).
        tops_ref[t * B:(t + 1) * B, :] = h2

    # --- Phase 3: lane-dense fc + sigmoid head on all timesteps, single write. --
    logits = jnp.dot(tops_ref[...], wfc_ref[...], preferred_element_type=f32) + bfc_ref[...]
    o_ref[...] = jax.nn.sigmoid(logits).astype(o_ref.dtype)


def combine_forward(x, kparams):
    """x: (B, T, C, HS, WS) float32; kparams: tuple from prepare_kernel_params."""
    # Time-major flattened frames: row r = t*B + b.
    xt = jnp.transpose(x, (1, 0, 2, 3, 4)).reshape(T * B, FEAT)

    vmem = pl.BlockSpec(memory_space=pltpu.MemorySpace.VMEM)   # whole array, VMEM resident
    n_in = 1 + len(kparams)

    # Advisory cost estimate (working set ~0.6 MiB, far under VMEM on all chips).
    flops = (2 * T * B * FEAT * 4 * H            # folded phase-1 projection
             + T * 5 * 2 * B * H * 4 * H         # 5 small dots per step
             + 2 * T * B * H * OPAD)             # fc head
    transcendentals = T * L * (B * 4 * H + B * H) + T * B * OPAD
    bytes_accessed = 4 * (T * B * FEAT
                          + sum(int(np.prod(p.shape)) for p in kparams)
                          + T * B * OPAD)

    out = pl.pallas_call(
        combine_kernel,
        out_shape=jax.ShapeDtypeStruct((T * B, OPAD), jnp.float32),
        in_specs=[vmem] * n_in,
        out_specs=vmem,
        scratch_shapes=[pltpu.VMEM((T * B, H), jnp.float32)],
        cost_estimate=pl.CostEstimate(flops=flops,
                                      transcendentals=transcendentals,
                                      bytes_accessed=bytes_accessed),
    )(xt, *kparams)

    out = jnp.transpose(out[:, :O].reshape(T, B, O), (1, 0, 2))   # (B, T, O)
    # TODO(synk): source does `out.view(out.size(0) * seq_dim)` with undefined seq_dim
    # and a mismatched element count; we flatten all B*T*O elements instead.
    return out.reshape(B * T * O)


def reference_forward(x, params):
    """Pure-JAX reference of the same scaled-down Combine forward (unfused math)."""
    (wfeat, wih0, whh0, b0, wih1, whh1, b1, wih2, whh2, b2, wfc, bfc) = params
    hp = jax.lax.Precision.HIGHEST
    xt = jnp.transpose(x, (1, 0, 2, 3, 4)).reshape(T, B, FEAT)
    wih, whh, bs = (wih0, wih1, wih2), (whh0, whh1, whh2), (b0, b1, b2)
    h = [jnp.zeros((B, H), jnp.float32) for _ in range(L)]
    c = [jnp.zeros((B, H), jnp.float32) for _ in range(L)]
    outs = []
    for t in range(T):
        inp = jnp.dot(xt[t], wfeat, precision=hp)
        for l in range(L):
            gates = (jnp.dot(inp, wih[l], precision=hp)
                     + jnp.dot(h[l], whh[l], precision=hp) + bs[l])
            i_g = jax.nn.sigmoid(gates[:, :H])
            f_g = jax.nn.sigmoid(gates[:, H:2 * H])
            g_g = jnp.tanh(gates[:, 2 * H:3 * H])
            o_g = jax.nn.sigmoid(gates[:, 3 * H:])
            c[l] = f_g * c[l] + i_g * g_g
            h[l] = o_g * jnp.tanh(c[l])
            inp = h[l]
        outs.append(jax.nn.sigmoid(jnp.dot(inp, wfc, precision=hp) + bfc))
    return jnp.stack(outs, axis=1).reshape(B * T * O)


def init_params(key):
    ks = jax.random.split(key, 12)
    s = 0.05
    wfeat = jax.random.normal(ks[0], (FEAT, D), jnp.float32) * s
    # LSTM weights, stored pre-transposed: W_ih^T (in, 4H), W_hh^T (H, 4H), b = b_ih + b_hh.
    wih0 = jax.random.normal(ks[1], (D, 4 * H), jnp.float32) * s
    whh0 = jax.random.normal(ks[2], (H, 4 * H), jnp.float32) * s
    b0 = jax.random.normal(ks[3], (1, 4 * H), jnp.float32) * s
    wih1 = jax.random.normal(ks[4], (H, 4 * H), jnp.float32) * s
    whh1 = jax.random.normal(ks[5], (H, 4 * H), jnp.float32) * s
    b1 = jax.random.normal(ks[6], (1, 4 * H), jnp.float32) * s
    wih2 = jax.random.normal(ks[7], (H, 4 * H), jnp.float32) * s
    whh2 = jax.random.normal(ks[8], (H, 4 * H), jnp.float32) * s
    b2 = jax.random.normal(ks[9], (1, 4 * H), jnp.float32) * s
    wfc = jax.random.normal(ks[10], (H, O), jnp.float32) * s
    bfc = jax.random.normal(ks[11], (1, O), jnp.float32) * s
    return (wfeat, wih0, whh0, b0, wih1, whh1, b1, wih2, whh2, b2, wfc, bfc)


def prepare_kernel_params(params):
    """One-time host-side prep: fold wfeat@wih0 and pad the fc head lane-dense."""
    (wfeat, wih0, whh0, b0, wih1, whh1, b1, wih2, whh2, b2, wfc, bfc) = params
    w0 = jnp.dot(wfeat, wih0, precision=jax.lax.Precision.HIGHEST)     # (FEAT, 4H)
    wfc_p = jnp.zeros((H, OPAD), jnp.float32).at[:, :O].set(wfc)
    bfc_p = jnp.zeros((1, OPAD), jnp.float32).at[:, :O].set(bfc)
    return (w0, whh0, b0, wih1, whh1, b1, wih2, whh2, b2, wfc_p, bfc_p)


if __name__ == "__main__":
    key = jax.random.PRNGKey(0)
    kx, kp = jax.random.split(key)
    x = jax.random.normal(kx, (B, T, C, HS, WS), jnp.float32)
    params = init_params(kp)
    kparams = prepare_kernel_params(params)

    out = jax.block_until_ready(combine_forward(x, kparams))
    ref = jax.block_until_ready(reference_forward(x, params))

    assert out.shape == (B * T * O,), out.shape
    np.testing.assert_allclose(np.asarray(out), np.asarray(ref), atol=5e-3, rtol=5e-3)
    print("KERNEL_OK")
</pallas_src>

<mosaic_0001>
module attributes {stable_mosaic.version = 11 : i64} {
  func.func @combine_kernel(%arg0: memref<16x768xf32, #tpu.memory_space<vmem>>, %arg1: memref<768x128xf32, #tpu.memory_space<vmem>>, %arg2: memref<32x128xf32, #tpu.memory_space<vmem>>, %arg3: memref<1x128xf32, #tpu.memory_space<vmem>>, %arg4: memref<32x128xf32, #tpu.memory_space<vmem>>, %arg5: memref<32x128xf32, #tpu.memory_space<vmem>>, %arg6: memref<1x128xf32, #tpu.memory_space<vmem>>, %arg7: memref<32x128xf32, #tpu.memory_space<vmem>>, %arg8: memref<32x128xf32, #tpu.memory_space<vmem>>, %arg9: memref<1x128xf32, #tpu.memory_space<vmem>>, %arg10: memref<32x128xf32, #tpu.memory_space<vmem>>, %arg11: memref<1x128xf32, #tpu.memory_space<vmem>>, %arg12: memref<16x128xf32, #tpu.memory_space<vmem>>, %arg13: memref<16x32xf32, #tpu.memory_space<vmem>>) attributes {dimension_semantics = [], scalar_prefetch = 0 : i64, scratch_operands = 1 : i64, tpu.core_type = #tpu.core_type<tc>} {
    %c0 = arith.constant 0 : index
    %c0_0 = arith.constant 0 : index
    %0 = vector.load %arg0[%c0, %c0_0] : memref<16x768xf32, #tpu.memory_space<vmem>>, vector<16x768xf32>
    %c0_1 = arith.constant 0 : index
    %c0_2 = arith.constant 0 : index
    %1 = vector.load %arg1[%c0_1, %c0_2] : memref<768x128xf32, #tpu.memory_space<vmem>>, vector<768x128xf32>
    %cst = arith.constant dense<0.000000e+00> : vector<16x128xf32>
    %2 = tpu.matmul %0, %1, %cst {dimension_numbers = #tpu.dot_dimension_numbers<[1], [0], [0], [1], [0, 0, 1, 1], [], []>} : vector<16x768xf32>, vector<768x128xf32>, vector<16x128xf32> -> vector<16x128xf32>
    %c0_3 = arith.constant 0 : index
    %c0_4 = arith.constant 0 : index
    %3 = vector.load %arg3[%c0_3, %c0_4] : memref<1x128xf32, #tpu.memory_space<vmem>>, vector<1x128xf32>
    %4 = vector.broadcast %3 : vector<1x128xf32> to vector<16x128xf32>
    %5 = arith.addf %2, %4 : vector<16x128xf32>
    %c0_5 = arith.constant 0 : index
    %c0_6 = arith.constant 0 : index
    %6 = vector.load %arg2[%c0_5, %c0_6] : memref<32x128xf32, #tpu.memory_space<vmem>>, vector<32x128xf32>
    %c0_7 = arith.constant 0 : index
    %c0_8 = arith.constant 0 : index
    %7 = vector.load %arg4[%c0_7, %c0_8] : memref<32x128xf32, #tpu.memory_space<vmem>>, vector<32x128xf32>
    %c0_9 = arith.constant 0 : index
    %c0_10 = arith.constant 0 : index
    %8 = vector.load %arg5[%c0_9, %c0_10] : memref<32x128xf32, #tpu.memory_space<vmem>>, vector<32x128xf32>
    %c0_11 = arith.constant 0 : index
    %c0_12 = arith.constant 0 : index
    %9 = vector.load %arg7[%c0_11, %c0_12] : memref<32x128xf32, #tpu.memory_space<vmem>>, vector<32x128xf32>
    %c0_13 = arith.constant 0 : index
    %c0_14 = arith.constant 0 : index
    %10 = vector.load %arg8[%c0_13, %c0_14] : memref<32x128xf32, #tpu.memory_space<vmem>>, vector<32x128xf32>
    %c0_15 = arith.constant 0 : index
    %c0_16 = arith.constant 0 : index
    %11 = vector.load %arg6[%c0_15, %c0_16] : memref<1x128xf32, #tpu.memory_space<vmem>>, vector<1x128xf32>
    %12 = vector.shape_cast %11 : vector<1x128xf32> to vector<1x128xf32>
    %13 = vector.broadcast %12 : vector<1x128xf32> to vector<2x128xf32>
    %c0_17 = arith.constant 0 : index
    %c0_18 = arith.constant 0 : index
    %14 = vector.load %arg9[%c0_17, %c0_18] : memref<1x128xf32, #tpu.memory_space<vmem>>, vector<1x128xf32>
    %15 = vector.shape_cast %14 : vector<1x128xf32> to vector<1x128xf32>
    %16 = vector.broadcast %15 : vector<1x128xf32> to vector<2x128xf32>
    %17 = tpu.iota {dimensions = array<i32: 1>} : vector<2x128xi32>
    %c64_i32 = arith.constant 64 : i32
    %18 = vector.broadcast %c64_i32 : i32 to vector<2x128xi32>
    %19 = arith.cmpi sge, %17, %18 : vector<2x128xi32>
    %c96_i32 = arith.constant 96 : i32
    %20 = vector.broadcast %c96_i32 : i32 to vector<2x128xi32>
    %21 = arith.cmpi slt, %17, %20 : vector<2x128xi32>
    %22 = arith.andi %19, %21 : vector<2x128xi1>
    %cst_19 = arith.constant 1.000000e+00 : f32
    %cst_20 = arith.constant 5.000000e-01 : f32
    %23 = vector.broadcast %cst_19 : f32 to vector<2x128xf32>
    %24 = vector.broadcast %cst_20 : f32 to vector<2x128xf32>
    %25 = arith.select %22, %23, %24 : vector<2x128xi1>, vector<2x128xf32>
    %cst_21 = arith.constant 0.000000e+00 : f32
    %26 = vector.broadcast %cst_21 : f32 to vector<2x32xf32>
    %cst_22 = arith.constant dense<0.000000e+00> : vector<2x128xf32>
    %27 = tpu.matmul %26, %6, %cst_22 {dimension_numbers = #tpu.dot_dimension_numbers<[1], [0], [0], [1], [0, 0, 1, 1], [], []>} : vector<2x32xf32>, vector<32x128xf32>, vector<2x128xf32> -> vector<2x128xf32>
    %cst_23 = arith.constant dense<0.000000e+00> : vector<2x128xf32>
    %28 = tpu.matmul %26, %8, %cst_23 {dimension_numbers = #tpu.dot_dimension_numbers<[1], [0], [0], [1], [0, 0, 1, 1], [], []>} : vector<2x32xf32>, vector<32x128xf32>, vector<2x128xf32> -> vector<2x128xf32>
    %cst_24 = arith.constant dense<0.000000e+00> : vector<2x128xf32>
    %29 = tpu.matmul %26, %10, %cst_24 {dimension_numbers = #tpu.dot_dimension_numbers<[1], [0], [0], [1], [0, 0, 1, 1], [], []>} : vector<2x32xf32>, vector<32x128xf32>, vector<2x128xf32> -> vector<2x128xf32>
    %30 = vector.extract_strided_slice %5 {offsets = [0, 0], sizes = [2, 128], strides = [1, 1]} : vector<16x128xf32> to vector<2x128xf32>
    %31 = arith.addf %30, %27 : vector<2x128xf32>
    %32 = arith.mulf %31, %25 : vector<2x128xf32>
    %33 = math.tanh %32 : vector<2x128xf32>
    %cst_25 = arith.constant 5.000000e-01 : f32
    %34 = vector.broadcast %cst_25 : f32 to vector<2x128xf32>
    %35 = arith.mulf %34, %33 : vector<2x128xf32>
    %cst_26 = arith.constant 5.000000e-01 : f32
    %36 = vector.broadcast %cst_26 : f32 to vector<2x128xf32>
    %37 = arith.addf %35, %36 : vector<2x128xf32>
    %38 = arith.select %22, %33, %37 : vector<2x128xi1>, vector<2x128xf32>
    %39 = vector.extract_strided_slice %38 {offsets = [0, 0], sizes = [2, 32], strides = [1, 1]} : vector<2x128xf32> to vector<2x32xf32>
    %40 = vector.extract_strided_slice %38 {offsets = [0, 32], sizes = [2, 32], strides = [1, 1]} : vector<2x128xf32> to vector<2x32xf32>
    %41 = vector.extract_strided_slice %38 {offsets = [0, 64], sizes = [2, 32], strides = [1, 1]} : vector<2x128xf32> to vector<2x32xf32>
    %42 = vector.extract_strided_slice %38 {offsets = [0, 96], sizes = [2, 32], strides = [1, 1]} : vector<2x128xf32> to vector<2x32xf32>
    %43 = arith.mulf %40, %26 : vector<2x32xf32>
    %44 = arith.mulf %39, %41 : vector<2x32xf32>
    %45 = arith.addf %43, %44 : vector<2x32xf32>
    %46 = math.tanh %45 : vector<2x32xf32>
    %47 = arith.mulf %42, %46 : vector<2x32xf32>
    %cst_27 = arith.constant dense<0.000000e+00> : vector<2x128xf32>
    %48 = tpu.matmul %47, %7, %cst_27 {dimension_numbers = #tpu.dot_dimension_numbers<[1], [0], [0], [1], [0, 0, 1, 1], [], []>} : vector<2x32xf32>, vector<32x128xf32>, vector<2x128xf32> -> vector<2x128xf32>
    %49 = arith.addf %48, %28 : vector<2x128xf32>
    %50 = arith.addf %49, %13 : vector<2x128xf32>
    %51 = arith.mulf %50, %25 : vector<2x128xf32>
    %52 = math.tanh %51 : vector<2x128xf32>
    %cst_28 = arith.constant 5.000000e-01 : f32
    %53 = vector.broadcast %cst_28 : f32 to vector<2x128xf32>
    %54 = arith.mulf %53, %52 : vector<2x128xf32>
    %cst_29 = arith.constant 5.000000e-01 : f32
    %55 = vector.broadcast %cst_29 : f32 to vector<2x128xf32>
    %56 = arith.addf %54, %55 : vector<2x128xf32>
    %57 = arith.select %22, %52, %56 : vector<2x128xi1>, vector<2x128xf32>
    %58 = vector.extract_strided_slice %57 {offsets = [0, 0], sizes = [2, 32], strides = [1, 1]} : vector<2x128xf32> to vector<2x32xf32>
    %59 = vector.extract_strided_slice %57 {offsets = [0, 32], sizes = [2, 32], strides = [1, 1]} : vector<2x128xf32> to vector<2x32xf32>
    %60 = vector.extract_strided_slice %57 {offsets = [0, 64], sizes = [2, 32], strides = [1, 1]} : vector<2x128xf32> to vector<2x32xf32>
    %61 = vector.extract_strided_slice %57 {offsets = [0, 96], sizes = [2, 32], strides = [1, 1]} : vector<2x128xf32> to vector<2x32xf32>
    %62 = arith.mulf %59, %26 : vector<2x32xf32>
    %63 = arith.mulf %58, %60 : vector<2x32xf32>
    %64 = arith.addf %62, %63 : vector<2x32xf32>
    %65 = math.tanh %64 : vector<2x32xf32>
    %66 = arith.mulf %61, %65 : vector<2x32xf32>
    %cst_30 = arith.constant dense<0.000000e+00> : vector<2x128xf32>
    %67 = tpu.matmul %66, %9, %cst_30 {dimension_numbers = #tpu.dot_dimension_numbers<[1], [0], [0], [1], [0, 0, 1, 1], [], []>} : vector<2x32xf32>, vector<32x128xf32>, vector<2x128xf32> -> vector<2x128xf32>
    %68 = arith.addf %67, %29 : vector<2x128xf32>
    %69 = arith.addf %68, %16 : vector<2x128xf32>
    %70 = arith.mulf %69, %25 : vector<2x128xf32>
    %71 = math.tanh %70 : vector<2x128xf32>
    %cst_31 = arith.constant 5.000000e-01 : f32
    %72 = vector.broadcast %cst_31 : f32 to vector<2x128xf32>
    %73 = arith.mulf %72, %71 : vector<2x128xf32>
    %cst_32 = arith.constant 5.000000e-01 : f32
    %74 = vector.broadcast %cst_32 : f32 to vector<2x128xf32>
    %75 = arith.addf %73, %74 : vector<2x128xf32>
    %76 = arith.select %22, %71, %75 : vector<2x128xi1>, vector<2x128xf32>
    %77 = vector.extract_strided_slice %76 {offsets = [0, 0], sizes = [2, 32], strides = [1, 1]} : vector<2x128xf32> to vector<2x32xf32>
    %78 = vector.extract_strided_slice %76 {offsets = [0, 32], sizes = [2, 32], strides = [1, 1]} : vector<2x128xf32> to vector<2x32xf32>
    %79 = vector.extract_strided_slice %76 {offsets = [0, 64], sizes = [2, 32], strides = [1, 1]} : vector<2x128xf32> to vector<2x32xf32>
    %80 = vector.extract_strided_slice %76 {offsets = [0, 96], sizes = [2, 32], strides = [1, 1]} : vector<2x128xf32> to vector<2x32xf32>
    %81 = arith.mulf %78, %26 : vector<2x32xf32>
    %82 = arith.mulf %77, %79 : vector<2x32xf32>
    %83 = arith.addf %81, %82 : vector<2x32xf32>
    %84 = math.tanh %83 : vector<2x32xf32>
    %85 = arith.mulf %80, %84 : vector<2x32xf32>
    %c0_33 = arith.constant 0 : index
    %c0_34 = arith.constant 0 : index
    %86 = vector.load %arg13[%c0_33, %c0_34] : memref<16x32xf32, #tpu.memory_space<vmem>>, vector<2x32xf32>
    tpu.vector_store %arg13[%c0_33, %c0_34], %85 {strides = array<i32>} : memref<16x32xf32, #tpu.memory_space<vmem>>, vector<2x32xf32>,
    %cst_35 = arith.constant dense<0.000000e+00> : vector<2x128xf32>
    %87 = tpu.matmul %47, %6, %cst_35 {dimension_numbers = #tpu.dot_dimension_numbers<[1], [0], [0], [1], [0, 0, 1, 1], [], []>} : vector<2x32xf32>, vector<32x128xf32>, vector<2x128xf32> -> vector<2x128xf32>
    %cst_36 = arith.constant dense<0.000000e+00> : vector<2x128xf32>
    %88 = tpu.matmul %66, %8, %cst_36 {dimension_numbers = #tpu.dot_dimension_numbers<[1], [0], [0], [1], [0, 0, 1, 1], [], []>} : vector<2x32xf32>, vector<32x128xf32>, vector<2x128xf32> -> vector<2x128xf32>
    %cst_37 = arith.constant dense<0.000000e+00> : vector<2x128xf32>
    %89 = tpu.matmul %85, %10, %cst_37 {dimension_numbers = #tpu.dot_dimension_numbers<[1], [0], [0], [1], [0, 0, 1, 1], [], []>} : vector<2x32xf32>, vector<32x128xf32>, vector<2x128xf32> -> vector<2x128xf32>
    %90 = vector.extract_strided_slice %5 {offsets = [2, 0], sizes = [2, 128], strides = [1, 1]} : vector<16x128xf32> to vector<2x128xf32>
    %91 = arith.addf %90, %87 : vector<2x128xf32>
    %92 = arith.mulf %91, %25 : vector<2x128xf32>
    %93 = math.tanh %92 : vector<2x128xf32>
    %cst_38 = arith.constant 5.000000e-01 : f32
    %94 = vector.broadcast %cst_38 : f32 to vector<2x128xf32>
    %95 = arith.mulf %94, %93 : vector<2x128xf32>
    %cst_39 = arith.constant 5.000000e-01 : f32
    %96 = vector.broadcast %cst_39 : f32 to vector<2x128xf32>
    %97 = arith.addf %95, %96 : vector<2x128xf32>
    %98 = arith.select %22, %93, %97 : vector<2x128xi1>, vector<2x128xf32>
    %99 = vector.extract_strided_slice %98 {offsets = [0, 0], sizes = [2, 32], strides = [1, 1]} : vector<2x128xf32> to vector<2x32xf32>
    %100 = vector.extract_strided_slice %98 {offsets = [0, 32], sizes = [2, 32], strides = [1, 1]} : vector<2x128xf32> to vector<2x32xf32>
    %101 = vector.extract_strided_slice %98 {offsets = [0, 64], sizes = [2, 32], strides = [1, 1]} : vector<2x128xf32> to vector<2x32xf32>
    %102 = vector.extract_strided_slice %98 {offsets = [0, 96], sizes = [2, 32], strides = [1, 1]} : vector<2x128xf32> to vector<2x32xf32>
    %103 = arith.mulf %100, %45 : vector<2x32xf32>
    %104 = arith.mulf %99, %101 : vector<2x32xf32>
    %105 = arith.addf %103, %104 : vector<2x32xf32>
    %106 = math.tanh %105 : vector<2x32xf32>
    %107 = arith.mulf %102, %106 : vector<2x32xf32>
    %cst_40 = arith.constant dense<0.000000e+00> : vector<2x128xf32>
    %108 = tpu.matmul %107, %7, %cst_40 {dimension_numbers = #tpu.dot_dimension_numbers<[1], [0], [0], [1], [0, 0, 1, 1], [], []>} : vector<2x32xf32>, vector<32x128xf32>, vector<2x128xf32> -> vector<2x128xf32>
    %109 = arith.addf %108, %88 : vector<2x128xf32>
    %110 = arith.addf %109, %13 : vector<2x128xf32>
    %111 = arith.mulf %110, %25 : vector<2x128xf32>
    %112 = math.tanh %111 : vector<2x128xf32>
    %cst_41 = arith.constant 5.000000e-01 : f32
    %113 = vector.broadcast %cst_41 : f32 to vector<2x128xf32>
    %114 = arith.mulf %113, %112 : vector<2x128xf32>
    %cst_42 = arith.constant 5.000000e-01 : f32
    %115 = vector.broadcast %cst_42 : f32 to vector<2x128xf32>
    %116 = arith.addf %114, %115 : vector<2x128xf32>
    %117 = arith.select %22, %112, %116 : vector<2x128xi1>, vector<2x128xf32>
    %118 = vector.extract_strided_slice %117 {offsets = [0, 0], sizes = [2, 32], strides = [1, 1]} : vector<2x128xf32> to vector<2x32xf32>
    %119 = vector.extract_strided_slice %117 {offsets = [0, 32], sizes = [2, 32], strides = [1, 1]} : vector<2x128xf32> to vector<2x32xf32>
    %120 = vector.extract_strided_slice %117 {offsets = [0, 64], sizes = [2, 32], strides = [1, 1]} : vector<2x128xf32> to vector<2x32xf32>
    %121 = vector.extract_strided_slice %117 {offsets = [0, 96], sizes = [2, 32], strides = [1, 1]} : vector<2x128xf32> to vector<2x32xf32>
    %122 = arith.mulf %119, %64 : vector<2x32xf32>
    %123 = arith.mulf %118, %120 : vector<2x32xf32>
    %124 = arith.addf %122, %123 : vector<2x32xf32>
    %125 = math.tanh %124 : vector<2x32xf32>
    %126 = arith.mulf %121, %125 : vector<2x32xf32>
    %cst_43 = arith.constant dense<0.000000e+00> : vector<2x128xf32>
    %127 = tpu.matmul %126, %9, %cst_43 {dimension_numbers = #tpu.dot_dimension_numbers<[1], [0], [0], [1], [0, 0, 1, 1], [], []>} : vector<2x32xf32>, vector<32x128xf32>, vector<2x128xf32> -> vector<2x128xf32>
    %128 = arith.addf %127, %89 : vector<2x128xf32>
    %129 = arith.addf %128, %16 : vector<2x128xf32>
    %130 = arith.mulf %129, %25 : vector<2x128xf32>
    %131 = math.tanh %130 : vector<2x128xf32>
    %cst_44 = arith.constant 5.000000e-01 : f32
    %132 = vector.broadcast %cst_44 : f32 to vector<2x128xf32>
    %133 = arith.mulf %132, %131 : vector<2x128xf32>
    %cst_45 = arith.constant 5.000000e-01 : f32
    %134 = vector.broadcast %cst_45 : f32 to vector<2x128xf32>
    %135 = arith.addf %133, %134 : vector<2x128xf32>
    %136 = arith.select %22, %131, %135 : vector<2x128xi1>, vector<2x128xf32>
    %137 = vector.extract_strided_slice %136 {offsets = [0, 0], sizes = [2, 32], strides = [1, 1]} : vector<2x128xf32> to vector<2x32xf32>
    %138 = vector.extract_strided_slice %136 {offsets = [0, 32], sizes = [2, 32], strides = [1, 1]} : vector<2x128xf32> to vector<2x32xf32>
    %139 = vector.extract_strided_slice %136 {offsets = [0, 64], sizes = [2, 32], strides = [1, 1]} : vector<2x128xf32> to vector<2x32xf32>
    %140 = vector.extract_strided_slice %136 {offsets = [0, 96], sizes = [2, 32], strides = [1, 1]} : vector<2x128xf32> to vector<2x32xf32>
    %141 = arith.mulf %138, %83 : vector<2x32xf32>
    %142 = arith.mulf %137, %139 : vector<2x32xf32>
    %143 = arith.addf %141, %142 : vector<2x32xf32>
    %144 = math.tanh %143 : vector<2x32xf32>
    %145 = arith.mulf %140, %144 : vector<2x32xf32>
    %c2 = arith.constant 2 : index
    %c0_46 = arith.constant 0 : index
    %146 = vector.load %arg13[%c2, %c0_46] : memref<16x32xf32, #tpu.memory_space<vmem>>, vector<2x32xf32>
    tpu.vector_store %arg13[%c2, %c0_46], %145 {strides = array<i32>} : memref<16x32xf32, #tpu.memory_space<vmem>>, vector<2x32xf32>,
    %cst_47 = arith.constant dense<0.000000e+00> : vector<2x128xf32>
    %147 = tpu.matmul %107, %6, %cst_47 {dimension_numbers = #tpu.dot_dimension_numbers<[1], [0], [0], [1], [0, 0, 1, 1], [], []>} : vector<2x32xf32>, vector<32x128xf32>, vector<2x128xf32> -> vector<2x128xf32>
    %cst_48 = arith.constant dense<0.000000e+00> : vector<2x128xf32>
    %148 = tpu.matmul %126, %8, %cst_48 {dimension_numbers = #tpu.dot_dimension_numbers<[1], [0], [0], [1], [0, 0, 1, 1], [], []>} : vector<2x32xf32>, vector<32x128xf32>, vector<2x128xf32> -> vector<2x128xf32>
    %cst_49 = arith.constant dense<0.000000e+00> : vector<2x128xf32>
    %149 = tpu.matmul %145, %10, %cst_49 {dimension_numbers = #tpu.dot_dimension_numbers<[1], [0], [0], [1], [0, 0, 1, 1], [], []>} : vector<2x32xf32>, vector<32x128xf32>, vector<2x128xf32> -> vector<2x128xf32>
    %150 = vector.extract_strided_slice %5 {offsets = [4, 0], sizes = [2, 128], strides = [1, 1]} : vector<16x128xf32> to vector<2x128xf32>
    %151 = arith.addf %150, %147 : vector<2x128xf32>
    %152 = arith.mulf %151, %25 : vector<2x128xf32>
    %153 = math.tanh %152 : vector<2x128xf32>
    %cst_50 = arith.constant 5.000000e-01 : f32
    %154 = vector.broadcast %cst_50 : f32 to vector<2x128xf32>
    %155 = arith.mulf %154, %153 : vector<2x128xf32>
    %cst_51 = arith.constant 5.000000e-01 : f32
    %156 = vector.broadcast %cst_51 : f32 to vector<2x128xf32>
    %157 = arith.addf %155, %156 : vector<2x128xf32>
    %158 = arith.select %22, %153, %157 : vector<2x128xi1>, vector<2x128xf32>
    %159 = vector.extract_strided_slice %158 {offsets = [0, 0], sizes = [2, 32], strides = [1, 1]} : vector<2x128xf32> to vector<2x32xf32>
    %160 = vector.extract_strided_slice %158 {offsets = [0, 32], sizes = [2, 32], strides = [1, 1]} : vector<2x128xf32> to vector<2x32xf32>
    %161 = vector.extract_strided_slice %158 {offsets = [0, 64], sizes = [2, 32], strides = [1, 1]} : vector<2x128xf32> to vector<2x32xf32>
    %162 = vector.extract_strided_slice %158 {offsets = [0, 96], sizes = [2, 32], strides = [1, 1]} : vector<2x128xf32> to vector<2x32xf32>
    %163 = arith.mulf %160, %105 : vector<2x32xf32>
    %164 = arith.mulf %159, %161 : vector<2x32xf32>
    %165 = arith.addf %163, %164 : vector<2x32xf32>
    %166 = math.tanh %165 : vector<2x32xf32>
    %167 = arith.mulf %162, %166 : vector<2x32xf32>
    %cst_52 = arith.constant dense<0.000000e+00> : vector<2x128xf32>
    %168 = tpu.matmul %167, %7, %cst_52 {dimension_numbers = #tpu.dot_dimension_numbers<[1], [0], [0], [1], [0, 0, 1, 1], [], []>} : vector<2x32xf32>, vector<32x128xf32>, vector<2x128xf32> -> vector<2x128xf32>
    %169 = arith.addf %168, %148 : vector<2x128xf32>
    %170 = arith.addf %169, %13 : vector<2x128xf32>
    %171 = arith.mulf %170, %25 : vector<2x128xf32>
    %172 = math.tanh %171 : vector<2x128xf32>
    %cst_53 = arith.constant 5.000000e-01 : f32
    %173 = vector.broadcast %cst_53 : f32 to vector<2x128xf32>
    %174 = arith.mulf %173, %172 : vector<2x128xf32>
    %cst_54 = arith.constant 5.000000e-01 : f32
    %175 = vector.broadcast %cst_54 : f32 to vector<2x128xf32>
    %176 = arith.addf %174, %175 : vector<2x128xf32>
    %177 = arith.select %22, %172, %176 : vector<2x128xi1>, vector<2x128xf32>
    %178 = vector.extract_strided_slice %177 {offsets = [0, 0], sizes = [2, 32], strides = [1, 1]} : vector<2x128xf32> to vector<2x32xf32>
    %179 = vector.extract_strided_slice %177 {offsets = [0, 32], sizes = [2, 32], strides = [1, 1]} : vector<2x128xf32> to vector<2x32xf32>
    %180 = vector.extract_strided_slice %177 {offsets = [0, 64], sizes = [2, 32], strides = [1, 1]} : vector<2x128xf32> to vector<2x32xf32>
    %181 = vector.extract_strided_slice %177 {offsets = [0, 96], sizes = [2, 32], strides = [1, 1]} : vector<2x128xf32> to vector<2x32xf32>
    %182 = arith.mulf %179, %124 : vector<2x32xf32>
    %183 = arith.mulf %178, %180 : vector<2x32xf32>
    %184 = arith.addf %182, %183 : vector<2x32xf32>
    %185 = math.tanh %184 : vector<2x32xf32>
    %186 = arith.mulf %181, %185 : vector<2x32xf32>
    %cst_55 = arith.constant dense<0.000000e+00> : vector<2x128xf32>
    %187 = tpu.matmul %186, %9, %cst_55 {dimension_numbers = #tpu.dot_dimension_numbers<[1], [0], [0], [1], [0, 0, 1, 1], [], []>} : vector<2x32xf32>, vector<32x128xf32>, vector<2x128xf32> -> vector<2x128xf32>
    %188 = arith.addf %187, %149 : vector<2x128xf32>
    %189 = arith.addf %188, %16 : vector<2x128xf32>
    %190 = arith.mulf %189, %25 : vector<2x128xf32>
    %191 = math.tanh %190 : vector<2x128xf32>
    %cst_56 = arith.constant 5.000000e-01 : f32
    %192 = vector.broadcast %cst_56 : f32 to vector<2x128xf32>
    %193 = arith.mulf %192, %191 : vector<2x128xf32>
    %cst_57 = arith.constant 5.000000e-01 : f32
    %194 = vector.broadcast %cst_57 : f32 to vector<2x128xf32>
    %195 = arith.addf %193, %194 : vector<2x128xf32>
    %196 = arith.select %22, %191, %195 : vector<2x128xi1>, vector<2x128xf32>
    %197 = vector.extract_strided_slice %196 {offsets = [0, 0], sizes = [2, 32], strides = [1, 1]} : vector<2x128xf32> to vector<2x32xf32>
    %198 = vector.extract_strided_slice %196 {offsets = [0, 32], sizes = [2, 32], strides = [1, 1]} : vector<2x128xf32> to vector<2x32xf32>
    %199 = vector.extract_strided_slice %196 {offsets = [0, 64], sizes = [2, 32], strides = [1, 1]} : vector<2x128xf32> to vector<2x32xf32>
    %200 = vector.extract_strided_slice %196 {offsets = [0, 96], sizes = [2, 32], strides = [1, 1]} : vector<2x128xf32> to vector<2x32xf32>
    %201 = arith.mulf %198, %143 : vector<2x32xf32>
    %202 = arith.mulf %197, %199 : vector<2x32xf32>
    %203 = arith.addf %201, %202 : vector<2x32xf32>
    %204 = math.tanh %203 : vector<2x32xf32>
    %205 = arith.mulf %200, %204 : vector<2x32xf32>
    %c4 = arith.constant 4 : index
    %c0_58 = arith.constant 0 : index
    %206 = vector.load %arg13[%c4, %c0_58] : memref<16x32xf32, #tpu.memory_space<vmem>>, vector<2x32xf32>
    tpu.vector_store %arg13[%c4, %c0_58], %205 {strides = array<i32>} : memref<16x32xf32, #tpu.memory_space<vmem>>, vector<2x32xf32>,
    %cst_59 = arith.constant dense<0.000000e+00> : vector<2x128xf32>
    %207 = tpu.matmul %167, %6, %cst_59 {dimension_numbers = #tpu.dot_dimension_numbers<[1], [0], [0], [1], [0, 0, 1, 1], [], []>} : vector<2x32xf32>, vector<32x128xf32>, vector<2x128xf32> -> vector<2x128xf32>
    %cst_60 = arith.constant dense<0.000000e+00> : vector<2x128xf32>
    %208 = tpu.matmul %186, %8, %cst_60 {dimension_numbers = #tpu.dot_dimension_numbers<[1], [0], [0], [1], [0, 0, 1, 1], [], []>} : vector<2x32xf32>, vector<32x128xf32>, vector<2x128xf32> -> vector<2x128xf32>
    %cst_61 = arith.constant dense<0.000000e+00> : vector<2x128xf32>
    %209 = tpu.matmul %205, %10, %cst_61 {dimension_numbers = #tpu.dot_dimension_numbers<[1], [0], [0], [1], [0, 0, 1, 1], [], []>} : vector<2x32xf32>, vector<32x128xf32>, vector<2x128xf32> -> vector<2x128xf32>
    %210 = vector.extract_strided_slice %5 {offsets = [6, 0], sizes = [2, 128], strides = [1, 1]} : vector<16x128xf32> to vector<2x128xf32>
    %211 = arith.addf %210, %207 : vector<2x128xf32>
    %212 = arith.mulf %211, %25 : vector<2x128xf32>
    %213 = math.tanh %212 : vector<2x128xf32>
    %cst_62 = arith.constant 5.000000e-01 : f32
    %214 = vector.broadcast %cst_62 : f32 to vector<2x128xf32>
    %215 = arith.mulf %214, %213 : vector<2x128xf32>
    %cst_63 = arith.constant 5.000000e-01 : f32
    %216 = vector.broadcast %cst_63 : f32 to vector<2x128xf32>
    %217 = arith.addf %215, %216 : vector<2x128xf32>
    %218 = arith.select %22, %213, %217 : vector<2x128xi1>, vector<2x128xf32>
    %219 = vector.extract_strided_slice %218 {offsets = [0, 0], sizes = [2, 32], strides = [1, 1]} : vector<2x128xf32> to vector<2x32xf32>
    %220 = vector.extract_strided_slice %218 {offsets = [0, 32], sizes = [2, 32], strides = [1, 1]} : vector<2x128xf32> to vector<2x32xf32>
    %221 = vector.extract_strided_slice %218 {offsets = [0, 64], sizes = [2, 32], strides = [1, 1]} : vector<2x128xf32> to vector<2x32xf32>
    %222 = vector.extract_strided_slice %218 {offsets = [0, 96], sizes = [2, 32], strides = [1, 1]} : vector<2x128xf32> to vector<2x32xf32>
    %223 = arith.mulf %220, %165 : vector<2x32xf32>
    %224 = arith.mulf %219, %221 : vector<2x32xf32>
    %225 = arith.addf %223, %224 : vector<2x32xf32>
    %226 = math.tanh %225 : vector<2x32xf32>
    %227 = arith.mulf %222, %226 : vector<2x32xf32>
    %cst_64 = arith.constant dense<0.000000e+00> : vector<2x128xf32>
    %228 = tpu.matmul %227, %7, %cst_64 {dimension_numbers = #tpu.dot_dimension_numbers<[1], [0], [0], [1], [0, 0, 1, 1], [], []>} : vector<2x32xf32>, vector<32x128xf32>, vector<2x128xf32> -> vector<2x128xf32>
    %229 = arith.addf %228, %208 : vector<2x128xf32>
    %230 = arith.addf %229, %13 : vector<2x128xf32>
    %231 = arith.mulf %230, %25 : vector<2x128xf32>
    %232 = math.tanh %231 : vector<2x128xf32>
    %cst_65 = arith.constant 5.000000e-01 : f32
    %233 = vector.broadcast %cst_65 : f32 to vector<2x128xf32>
    %234 = arith.mulf %233, %232 : vector<2x128xf32>
    %cst_66 = arith.constant 5.000000e-01 : f32
    %235 = vector.broadcast %cst_66 : f32 to vector<2x128xf32>
    %236 = arith.addf %234, %235 : vector<2x128xf32>
    %237 = arith.select %22, %232, %236 : vector<2x128xi1>, vector<2x128xf32>
    %238 = vector.extract_strided_slice %237 {offsets = [0, 0], sizes = [2, 32], strides = [1, 1]} : vector<2x128xf32> to vector<2x32xf32>
    %239 = vector.extract_strided_slice %237 {offsets = [0, 32], sizes = [2, 32], strides = [1, 1]} : vector<2x128xf32> to vector<2x32xf32>
    %240 = vector.extract_strided_slice %237 {offsets = [0, 64], sizes = [2, 32], strides = [1, 1]} : vector<2x128xf32> to vector<2x32xf32>
    %241 = vector.extract_strided_slice %237 {offsets = [0, 96], sizes = [2, 32], strides = [1, 1]} : vector<2x128xf32> to vector<2x32xf32>
    %242 = arith.mulf %239, %184 : vector<2x32xf32>
    %243 = arith.mulf %238, %240 : vector<2x32xf32>
    %244 = arith.addf %242, %243 : vector<2x32xf32>
    %245 = math.tanh %244 : vector<2x32xf32>
    %246 = arith.mulf %241, %245 : vector<2x32xf32>
    %cst_67 = arith.constant dense<0.000000e+00> : vector<2x128xf32>
    %247 = tpu.matmul %246, %9, %cst_67 {dimension_numbers = #tpu.dot_dimension_numbers<[1], [0], [0], [1], [0, 0, 1, 1], [], []>} : vector<2x32xf32>, vector<32x128xf32>, vector<2x128xf32> -> vector<2x128xf32>
    %248 = arith.addf %247, %209 : vector<2x128xf32>
    %249 = arith.addf %248, %16 : vector<2x128xf32>
    %250 = arith.mulf %249, %25 : vector<2x128xf32>
    %251 = math.tanh %250 : vector<2x128xf32>
    %cst_68 = arith.constant 5.000000e-01 : f32
    %252 = vector.broadcast %cst_68 : f32 to vector<2x128xf32>
    %253 = arith.mulf %252, %251 : vector<2x128xf32>
    %cst_69 = arith.constant 5.000000e-01 : f32
    %254 = vector.broadcast %cst_69 : f32 to vector<2x128xf32>
    %255 = arith.addf %253, %254 : vector<2x128xf32>
    %256 = arith.select %22, %251, %255 : vector<2x128xi1>, vector<2x128xf32>
    %257 = vector.extract_strided_slice %256 {offsets = [0, 0], sizes = [2, 32], strides = [1, 1]} : vector<2x128xf32> to vector<2x32xf32>
    %258 = vector.extract_strided_slice %256 {offsets = [0, 32], sizes = [2, 32], strides = [1, 1]} : vector<2x128xf32> to vector<2x32xf32>
    %259 = vector.extract_strided_slice %256 {offsets = [0, 64], sizes = [2, 32], strides = [1, 1]} : vector<2x128xf32> to vector<2x32xf32>
    %260 = vector.extract_strided_slice %256 {offsets = [0, 96], sizes = [2, 32], strides = [1, 1]} : vector<2x128xf32> to vector<2x32xf32>
    %261 = arith.mulf %258, %203 : vector<2x32xf32>
    %262 = arith.mulf %257, %259 : vector<2x32xf32>
    %263 = arith.addf %261, %262 : vector<2x32xf32>
    %264 = math.tanh %263 : vector<2x32xf32>
    %265 = arith.mulf %260, %264 : vector<2x32xf32>
    %c6 = arith.constant 6 : index
    %c0_70 = arith.constant 0 : index
    %266 = vector.load %arg13[%c6, %c0_70] : memref<16x32xf32, #tpu.memory_space<vmem>>, vector<2x32xf32>
    tpu.vector_store %arg13[%c6, %c0_70], %265 {strides = array<i32>} : memref<16x32xf32, #tpu.memory_space<vmem>>, vector<2x32xf32>,
    %cst_71 = arith.constant dense<0.000000e+00> : vector<2x128xf32>
    %267 = tpu.matmul %227, %6, %cst_71 {dimension_numbers = #tpu.dot_dimension_numbers<[1], [0], [0], [1], [0, 0, 1, 1], [], []>} : vector<2x32xf32>, vector<32x128xf32>, vector<2x128xf32> -> vector<2x128xf32>
    %cst_72 = arith.constant dense<0.000000e+00> : vector<2x128xf32>
    %268 = tpu.matmul %246, %8, %cst_72 {dimension_numbers = #tpu.dot_dimension_numbers<[1], [0], [0], [1], [0, 0, 1, 1], [], []>} : vector<2x32xf32>, vector<32x128xf32>, vector<2x128xf32> -> vector<2x128xf32>
    %cst_73 = arith.constant dense<0.000000e+00> : vector<2x128xf32>
    %269 = tpu.matmul %265, %10, %cst_73 {dimension_numbers = #tpu.dot_dimension_numbers<[1], [0], [0], [1], [0, 0, 1, 1], [], []>} : vector<2x32xf32>, vector<32x128xf32>, vector<2x128xf32> -> vector<2x128xf32>
    %270 = vector.extract_strided_slice %5 {offsets = [8, 0], sizes = [2, 128], strides = [1, 1]} : vector<16x128xf32> to vector<2x128xf32>
    %271 = arith.addf %270, %267 : vector<2x128xf32>
    %272 = arith.mulf %271, %25 : vector<2x128xf32>
    %273 = math.tanh %272 : vector<2x128xf32>
    %cst_74 = arith.constant 5.000000e-01 : f32
    %274 = vector.broadcast %cst_74 : f32 to vector<2x128xf32>
    %275 = arith.mulf %274, %273 : vector<2x128xf32>
    %cst_75 = arith.constant 5.000000e-01 : f32
    %276 = vector.broadcast %cst_75 : f32 to vector<2x128xf32>
    %277 = arith.addf %275, %276 : vector<2x128xf32>
    %278 = arith.select %22, %273, %277 : vector<2x128xi1>, vector<2x128xf32>
    %279 = vector.extract_strided_slice %278 {offsets = [0, 0], sizes = [2, 32], strides = [1, 1]} : vector<2x128xf32> to vector<2x32xf32>
    %280 = vector.extract_strided_slice %278 {offsets = [0, 32], sizes = [2, 32], strides = [1, 1]} : vector<2x128xf32> to vector<2x32xf32>
    %281 = vector.extract_strided_slice %278 {offsets = [0, 64], sizes = [2, 32], strides = [1, 1]} : vector<2x128xf32> to vector<2x32xf32>
    %282 = vector.extract_strided_slice %278 {offsets = [0, 96], sizes = [2, 32], strides = [1, 1]} : vector<2x128xf32> to vector<2x32xf32>
    %283 = arith.mulf %280, %225 : vector<2x32xf32>
    %284 = arith.mulf %279, %281 : vector<2x32xf32>
    %285 = arith.addf %283, %284 : vector<2x32xf32>
    %286 = math.tanh %285 : vector<2x32xf32>
    %287 = arith.mulf %282, %286 : vector<2x32xf32>
    %cst_76 = arith.constant dense<0.000000e+00> : vector<2x128xf32>
    %288 = tpu.matmul %287, %7, %cst_76 {dimension_numbers = #tpu.dot_dimension_numbers<[1], [0], [0], [1], [0, 0, 1, 1], [], []>} : vector<2x32xf32>, vector<32x128xf32>, vector<2x128xf32> -> vector<2x128xf32>
    %289 = arith.addf %288, %268 : vector<2x128xf32>
    %290 = arith.addf %289, %13 : vector<2x128xf32>
    %291 = arith.mulf %290, %25 : vector<2x128xf32>
    %292 = math.tanh %291 : vector<2x128xf32>
    %cst_77 = arith.constant 5.000000e-01 : f32
    %293 = vector.broadcast %cst_77 : f32 to vector<2x128xf32>
    %294 = arith.mulf %293, %292 : vector<2x128xf32>
    %cst_78 = arith.constant 5.000000e-01 : f32
    %295 = vector.broadcast %cst_78 : f32 to vector<2x128xf32>
    %296 = arith.addf %294, %295 : vector<2x128xf32>
    %297 = arith.select %22, %292, %296 : vector<2x128xi1>, vector<2x128xf32>
    %298 = vector.extract_strided_slice %297 {offsets = [0, 0], sizes = [2, 32], strides = [1, 1]} : vector<2x128xf32> to vector<2x32xf32>
    %299 = vector.extract_strided_slice %297 {offsets = [0, 32], sizes = [2, 32], strides = [1, 1]} : vector<2x128xf32> to vector<2x32xf32>
    %300 = vector.extract_strided_slice %297 {offsets = [0, 64], sizes = [2, 32], strides = [1, 1]} : vector<2x128xf32> to vector<2x32xf32>
    %301 = vector.extract_strided_slice %297 {offsets = [0, 96], sizes = [2, 32], strides = [1, 1]} : vector<2x128xf32> to vector<2x32xf32>
    %302 = arith.mulf %299, %244 : vector<2x32xf32>
    %303 = arith.mulf %298, %300 : vector<2x32xf32>
    %304 = arith.addf %302, %303 : vector<2x32xf32>
    %305 = math.tanh %304 : vector<2x32xf32>
    %306 = arith.mulf %301, %305 : vector<2x32xf32>
    %cst_79 = arith.constant dense<0.000000e+00> : vector<2x128xf32>
    %307 = tpu.matmul %306, %9, %cst_79 {dimension_numbers = #tpu.dot_dimension_numbers<[1], [0], [0], [1], [0, 0, 1, 1], [], []>} : vector<2x32xf32>, vector<32x128xf32>, vector<2x128xf32> -> vector<2x128xf32>
    %308 = arith.addf %307, %269 : vector<2x128xf32>
    %309 = arith.addf %308, %16 : vector<2x128xf32>
    %310 = arith.mulf %309, %25 : vector<2x128xf32>
    %311 = math.tanh %310 : vector<2x128xf32>
    %cst_80 = arith.constant 5.000000e-01 : f32
    %312 = vector.broadcast %cst_80 : f32 to vector<2x128xf32>
    %313 = arith.mulf %312, %311 : vector<2x128xf32>
    %cst_81 = arith.constant 5.000000e-01 : f32
    %314 = vector.broadcast %cst_81 : f32 to vector<2x128xf32>
    %315 = arith.addf %313, %314 : vector<2x128xf32>
    %316 = arith.select %22, %311, %315 : vector<2x128xi1>, vector<2x128xf32>
    %317 = vector.extract_strided_slice %316 {offsets = [0, 0], sizes = [2, 32], strides = [1, 1]} : vector<2x128xf32> to vector<2x32xf32>
    %318 = vector.extract_strided_slice %316 {offsets = [0, 32], sizes = [2, 32], strides = [1, 1]} : vector<2x128xf32> to vector<2x32xf32>
    %319 = vector.extract_strided_slice %316 {offsets = [0, 64], sizes = [2, 32], strides = [1, 1]} : vector<2x128xf32> to vector<2x32xf32>
    %320 = vector.extract_strided_slice %316 {offsets = [0, 96], sizes = [2, 32], strides = [1, 1]} : vector<2x128xf32> to vector<2x32xf32>
    %321 = arith.mulf %318, %263 : vector<2x32xf32>
    %322 = arith.mulf %317, %319 : vector<2x32xf32>
    %323 = arith.addf %321, %322 : vector<2x32xf32>
    %324 = math.tanh %323 : vector<2x32xf32>
    %325 = arith.mulf %320, %324 : vector<2x32xf32>
    %c8 = arith.constant 8 : index
    %c0_82 = arith.constant 0 : index
    %326 = vector.load %arg13[%c8, %c0_82] : memref<16x32xf32, #tpu.memory_space<vmem>>, vector<2x32xf32>
    tpu.vector_store %arg13[%c8, %c0_82], %325 {strides = array<i32>} : memref<16x32xf32, #tpu.memory_space<vmem>>, vector<2x32xf32>,
    %cst_83 = arith.constant dense<0.000000e+00> : vector<2x128xf32>
    %327 = tpu.matmul %287, %6, %cst_83 {dimension_numbers = #tpu.dot_dimension_numbers<[1], [0], [0], [1], [0, 0, 1, 1], [], []>} : vector<2x32xf32>, vector<32x128xf32>, vector<2x128xf32> -> vector<2x128xf32>
    %cst_84 = arith.constant dense<0.000000e+00> : vector<2x128xf32>
    %328 = tpu.matmul %306, %8, %cst_84 {dimension_numbers = #tpu.dot_dimension_numbers<[1], [0], [0], [1], [0, 0, 1, 1], [], []>} : vector<2x32xf32>, vector<32x128xf32>, vector<2x128xf32> -> vector<2x128xf32>
    %cst_85 = arith.constant dense<0.000000e+00> : vector<2x128xf32>
    %329 = tpu.matmul %325, %10, %cst_85 {dimension_numbers = #tpu.dot_dimension_numbers<[1], [0], [0], [1], [0, 0, 1, 1], [], []>} : vector<2x32xf32>, vector<32x128xf32>, vector<2x128xf32> -> vector<2x128xf32>
    %330 = vector.extract_strided_slice %5 {offsets = [10, 0], sizes = [2, 128], strides = [1, 1]} : vector<16x128xf32> to vector<2x128xf32>
    %331 = arith.addf %330, %327 : vector<2x128xf32>
    %332 = arith.mulf %331, %25 : vector<2x128xf32>
    %333 = math.tanh %332 : vector<2x128xf32>
    %cst_86 = arith.constant 5.000000e-01 : f32
    %334 = vector.broadcast %cst_86 : f32 to vector<2x128xf32>
    %335 = arith.mulf %334, %333 : vector<2x128xf32>
    %cst_87 = arith.constant 5.000000e-01 : f32
    %336 = vector.broadcast %cst_87 : f32 to vector<2x128xf32>
    %337 = arith.addf %335, %336 : vector<2x128xf32>
    %338 = arith.select %22, %333, %337 : vector<2x128xi1>, vector<2x128xf32>
    %339 = vector.extract_strided_slice %338 {offsets = [0, 0], sizes = [2, 32], strides = [1, 1]} : vector<2x128xf32> to vector<2x32xf32>
    %340 = vector.extract_strided_slice %338 {offsets = [0, 32], sizes = [2, 32], strides = [1, 1]} : vector<2x128xf32> to vector<2x32xf32>
    %341 = vector.extract_strided_slice %338 {offsets = [0, 64], sizes = [2, 32], strides = [1, 1]} : vector<2x128xf32> to vector<2x32xf32>
    %342 = vector.extract_strided_slice %338 {offsets = [0, 96], sizes = [2, 32], strides = [1, 1]} : vector<2x128xf32> to vector<2x32xf32>
    %343 = arith.mulf %340, %285 : vector<2x32xf32>
    %344 = arith.mulf %339, %341 : vector<2x32xf32>
    %345 = arith.addf %343, %344 : vector<2x32xf32>
    %346 = math.tanh %345 : vector<2x32xf32>
    %347 = arith.mulf %342, %346 : vector<2x32xf32>
    %cst_88 = arith.constant dense<0.000000e+00> : vector<2x128xf32>
    %348 = tpu.matmul %347, %7, %cst_88 {dimension_numbers = #tpu.dot_dimension_numbers<[1], [0], [0], [1], [0, 0, 1, 1], [], []>} : vector<2x32xf32>, vector<32x128xf32>, vector<2x128xf32> -> vector<2x128xf32>
    %349 = arith.addf %348, %328 : vector<2x128xf32>
    %350 = arith.addf %349, %13 : vector<2x128xf32>
    %351 = arith.mulf %350, %25 : vector<2x128xf32>
    %352 = math.tanh %351 : vector<2x128xf32>
    %cst_89 = arith.constant 5.000000e-01 : f32
    %353 = vector.broadcast %cst_89 : f32 to vector<2x128xf32>
    %354 = arith.mulf %353, %352 : vector<2x128xf32>
    %cst_90 = arith.constant 5.000000e-01 : f32
    %355 = vector.broadcast %cst_90 : f32 to vector<2x128xf32>
    %356 = arith.addf %354, %355 : vector<2x128xf32>
    %357 = arith.select %22, %352, %356 : vector<2x128xi1>, vector<2x128xf32>
    %358 = vector.extract_strided_slice %357 {offsets = [0, 0], sizes = [2, 32], strides = [1, 1]} : vector<2x128xf32> to vector<2x32xf32>
    %359 = vector.extract_strided_slice %357 {offsets = [0, 32], sizes = [2, 32], strides = [1, 1]} : vector<2x128xf32> to vector<2x32xf32>
    %360 = vector.extract_strided_slice %357 {offsets = [0, 64], sizes = [2, 32], strides = [1, 1]} : vector<2x128xf32> to vector<2x32xf32>
    %361 = vector.extract_strided_slice %357 {offsets = [0, 96], sizes = [2, 32], strides = [1, 1]} : vector<2x128xf32> to vector<2x32xf32>
    %362 = arith.mulf %359, %304 : vector<2x32xf32>
    %363 = arith.mulf %358, %360 : vector<2x32xf32>
    %364 = arith.addf %362, %363 : vector<2x32xf32>
    %365 = math.tanh %364 : vector<2x32xf32>
    %366 = arith.mulf %361, %365 : vector<2x32xf32>
    %cst_91 = arith.constant dense<0.000000e+00> : vector<2x128xf32>
    %367 = tpu.matmul %366, %9, %cst_91 {dimension_numbers = #tpu.dot_dimension_numbers<[1], [0], [0], [1], [0, 0, 1, 1], [], []>} : vector<2x32xf32>, vector<32x128xf32>, vector<2x128xf32> -> vector<2x128xf32>
    %368 = arith.addf %367, %329 : vector<2x128xf32>
    %369 = arith.addf %368, %16 : vector<2x128xf32>
    %370 = arith.mulf %369, %25 : vector<2x128xf32>
    %371 = math.tanh %370 : vector<2x128xf32>
    %cst_92 = arith.constant 5.000000e-01 : f32
    %372 = vector.broadcast %cst_92 : f32 to vector<2x128xf32>
    %373 = arith.mulf %372, %371 : vector<2x128xf32>
    %cst_93 = arith.constant 5.000000e-01 : f32
    %374 = vector.broadcast %cst_93 : f32 to vector<2x128xf32>
    %375 = arith.addf %373, %374 : vector<2x128xf32>
    %376 = arith.select %22, %371, %375 : vector<2x128xi1>, vector<2x128xf32>
    %377 = vector.extract_strided_slice %376 {offsets = [0, 0], sizes = [2, 32], strides = [1, 1]} : vector<2x128xf32> to vector<2x32xf32>
    %378 = vector.extract_strided_slice %376 {offsets = [0, 32], sizes = [2, 32], strides = [1, 1]} : vector<2x128xf32> to vector<2x32xf32>
    %379 = vector.extract_strided_slice %376 {offsets = [0, 64], sizes = [2, 32], strides = [1, 1]} : vector<2x128xf32> to vector<2x32xf32>
    %380 = vector.extract_strided_slice %376 {offsets = [0, 96], sizes = [2, 32], strides = [1, 1]} : vector<2x128xf32> to vector<2x32xf32>
    %381 = arith.mulf %378, %323 : vector<2x32xf32>
    %382 = arith.mulf %377, %379 : vector<2x32xf32>
    %383 = arith.addf %381, %382 : vector<2x32xf32>
    %384 = math.tanh %383 : vector<2x32xf32>
    %385 = arith.mulf %380, %384 : vector<2x32xf32>
    %c10 = arith.constant 10 : index
    %c0_94 = arith.constant 0 : index
    %386 = vector.load %arg13[%c10, %c0_94] : memref<16x32xf32, #tpu.memory_space<vmem>>, vector<2x32xf32>
    tpu.vector_store %arg13[%c10, %c0_94], %385 {strides = array<i32>} : memref<16x32xf32, #tpu.memory_space<vmem>>, vector<2x32xf32>,
    %cst_95 = arith.constant dense<0.000000e+00> : vector<2x128xf32>
    %387 = tpu.matmul %347, %6, %cst_95 {dimension_numbers = #tpu.dot_dimension_numbers<[1], [0], [0], [1], [0, 0, 1, 1], [], []>} : vector<2x32xf32>, vector<32x128xf32>, vector<2x128xf32> -> vector<2x128xf32>
    %cst_96 = arith.constant dense<0.000000e+00> : vector<2x128xf32>
    %388 = tpu.matmul %366, %8, %cst_96 {dimension_numbers = #tpu.dot_dimension_numbers<[1], [0], [0], [1], [0, 0, 1, 1], [], []>} : vector<2x32xf32>, vector<32x128xf32>, vector<2x128xf32> -> vector<2x128xf32>
    %cst_97 = arith.constant dense<0.000000e+00> : vector<2x128xf32>
    %389 = tpu.matmul %385, %10, %cst_97 {dimension_numbers = #tpu.dot_dimension_numbers<[1], [0], [0], [1], [0, 0, 1, 1], [], []>} : vector<2x32xf32>, vector<32x128xf32>, vector<2x128xf32> -> vector<2x128xf32>
    %390 = vector.extract_strided_slice %5 {offsets = [12, 0], sizes = [2, 128], strides = [1, 1]} : vector<16x128xf32> to vector<2x128xf32>
    %391 = arith.addf %390, %387 : vector<2x128xf32>
    %392 = arith.mulf %391, %25 : vector<2x128xf32>
    %393 = math.tanh %392 : vector<2x128xf32>
    %cst_98 = arith.constant 5.000000e-01 : f32
    %394 = vector.broadcast %cst_98 : f32 to vector<2x128xf32>
    %395 = arith.mulf %394, %393 : vector<2x128xf32>
    %cst_99 = arith.constant 5.000000e-01 : f32
    %396 = vector.broadcast %cst_99 : f32 to vector<2x128xf32>
    %397 = arith.addf %395, %396 : vector<2x128xf32>
    %398 = arith.select %22, %393, %397 : vector<2x128xi1>, vector<2x128xf32>
    %399 = vector.extract_strided_slice %398 {offsets = [0, 0], sizes = [2, 32], strides = [1, 1]} : vector<2x128xf32> to vector<2x32xf32>
    %400 = vector.extract_strided_slice %398 {offsets = [0, 32], sizes = [2, 32], strides = [1, 1]} : vector<2x128xf32> to vector<2x32xf32>
    %401 = vector.extract_strided_slice %398 {offsets = [0, 64], sizes = [2, 32], strides = [1, 1]} : vector<2x128xf32> to vector<2x32xf32>
    %402 = vector.extract_strided_slice %398 {offsets = [0, 96], sizes = [2, 32], strides = [1, 1]} : vector<2x128xf32> to vector<2x32xf32>
    %403 = arith.mulf %400, %345 : vector<2x32xf32>
    %404 = arith.mulf %399, %401 : vector<2x32xf32>
    %405 = arith.addf %403, %404 : vector<2x32xf32>
    %406 = math.tanh %405 : vector<2x32xf32>
    %407 = arith.mulf %402, %406 : vector<2x32xf32>
    %cst_100 = arith.constant dense<0.000000e+00> : vector<2x128xf32>
    %408 = tpu.matmul %407, %7, %cst_100 {dimension_numbers = #tpu.dot_dimension_numbers<[1], [0], [0], [1], [0, 0, 1, 1], [], []>} : vector<2x32xf32>, vector<32x128xf32>, vector<2x128xf32> -> vector<2x128xf32>
    %409 = arith.addf %408, %388 : vector<2x128xf32>
    %410 = arith.addf %409, %13 : vector<2x128xf32>
    %411 = arith.mulf %410, %25 : vector<2x128xf32>
    %412 = math.tanh %411 : vector<2x128xf32>
    %cst_101 = arith.constant 5.000000e-01 : f32
    %413 = vector.broadcast %cst_101 : f32 to vector<2x128xf32>
    %414 = arith.mulf %413, %412 : vector<2x128xf32>
    %cst_102 = arith.constant 5.000000e-01 : f32
    %415 = vector.broadcast %cst_102 : f32 to vector<2x128xf32>
    %416 = arith.addf %414, %415 : vector<2x128xf32>
    %417 = arith.select %22, %412, %416 : vector<2x128xi1>, vector<2x128xf32>
    %418 = vector.extract_strided_slice %417 {offsets = [0, 0], sizes = [2, 32], strides = [1, 1]} : vector<2x128xf32> to vector<2x32xf32>
    %419 = vector.extract_strided_slice %417 {offsets = [0, 32], sizes = [2, 32], strides = [1, 1]} : vector<2x128xf32> to vector<2x32xf32>
    %420 = vector.extract_strided_slice %417 {offsets = [0, 64], sizes = [2, 32], strides = [1, 1]} : vector<2x128xf32> to vector<2x32xf32>
    %421 = vector.extract_strided_slice %417 {offsets = [0, 96], sizes = [2, 32], strides = [1, 1]} : vector<2x128xf32> to vector<2x32xf32>
    %422 = arith.mulf %419, %364 : vector<2x32xf32>
    %423 = arith.mulf %418, %420 : vector<2x32xf32>
    %424 = arith.addf %422, %423 : vector<2x32xf32>
    %425 = math.tanh %424 : vector<2x32xf32>
    %426 = arith.mulf %421, %425 : vector<2x32xf32>
    %cst_103 = arith.constant dense<0.000000e+00> : vector<2x128xf32>
    %427 = tpu.matmul %426, %9, %cst_103 {dimension_numbers = #tpu.dot_dimension_numbers<[1], [0], [0], [1], [0, 0, 1, 1], [], []>} : vector<2x32xf32>, vector<32x128xf32>, vector<2x128xf32> -> vector<2x128xf32>
    %428 = arith.addf %427, %389 : vector<2x128xf32>
    %429 = arith.addf %428, %16 : vector<2x128xf32>
    %430 = arith.mulf %429, %25 : vector<2x128xf32>
    %431 = math.tanh %430 : vector<2x128xf32>
    %cst_104 = arith.constant 5.000000e-01 : f32
    %432 = vector.broadcast %cst_104 : f32 to vector<2x128xf32>
    %433 = arith.mulf %432, %431 : vector<2x128xf32>
    %cst_105 = arith.constant 5.000000e-01 : f32
    %434 = vector.broadcast %cst_105 : f32 to vector<2x128xf32>
    %435 = arith.addf %433, %434 : vector<2x128xf32>
    %436 = arith.select %22, %431, %435 : vector<2x128xi1>, vector<2x128xf32>
    %437 = vector.extract_strided_slice %436 {offsets = [0, 0], sizes = [2, 32], strides = [1, 1]} : vector<2x128xf32> to vector<2x32xf32>
    %438 = vector.extract_strided_slice %436 {offsets = [0, 32], sizes = [2, 32], strides = [1, 1]} : vector<2x128xf32> to vector<2x32xf32>
    %439 = vector.extract_strided_slice %436 {offsets = [0, 64], sizes = [2, 32], strides = [1, 1]} : vector<2x128xf32> to vector<2x32xf32>
    %440 = vector.extract_strided_slice %436 {offsets = [0, 96], sizes = [2, 32], strides = [1, 1]} : vector<2x128xf32> to vector<2x32xf32>
    %441 = arith.mulf %438, %383 : vector<2x32xf32>
    %442 = arith.mulf %437, %439 : vector<2x32xf32>
    %443 = arith.addf %441, %442 : vector<2x32xf32>
    %444 = math.tanh %443 : vector<2x32xf32>
    %445 = arith.mulf %440, %444 : vector<2x32xf32>
    %c12 = arith.constant 12 : index
    %c0_106 = arith.constant 0 : index
    %446 = vector.load %arg13[%c12, %c0_106] : memref<16x32xf32, #tpu.memory_space<vmem>>, vector<2x32xf32>
    tpu.vector_store %arg13[%c12, %c0_106], %445 {strides = array<i32>} : memref<16x32xf32, #tpu.memory_space<vmem>>, vector<2x32xf32>,
    %cst_107 = arith.constant dense<0.000000e+00> : vector<2x128xf32>
    %447 = tpu.matmul %407, %6, %cst_107 {dimension_numbers = #tpu.dot_dimension_numbers<[1], [0], [0], [1], [0, 0, 1, 1], [], []>} : vector<2x32xf32>, vector<32x128xf32>, vector<2x128xf32> -> vector<2x128xf32>
    %cst_108 = arith.constant dense<0.000000e+00> : vector<2x128xf32>
    %448 = tpu.matmul %426, %8, %cst_108 {dimension_numbers = #tpu.dot_dimension_numbers<[1], [0], [0], [1], [0, 0, 1, 1], [], []>} : vector<2x32xf32>, vector<32x128xf32>, vector<2x128xf32> -> vector<2x128xf32>
    %cst_109 = arith.constant dense<0.000000e+00> : vector<2x128xf32>
    %449 = tpu.matmul %445, %10, %cst_109 {dimension_numbers = #tpu.dot_dimension_numbers<[1], [0], [0], [1], [0, 0, 1, 1], [], []>} : vector<2x32xf32>, vector<32x128xf32>, vector<2x128xf32> -> vector<2x128xf32>
    %450 = vector.extract_strided_slice %5 {offsets = [14, 0], sizes = [2, 128], strides = [1, 1]} : vector<16x128xf32> to vector<2x128xf32>
    %451 = arith.addf %450, %447 : vector<2x128xf32>
    %452 = arith.mulf %451, %25 : vector<2x128xf32>
    %453 = math.tanh %452 : vector<2x128xf32>
    %cst_110 = arith.constant 5.000000e-01 : f32
    %454 = vector.broadcast %cst_110 : f32 to vector<2x128xf32>
    %455 = arith.mulf %454, %453 : vector<2x128xf32>
    %cst_111 = arith.constant 5.000000e-01 : f32
    %456 = vector.broadcast %cst_111 : f32 to vector<2x128xf32>
    %457 = arith.addf %455, %456 : vector<2x128xf32>
    %458 = arith.select %22, %453, %457 : vector<2x128xi1>, vector<2x128xf32>
    %459 = vector.extract_strided_slice %458 {offsets = [0, 0], sizes = [2, 32], strides = [1, 1]} : vector<2x128xf32> to vector<2x32xf32>
    %460 = vector.extract_strided_slice %458 {offsets = [0, 32], sizes = [2, 32], strides = [1, 1]} : vector<2x128xf32> to vector<2x32xf32>
    %461 = vector.extract_strided_slice %458 {offsets = [0, 64], sizes = [2, 32], strides = [1, 1]} : vector<2x128xf32> to vector<2x32xf32>
    %462 = vector.extract_strided_slice %458 {offsets = [0, 96], sizes = [2, 32], strides = [1, 1]} : vector<2x128xf32> to vector<2x32xf32>
    %463 = arith.mulf %460, %405 : vector<2x32xf32>
    %464 = arith.mulf %459, %461 : vector<2x32xf32>
    %465 = arith.addf %463, %464 : vector<2x32xf32>
    %466 = math.tanh %465 : vector<2x32xf32>
    %467 = arith.mulf %462, %466 : vector<2x32xf32>
    %cst_112 = arith.constant dense<0.000000e+00> : vector<2x128xf32>
    %468 = tpu.matmul %467, %7, %cst_112 {dimension_numbers = #tpu.dot_dimension_numbers<[1], [0], [0], [1], [0, 0, 1, 1], [], []>} : vector<2x32xf32>, vector<32x128xf32>, vector<2x128xf32> -> vector<2x128xf32>
    %469 = arith.addf %468, %448 : vector<2x128xf32>
    %470 = arith.addf %469, %13 : vector<2x128xf32>
    %471 = arith.mulf %470, %25 : vector<2x128xf32>
    %472 = math.tanh %471 : vector<2x128xf32>
    %cst_113 = arith.constant 5.000000e-01 : f32
    %473 = vector.broadcast %cst_113 : f32 to vector<2x128xf32>
    %474 = arith.mulf %473, %472 : vector<2x128xf32>
    %cst_114 = arith.constant 5.000000e-01 : f32
    %475 = vector.broadcast %cst_114 : f32 to vector<2x128xf32>
    %476 = arith.addf %474, %475 : vector<2x128xf32>
    %477 = arith.select %22, %472, %476 : vector<2x128xi1>, vector<2x128xf32>
    %478 = vector.extract_strided_slice %477 {offsets = [0, 0], sizes = [2, 32], strides = [1, 1]} : vector<2x128xf32> to vector<2x32xf32>
    %479 = vector.extract_strided_slice %477 {offsets = [0, 32], sizes = [2, 32], strides = [1, 1]} : vector<2x128xf32> to vector<2x32xf32>
    %480 = vector.extract_strided_slice %477 {offsets = [0, 64], sizes = [2, 32], strides = [1, 1]} : vector<2x128xf32> to vector<2x32xf32>
    %481 = vector.extract_strided_slice %477 {offsets = [0, 96], sizes = [2, 32], strides = [1, 1]} : vector<2x128xf32> to vector<2x32xf32>
    %482 = arith.mulf %479, %424 : vector<2x32xf32>
    %483 = arith.mulf %478, %480 : vector<2x32xf32>
    %484 = arith.addf %482, %483 : vector<2x32xf32>
    %485 = math.tanh %484 : vector<2x32xf32>
    %486 = arith.mulf %481, %485 : vector<2x32xf32>
    %cst_115 = arith.constant dense<0.000000e+00> : vector<2x128xf32>
    %487 = tpu.matmul %486, %9, %cst_115 {dimension_numbers = #tpu.dot_dimension_numbers<[1], [0], [0], [1], [0, 0, 1, 1], [], []>} : vector<2x32xf32>, vector<32x128xf32>, vector<2x128xf32> -> vector<2x128xf32>
    %488 = arith.addf %487, %449 : vector<2x128xf32>
    %489 = arith.addf %488, %16 : vector<2x128xf32>
    %490 = arith.mulf %489, %25 : vector<2x128xf32>
    %491 = math.tanh %490 : vector<2x128xf32>
    %cst_116 = arith.constant 5.000000e-01 : f32
    %492 = vector.broadcast %cst_116 : f32 to vector<2x128xf32>
    %493 = arith.mulf %492, %491 : vector<2x128xf32>
    %cst_117 = arith.constant 5.000000e-01 : f32
    %494 = vector.broadcast %cst_117 : f32 to vector<2x128xf32>
    %495 = arith.addf %493, %494 : vector<2x128xf32>
    %496 = arith.select %22, %491, %495 : vector<2x128xi1>, vector<2x128xf32>
    %497 = vector.extract_strided_slice %496 {offsets = [0, 0], sizes = [2, 32], strides = [1, 1]} : vector<2x128xf32> to vector<2x32xf32>
    %498 = vector.extract_strided_slice %496 {offsets = [0, 32], sizes = [2, 32], strides = [1, 1]} : vector<2x128xf32> to vector<2x32xf32>
    %499 = vector.extract_strided_slice %496 {offsets = [0, 64], sizes = [2, 32], strides = [1, 1]} : vector<2x128xf32> to vector<2x32xf32>
    %500 = vector.extract_strided_slice %496 {offsets = [0, 96], sizes = [2, 32], strides = [1, 1]} : vector<2x128xf32> to vector<2x32xf32>
    %501 = arith.mulf %498, %443 : vector<2x32xf32>
    %502 = arith.mulf %497, %499 : vector<2x32xf32>
    %503 = arith.addf %501, %502 : vector<2x32xf32>
    %504 = math.tanh %503 : vector<2x32xf32>
    %505 = arith.mulf %500, %504 : vector<2x32xf32>
    %c14 = arith.constant 14 : index
    %c0_118 = arith.constant 0 : index
    %506 = vector.load %arg13[%c14, %c0_118] : memref<16x32xf32, #tpu.memory_space<vmem>>, vector<2x32xf32>
    tpu.vector_store %arg13[%c14, %c0_118], %505 {strides = array<i32>} : memref<16x32xf32, #tpu.memory_space<vmem>>, vector<2x32xf32>,
    %c0_119 = arith.constant 0 : index
    %c0_120 = arith.constant 0 : index
    %507 = vector.load %arg13[%c0_119, %c0_120] : memref<16x32xf32, #tpu.memory_space<vmem>>, vector<16x32xf32>
    %c0_121 = arith.constant 0 : index
    %c0_122 = arith.constant 0 : index
    %508 = vector.load %arg10[%c0_121, %c0_122] : memref<32x128xf32, #tpu.memory_space<vmem>>, vector<32x128xf32>
    %cst_123 = arith.constant dense<0.000000e+00> : vector<16x128xf32>
    %509 = tpu.matmul %507, %508, %cst_123 {dimension_numbers = #tpu.dot_dimension_numbers<[1], [0], [0], [1], [0, 0, 1, 1], [], []>} : vector<16x32xf32>, vector<32x128xf32>, vector<16x128xf32> -> vector<16x128xf32>
    %c0_124 = arith.constant 0 : index
    %c0_125 = arith.constant 0 : index
    %510 = vector.load %arg11[%c0_124, %c0_125] : memref<1x128xf32, #tpu.memory_space<vmem>>, vector<1x128xf32>
    %511 = vector.broadcast %510 : vector<1x128xf32> to vector<16x128xf32>
    %512 = arith.addf %509, %511 : vector<16x128xf32>
    %513 = arith.negf %512 : vector<16x128xf32>
    %514 = math.exp %513 : vector<16x128xf32>
    %cst_126 = arith.constant 1.000000e+00 : f32
    %515 = vector.broadcast %cst_126 : f32 to vector<16x128xf32>
    %516 = arith.addf %515, %514 : vector<16x128xf32>
    %517 = arith.divf %515, %516 : vector<16x128xf32>
    %c0_127 = arith.constant 0 : index
    %c0_128 = arith.constant 0 : index
    %518 = vector.load %arg12[%c0_127, %c0_128] : memref<16x128xf32, #tpu.memory_space<vmem>>, vector<16x128xf32>
    tpu.vector_store %arg12[%c0_127, %c0_128], %517 {strides = array<i32>} : memref<16x128xf32, #tpu.memory_space<vmem>>, vector<16x128xf32>,
    return
  }
}

</mosaic_0001>

<bundles_post_ra>
// kernel: tpu_custom_call.1
= control target key start
LH: loop header
LB: loop body
LE: loop exit
PB: predicated region body
PF: predicated region fallthrough
CT: control target
= control target key end

     0   :  { %17 = vsyncpa [#allocation4], 0  ;;  %s6493_s0 = inlined_call_operand.hbm [shape: f32[16,768], index: 0, kind: input, shape index: {}]   ;;  %s6494_s1 = inlined_call_operand.hbm [shape: f32[768,128], index: 1, kind: input, shape index: {}]   ;;  %s6495_s2 = inlined_call_operand.hbm [shape: f32[32,128], index: 2, kind: input, shape index: {}]   ;;  %s6496_s3 = inlined_call_operand.vmem [shape: f32[1,128], index: 3, kind: input, shape index: {}]   ;;  %s6497_s4 = inlined_call_operand.hbm [shape: f32[32,128], index: 4, kind: input, shape index: {}]   ;;  %s6498_s5 = inlined_call_operand.hbm [shape: f32[32,128], index: 5, kind: input, shape index: {}]   ;;  %s6499_s6 = inlined_call_operand.vmem [shape: f32[1,128], index: 6, kind: input, shape index: {}]   ;;  %s6500_s7 = inlined_call_operand.hbm [shape: f32[32,128], index: 7, kind: input, shape index: {}]   ;;  %s6501_s8 = inlined_call_operand.hbm [shape: f32[32,128], index: 8, kind: input, shape index: {}]   ;;  %s6502_s9 = inlined_call_operand.vmem [shape: f32[1,128], index: 9, kind: input, shape index: {}]   ;;  %s6503_s10 = inlined_call_operand.vmem [shape: f32[32,128], index: 10, kind: input, shape index: {}]   ;;  %s6504_s11 = inlined_call_operand.vmem [shape: f32[1,128], index: 11, kind: input, shape index: {}]   ;;  %s6505_s12 = inlined_call_operand.hbm [shape: f32[16,128], index: 12, kind: output, shape index: {}]  }
   0x1   :  { %18 = vsyncpa [#allocation7], 0 }
   0x2   :  { %19 = vsyncpa [#allocation10], 0 }
   0x3   :  { %20 = vsyncpa [#allocation13], 0 }
   0x4   :  { %21 = vsyncpa [#allocation5], 0  ;;  %s5651_s21 = smov [#allocation6]   ;;  %s5465_s25 = scalar_lea.hbm %s6494_s1, 12288 }
   0x5   :  { %s39_s22 = sshll.u32 %s5651_s21, 4  ;;  %p5466_p0 = scmp.ne.s32.totalorder %s6494_s1, %s5465_s25  ;;  %s40_s22 = int_to_ptr.vmem [resolvable:$true] %s39_s22 }
   0x6   :  { %p5469_p1 = scmp.lt.u32.totalorder %s5465_s25, %s6494_s1 }
   0x8   :  { %p5471_p2 = pnand %p5469_p1, %p5466_p0 }
   0xa   :  { %5474 = shalt.err (!%p5471_p2)
}
   0xb   :  { %s5475_s30 = scalar_lea.vmem %s40_s22, 12288  ;;  %p5480_p4 = scmp.lt.s32.totalorder %s40_s22, %s40_s22 }
   0xc   :  { %p5476_p3 = scmp.ne.s32.totalorder %s40_s22, %s5475_s30  ;;  %p5481_p5 = scmp.lt.s32.totalorder %s5475_s30, %s5475_s30 }
   0xe   :  { %p5482_p6 = por %p5481_p5, %p5480_p4 }
  0x10   :  { %p5483_p7 = pnand %p5482_p6, %p5476_p3 }
  0x12   :  { %5486 = shalt.err (!%p5483_p7)
}
  0x13   :  { %s5652_s13 = smov 128   ;;  %s5653_s14 = smov 8  }
  0x14   :  { %45 = dma.hbm_to_vmem [thread:$0]  %s6494_s1, 12288, %s40_s22, [#allocation7], %s5652_s13, %s5652_s13, %s5653_s14  }
  0x15   :  { %s5654_s17 = smov [#allocation9]   ;;  %s5655_s19 = smov [#allocation12]  }
  0x16   :  { %s65_s18 = sshll.u32 %s5654_s17, 4  ;;  %s91_s20 = sshll.u32 %s5655_s19, 4  ;;  %s66_s18 = int_to_ptr.vmem [resolvable:$true] %s65_s18  ;;  %s92_s20 = int_to_ptr.vmem [resolvable:$true] %s91_s20 }
  0x17   :  { %s5487_s24 = scalar_lea.hbm %s6497_s4, 512 }
  0x18   :  { %p5488_p8 = scmp.ne.s32.totalorder %s6497_s4, %s5487_s24  ;;  %p5491_p9 = scmp.lt.u32.totalorder %s5487_s24, %s6497_s4 }
  0x1a   :  { %p5493_p10 = pnand %p5491_p9, %p5488_p8 }
  0x1c   :  { %5496 = shalt.err (!%p5493_p10)
}
  0x1d   :  { %s5497_s1 = scalar_lea.vmem %s66_s18, 512  ;;  %p5502_p12 = scmp.lt.s32.totalorder %s66_s18, %s66_s18 }
  0x1e   :  { %p5498_p11 = scmp.ne.s32.totalorder %s66_s18, %s5497_s1  ;;  %p5503_p13 = scmp.lt.s32.totalorder %s5497_s1, %s5497_s1 }
  0x20   :  { %p5504_p0 = por %p5503_p13, %p5502_p12 }
  0x22   :  { %p5505_p1 = pnand %p5504_p0, %p5498_p11 }
  0x24   :  { %5508 = shalt.err (!%p5505_p1)
}
  0x25   :  { %71 = dma.hbm_to_vmem [thread:$0]  %s6497_s4, 512, %s66_s18, [#allocation10], %s5652_s13, %s5652_s13, %s5653_s14  }
  0x26   :  { %s5509_s16 = scalar_lea.hbm %s6500_s7, 512 }
  0x27   :  { %p5510_p2 = scmp.ne.s32.totalorder %s6500_s7, %s5509_s16  ;;  %p5513_p3 = scmp.lt.u32.totalorder %s5509_s16, %s6500_s7 }
  0x29   :  { %p5515_p4 = pnand %p5513_p3, %p5510_p2 }
  0x2b   :  { %5518 = shalt.err (!%p5515_p4)
}
  0x2c   :  { %s5519_s24 = scalar_lea.vmem %s92_s20, 512  ;;  %p5524_p6 = scmp.lt.s32.totalorder %s92_s20, %s92_s20 }
  0x2d   :  { %p5520_p5 = scmp.ne.s32.totalorder %s92_s20, %s5519_s24  ;;  %p5525_p7 = scmp.lt.s32.totalorder %s5519_s24, %s5519_s24 }
  0x2f   :  { %p5526_p8 = por %p5525_p7, %p5524_p6 }
  0x31   :  { %p5527_p9 = pnand %p5526_p8, %p5520_p5 }
  0x33   :  { %5530 = shalt.err (!%p5527_p9)
}
  0x34   :  { %97 = dma.hbm_to_vmem [thread:$0]  %s6500_s7, 512, %s92_s20, [#allocation13], %s5652_s13, %s5652_s13, %s5653_s14  }
  0x35   :  { %s5656_s25 = smov [#allocation3]   ;;  %s5531_s1 = scalar_lea.hbm %s6493_s0, 1536 }
  0x36   :  { %s27_s26 = sshll.u32 %s5656_s25, 4  ;;  %p5532_p10 = scmp.ne.s32.totalorder %s6493_s0, %s5531_s1  ;;  %s28_s26 = int_to_ptr.vmem [resolvable:$true] %s27_s26 }
  0x37   :  { %p5535_p11 = scmp.lt.u32.totalorder %s5531_s1, %s6493_s0 }
  0x39   :  { %p5537_p12 = pnand %p5535_p11, %p5532_p10 }
  0x3b   :  { %5540 = shalt.err (!%p5537_p12)
}
  0x3c   :  { %s5541_s16 = scalar_lea.vmem %s28_s26, 1536  ;;  %p5546_p0 = scmp.lt.s32.totalorder %s28_s26, %s28_s26 }
  0x3d   :  { %p5542_p13 = scmp.ne.s32.totalorder %s28_s26, %s5541_s16  ;;  %p5547_p1 = scmp.lt.s32.totalorder %s5541_s16, %s5541_s16 }
  0x3f   :  { %p5548_p2 = por %p5547_p1, %p5546_p0 }
  0x41   :  { %p5549_p3 = pnand %p5548_p2, %p5542_p13 }
  0x43   :  { %5552 = shalt.err (!%p5549_p3)
}
  0x44   :  { %s5657_s7 = smov 768   ;;  %s5658_s20 = smov 48  }
  0x45   :  { %33 = dma.hbm_to_vmem [thread:$0]  %s6493_s0, 1536, %s28_s26, [#allocation4], %s5657_s7, %s5657_s7, %s5658_s20  }
  0x46   :  { %s5659_s21 = smov [#allocation8]   ;;  %s5660_s24 = smov [#allocation11]  }
  0x47   :  { %s51_s23 = sshll.u32 %s5659_s21, 4  ;;  %s77_s4 = sshll.u32 %s5660_s24, 4  ;;  %s52_s23 = int_to_ptr.vmem [resolvable:$true] %s51_s23  ;;  %s5791_s4 = int_to_ptr.vmem [resolvable:$true] %s77_s4 }
  0x48   :  { %s5553_s27 = scalar_lea.hbm %s6495_s2, 512 }
  0x49   :  { %p5554_p4 = scmp.ne.s32.totalorder %s6495_s2, %s5553_s27  ;;  %p5557_p5 = scmp.lt.u32.totalorder %s5553_s27, %s6495_s2 }
  0x4b   :  { %p5559_p6 = pnand %p5557_p5, %p5554_p4 }
  0x4d   :  { %5562 = shalt.err (!%p5559_p6)
}
  0x4e   :  { %s5563_s0 = scalar_lea.vmem %s52_s23, 512  ;;  %p5568_p8 = scmp.lt.s32.totalorder %s52_s23, %s52_s23 }
  0x4f   :  { %p5564_p7 = scmp.ne.s32.totalorder %s52_s23, %s5563_s0  ;;  %p5569_p9 = scmp.lt.s32.totalorder %s5563_s0, %s5563_s0 }
  0x51   :  { %p5570_p10 = por %p5569_p9, %p5568_p8 }
  0x53   :  { %p5571_p11 = pnand %p5570_p10, %p5564_p7 }
  0x55   :  { %5574 = shalt.err (!%p5571_p11)
}
  0x56   :  { %57 = dma.hbm_to_vmem [thread:$0]  %s6495_s2, 512, %s52_s23, [#allocation7], %s5652_s13, %s5652_s13, %s5653_s14  }
  0x57   :  { %s5575_s7 = scalar_lea.hbm %s6498_s5, 512 }
  0x58   :  { %p5576_p12 = scmp.ne.s32.totalorder %s6498_s5, %s5575_s7  ;;  %p5579_p13 = scmp.lt.u32.totalorder %s5575_s7, %s6498_s5 }
  0x5a   :  { %p5581_p0 = pnand %p5579_p13, %p5576_p12 }
  0x5c   :  { %5584 = shalt.err (!%p5581_p0)
}
  0x5d   :  { %s5585_s24 = scalar_lea.vmem %s5791_s4, 512  ;;  %p5590_p2 = scmp.lt.s32.totalorder %s5791_s4, %s5791_s4 }
  0x5e   :  { %p5586_p1 = scmp.ne.s32.totalorder %s5791_s4, %s5585_s24  ;;  %p5591_p3 = scmp.lt.s32.totalorder %s5585_s24, %s5585_s24 }
  0x60   :  { %p5592_p4 = por %p5591_p3, %p5590_p2 }
  0x62   :  { %p5593_p5 = pnand %p5592_p4, %p5586_p1 }
  0x64   :  { %5596 = shalt.err (!%p5593_p5)
}
  0x65   :  { %83 = dma.hbm_to_vmem [thread:$0]  %s6498_s5, 512, %s5791_s4, [#allocation10], %s5652_s13, %s5652_s13, %s5653_s14  }
  0x66   :  { %s5661_s18 = smov [#allocation14]   ;;  %s5597_s1 = scalar_lea.hbm %s6501_s8, 512 }
  0x67   :  { %s103_s25 = sshll.u32 %s5661_s18, 4  ;;  %p5598_p6 = scmp.ne.s32.totalorder %s6501_s8, %s5597_s1  ;;  %s104_s25 = int_to_ptr.vmem [resolvable:$true] %s103_s25 }
  0x68   :  { %p5601_p7 = scmp.lt.u32.totalorder %s5597_s1, %s6501_s8 }
  0x6a   :  { %p5603_p8 = pnand %p5601_p7, %p5598_p6 }
  0x6c   :  { %5606 = shalt.err (!%p5603_p8)
}
  0x6d   :  { %s5607_s30 = scalar_lea.vmem %s104_s25, 512  ;;  %p5612_p10 = scmp.lt.s32.totalorder %s104_s25, %s104_s25 }
  0x6e   :  { %p5608_p9 = scmp.ne.s32.totalorder %s104_s25, %s5607_s30  ;;  %p5613_p11 = scmp.lt.s32.totalorder %s5607_s30, %s5607_s30 }
  0x70   :  { %p5614_p12 = por %p5613_p11, %p5612_p10 }
  0x72   :  { %p5615_p13 = pnand %p5614_p12, %p5608_p9 }
  0x74   :  { %5618 = shalt.err (!%p5615_p13)
}
  0x75   :  { %109 = dma.hbm_to_vmem [thread:$0]  %s6501_s8, 512, %s104_s25, [#allocation13], %s5652_s13, %s5652_s13, %s5653_s14  }
  0x76   :  { %5641 = dma.done.wait [#allocation4], 1536  }
  0x77   :  { %5642 = vsyncadd [#allocation4], 4294965760 }
  0x78   :  { %5643 = dma.done.wait [#allocation7], 12800  }
  0x79   :  { %5644 = vsyncadd [#allocation7], 4294954496 }
  0x7a   :  { %5645 = dma.done.wait [#allocation10], 1024  }
  0x7b   :  { %5646 = vsyncadd [#allocation10], 4294966272 }
  0x7c   :  { %5647 = dma.done.wait [#allocation13], 1024  }
  0x7d   :  { %5648 = vsyncadd [#allocation13], 4294966272  ;;  %v165_v0 = vld [vmem:[#allocation6 + $0x80] sm:$0xff]  ;;  %v166_v1 = vld [vmem:[#allocation6 + $0x88] sm:$0xff]  ;;  %vm5663_vm0 = vmmov 0   ;;  %s5667_s16 = smov 32  }
  0x7e   :  { %v149_v2 = vld [vmem:[#allocation6] sm:$0xff]  ;;  %v4997_v3 = vpack.c.bf16 %v166_v1, %v165_v0  ;;  %v150_v4 = vld [vmem:[#allocation6 + $0x8] sm:$0xff]  ;;  %v167_v11 = vld [vmem:[#allocation6 + $0x90] sm:$0xff]  ;;  %vm517_vm4 = vcmask 261120   ;;  %vm954_vm5 = vcmask 254976  }
  0x7f   :  { %v197_v5 = vld [vmem:[#allocation6 + $0x180] sm:$0xff]  ;;  %v198_v6 = vld [vmem:[#allocation6 + $0x188] sm:$0xff]  ;;  %v4999_v7 = vpack.c.bf16 %v150_v4, %v149_v2  ;;  %v168_v13 = vld [vmem:[#allocation6 + $0x98] sm:$0xff] }
  0x80   :  { %v5029_v8 = vpack.c.bf16 %v198_v6, %v197_v5  ;;  %v181_v9 = vld [vmem:[#allocation6 + $0x100] sm:$0xff]  ;;  %v182_v10 = vld [vmem:[#allocation6 + $0x108] sm:$0xff]  ;;  %4998 = vmatprep.subr.bf16.mxu0 %v4997_v3  ;;  %v151_v14 = vld [vmem:[#allocation6 + $0x10] sm:$0xff]  ;;  %v5001_v16 = vpack.c.bf16 %v168_v13, %v167_v11 }
  0x81   :  { %v5031_v12 = vpack.c.bf16 %v182_v10, %v181_v9  ;;  %v152_v15 = vld [vmem:[#allocation6 + $0x18] sm:$0xff]  ;;  %5000 = vmatpush3.bf16.msra.mxu0 %v4999_v7  ;;  %v199_v18 = vld [vmem:[#allocation6 + $0x190] sm:$0xff]  ;;  %v169_v23 = vld [vmem:[#allocation6 + $0xa0] sm:$0xff] }
  0x82   :  { %5030 = vmatprep.subr.bf16.mxu1 %v5029_v8  ;;  %v5003_v17 = vpack.c.bf16 %v152_v15, %v151_v14  ;;  %v200_v19 = vld [vmem:[#allocation6 + $0x198] sm:$0xff]  ;;  %v183_v20 = vld [vmem:[#allocation6 + $0x110] sm:$0xff]  ;;  %v170_v24 = vld [vmem:[#allocation6 + $0xa8] sm:$0xff]  ;;  %5002 = vmatprep.subr.bf16.mxu0 %v5001_v16 }
  0x83   :  { %5032 = vmatpush3.bf16.msra.mxu1 %v5031_v12  ;;  %v5033_v21 = vpack.c.bf16 %v200_v19, %v199_v18  ;;  %v184_v22 = vld [vmem:[#allocation6 + $0x118] sm:$0xff]  ;;  %v5005_v26 = vpack.c.bf16 %v170_v24, %v169_v23  ;;  %v153_v27 = vld [vmem:[#allocation6 + $0x20] sm:$0xff]  ;;  %v154_v28 = vld [vmem:[#allocation6 + $0x28] sm:$0xff] }
  0x84   :  { %v5035_v25 = vpack.c.bf16 %v184_v22, %v183_v20  ;;  %v201_v29 = vld [vmem:[#allocation6 + $0x1a0] sm:$0xff]  ;;  %v202_v30 = vld [vmem:[#allocation6 + $0x1a8] sm:$0xff]  ;;  %v5007_v33 = vpack.c.bf16 %v154_v28, %v153_v27  ;;  %v171_v35 = vld [vmem:[#allocation6 + $0xb0] sm:$0xff] }
  0x85   :  { %5034 = vmatprep.subr.bf16.mxu1 %v5033_v21  ;;  %v185_v31 = vld [vmem:[#allocation6 + $0x120] sm:$0xff]  ;;  %v186_v32 = vld [vmem:[#allocation6 + $0x128] sm:$0xff]  ;;  %5004 = vmatpush3.bf16.msra.mxu0 %v5003_v17  ;;  %v5037_v34 = vpack.c.bf16 %v202_v30, %v201_v29  ;;  %v172_v36 = vld [vmem:[#allocation6 + $0xb8] sm:$0xff] }
  0x86   :  { %v155_v37 = vld [vmem:[#allocation6 + $0x30] sm:$0xff]  ;;  %5006 = vmatprep.subr.bf16.mxu0 %v5005_v26  ;;  %v5039_v38 = vpack.c.bf16 %v186_v32, %v185_v31  ;;  %v5009_v39 = vpack.c.bf16 %v172_v36, %v171_v35  ;;  %v156_v40 = vld [vmem:[#allocation6 + $0x38] sm:$0xff]  ;;  %v173_v46 = vld [vmem:[#allocation6 + $0xc0] sm:$0xff] }
  0x87   :  { %5036 = vmatpush3.bf16.msra.mxu1 %v5035_v25  ;;  %v203_v41 = vld [vmem:[#allocation6 + $0x1b0] sm:$0xff]  ;;  %v204_v42 = vld [vmem:[#allocation6 + $0x1b8] sm:$0xff]  ;;  %v174_v47 = vld [vmem:[#allocation6 + $0xc8] sm:$0xff]  ;;  %v5011_v48 = vpack.c.bf16 %v156_v40, %v155_v37 }
  0x88   :  { %5038 = vmatprep.subr.bf16.mxu1 %v5037_v34  ;;  %v5041_v43 = vpack.c.bf16 %v204_v42, %v203_v41  ;;  %v187_v44 = vld [vmem:[#allocation6 + $0x130] sm:$0xff]  ;;  %v188_v45 = vld [vmem:[#allocation6 + $0x138] sm:$0xff]  ;;  %v205_v49 = vld [vmem:[#allocation6 + $0x1c0] sm:$0xff]  ;;  %v5013_v52 = vpack.c.bf16 %v174_v47, %v173_v46 }
  0x89   :  { %5008 = vmatpush3.bf16.msra.mxu0 %v5007_v33  ;;  %v206_v50 = vld [vmem:[#allocation6 + $0x1c8] sm:$0xff]  ;;  %v5043_v51 = vpack.c.bf16 %v188_v45, %v187_v44  ;;  %v157_v53 = vld [vmem:[#allocation6 + $0x40] sm:$0xff]  ;;  %v175_v58 = vld [vmem:[#allocation6 + $0xd0] sm:$0xff] }
  0x8a   :  { %5010 = vmatprep.subr.bf16.mxu0 %v5009_v39  ;;  %v158_v54 = vld [vmem:[#allocation6 + $0x48] sm:$0xff]  ;;  %v189_v55 = vld [vmem:[#allocation6 + $0x140] sm:$0xff]  ;;  %v5045_v56 = vpack.c.bf16 %v206_v50, %v205_v49  ;;  %v176_v59 = vld [vmem:[#allocation6 + $0xd8] sm:$0xff]  ;;  %v5662_v50 = vmov 0.0|0.0  }
  0x8b   :  { %5040 = vmatpush3.bf16.msra.mxu1 %v5039_v38  ;;  %v190_v57 = vld [vmem:[#allocation6 + $0x148] sm:$0xff]  ;;  %v207_v60 = vld [vmem:[#allocation6 + $0x1d0] sm:$0xff]  ;;  %v208_v61 = vld [vmem:[#allocation6 + $0x1d8] sm:$0xff]  ;;  %v5015_v62 = vpack.c.bf16 %v158_v54, %v157_v53  ;;  %v5017_v0 = vpack.c.bf16 %v176_v59, %v175_v58 }
  0x8c   :  { %5042 = vmatprep.subr.bf16.mxu1 %v5041_v43  ;;  %v5047_v63 = vpack.c.bf16 %v190_v57, %v189_v55  ;;  %v159_v1 = vld [vmem:[#allocation6 + $0x50] sm:$0xff]  ;;  %v160_v2 = vld [vmem:[#allocation6 + $0x58] sm:$0xff]  ;;  %v5049_v4 = vpack.c.bf16 %v208_v61, %v207_v60  ;;  %v177_v6 = vld [vmem:[#allocation6 + $0xe0] sm:$0xff] }
  0x8d   :  { %5012 = vmatpush3.bf16.msra.mxu0 %v5011_v48  ;;  %v191_v3 = vld [vmem:[#allocation6 + $0x150] sm:$0xff]  ;;  %v192_v5 = vld [vmem:[#allocation6 + $0x158] sm:$0xff]  ;;  %v178_v7 = vld [vmem:[#allocation6 + $0xe8] sm:$0xff]  ;;  %v5019_v10 = vpack.c.bf16 %v160_v2, %v159_v1 }
  0x8e   :  { %5014 = vmatprep.subr.bf16.mxu0 %v5013_v52  ;;  %v209_v8 = vld [vmem:[#allocation6 + $0x1e0] sm:$0xff]  ;;  %v210_v9 = vld [vmem:[#allocation6 + $0x1e8] sm:$0xff]  ;;  %v5051_v13 = vpack.c.bf16 %v192_v5, %v191_v3  ;;  %v5021_v14 = vpack.c.bf16 %v178_v7, %v177_v6  ;;  %v179_v19 = vld [vmem:[#allocation6 + $0xf0] sm:$0xff] }
  0x8f   :  { %5044 = vmatpush3.bf16.msra.mxu1 %v5043_v51  ;;  %v161_v11 = vld [vmem:[#allocation6 + $0x60] sm:$0xff]  ;;  %v138_v12 = vld [vmem:[#allocation3 + $0x8] sm:$0xff]  ;;  %v5053_v18 = vpack.c.bf16 %v210_v9, %v209_v8  ;;  %v180_v20 = vld [vmem:[#allocation6 + $0xf8] sm:$0xff]  ;;  %v5664_v9 = vmov 0.0  }
  0x90   :  { %5046 = vmatprep.subr.bf16.mxu1 %v5045_v56  ;;  %v162_v15 = vld [vmem:[#allocation6 + $0x68] sm:$0xff]  ;;  %v193_v16 = vld [vmem:[#allocation6 + $0x160] sm:$0xff]  ;;  %316 = vmatprep.mubr.f32.mxu0 %v138_v12  ;;  %v140_v21 = vld [vmem:[#allocation3 + $0x18] sm:$0xff]  ;;  %v5025_v26 = vpack.c.bf16 %v180_v20, %v179_v19 }
  0x91   :  { %5016 = vmatpush3.bf16.msra.mxu0 %v5015_v62  ;;  %v194_v17 = vld [vmem:[#allocation6 + $0x168] sm:$0xff]  ;;  %v211_v22 = vld [vmem:[#allocation6 + $0x1f0] sm:$0xff]  ;;  %v212_v23 = vld [vmem:[#allocation6 + $0x1f8] sm:$0xff]  ;;  %391 = vmatprep.mubr.f32.mxu1 %v140_v21  ;;  %v5023_v24 = vpack.c.bf16 %v162_v15, %v161_v11 }
  0x92   :  { %5018 = vmatprep.subr.bf16.mxu0 %v5017_v0  ;;  %v5055_v25 = vpack.c.bf16 %v194_v17, %v193_v16  ;;  %v163_v27 = vld [vmem:[#allocation6 + $0x70] sm:$0xff]  ;;  %v164_v28 = vld [vmem:[#allocation6 + $0x78] sm:$0xff]  ;;  %v5057_v30 = vpack.c.bf16 %v212_v23, %v211_v22  ;;  %v229_v32 = vld [vmem:[#allocation6 + $0x280] sm:$0xff] }
  0x93   :  { %5048 = vmatpush3.bf16.msra.mxu1 %v5047_v63  ;;  %v195_v29 = vld [vmem:[#allocation6 + $0x170] sm:$0xff]  ;;  %v196_v31 = vld [vmem:[#allocation6 + $0x178] sm:$0xff]  ;;  %v230_v33 = vld [vmem:[#allocation6 + $0x288] sm:$0xff]  ;;  %v5027_v34 = vpack.c.bf16 %v164_v28, %v163_v27 }
  0x94   :  { %5050 = vmatprep.subr.bf16.mxu1 %v5049_v4  ;;  %v5059_v35 = vpack.c.bf16 %v196_v31, %v195_v29  ;;  %v5061_v36 = vpack.c.bf16 %v230_v33, %v229_v32  ;;  %v213_v37 = vld [vmem:[#allocation6 + $0x200] sm:$0xff]  ;;  %v214_v38 = vld [vmem:[#allocation6 + $0x208] sm:$0xff]  ;;  %v231_v39 = vld [vmem:[#allocation6 + $0x290] sm:$0xff] }
  0x95   :  { %5020 = vmatpush3.bf16.msra.mxu0 %v5019_v10  ;;  %v232_v40 = vld [vmem:[#allocation6 + $0x298] sm:$0xff]  ;;  %v137_v41 = vld [vmem:[#allocation3] sm:$0xff]  ;;  %v5063_v42 = vpack.c.bf16 %v214_v38, %v213_v37  ;;  %v139_v43 = vld [vmem:[#allocation3 + $0x10] sm:$0xff] }
  0x96   :  { %5022 = vmatprep.subr.bf16.mxu0 %v5021_v14  ;;  %v5065_v44 = vpack.c.bf16 %v232_v40, %v231_v39  ;;  %v215_v45 = vld [vmem:[#allocation6 + $0x210] sm:$0xff]  ;;  %v216_v46 = vld [vmem:[#allocation6 + $0x218] sm:$0xff]  ;;  %v233_v47 = vld [vmem:[#allocation6 + $0x2a0] sm:$0xff] }
  0x97   :  { %5052 = vmatpush3.bf16.msra.mxu1 %v5051_v13  ;;  %v234_v48 = vld [vmem:[#allocation6 + $0x2a8] sm:$0xff]  ;;  %v144_v49 = vld [vmem:[#allocation3 + $0x38] sm:$0xff]  ;;  %v477_v51 = vld [vmem:[#allocation8] sm:$0xff]  ;;  %v5067_v54 = vpack.c.bf16 %v216_v46, %v215_v45 }
  0x98   :  { %5054 = vmatprep.subr.bf16.mxu1 %v5053_v18  ;;  %v146_v52 = vld [vmem:[#allocation3 + $0x48] sm:$0xff]  ;;  %v143_v55 = vld [vmem:[#allocation3 + $0x30] sm:$0xff]  ;;  %v480_v58 = vld [vmem:[#allocation8 + $0x18] sm:$0xff]  ;;  %v5069_v59 = vpack.c.bf16 %v234_v48, %v233_v47 }
  0x99   :  { %5024 = vmatpush3.bf16.msra.mxu0 %v5023_v24  ;;  %v478_v53 = vld [vmem:[#allocation8 + $0x8] sm:$0xff]  ;;  %v479_v57 = vld [vmem:[#allocation8 + $0x10] sm:$0xff]  ;;  %v217_v60 = vld [vmem:[#allocation6 + $0x220] sm:$0xff] }
  0x9a   :  { %5026 = vmatprep.subr.bf16.mxu0 %v5025_v26  ;;  %v5844_v56 = vpack.c.bf16 %v478_v53, %v477_v51  ;;  %v218_v61 = vld [vmem:[#allocation6 + $0x228] sm:$0xff]  ;;  %v145_v62 = vld [vmem:[#allocation3 + $0x40] sm:$0xff]  ;;  %v235_v63 = vld [vmem:[#allocation6 + $0x2b0] sm:$0xff]  ;;  %v5847_v2 = vpack.c.bf16 %v480_v58, %v479_v57  ;;  %v511_v57 = vlaneseq }
  0x9b   :  { %5056 = vmatpush3.bf16.msra.mxu1 %v5055_v25  ;;  %v236_v0 = vld [vmem:[#allocation6 + $0x2b8] sm:$0xff]  ;;  %v142_v1 = vld [vmem:[#allocation3 + $0x28] sm:$0xff]  ;;  %v5071_v3 = vpack.c.bf16 %v218_v61, %v217_v60  ;;  %v219_v5 = vld [vmem:[#allocation6 + $0x230] sm:$0xff] }
  0x9c   :  { %5058 = vmatprep.subr.bf16.mxu1 %v5057_v30  ;;  %v5073_v4 = vpack.c.bf16 %v236_v0, %v235_v63  ;;  %v220_v6 = vld [vmem:[#allocation6 + $0x238] sm:$0xff]  ;;  %v237_v7 = vld [vmem:[#allocation6 + $0x2c0] sm:$0xff]  ;;  %v238_v8 = vld [vmem:[#allocation6 + $0x2c8] sm:$0xff]  ;;  %v512_v58 = vand.u32 127, %v511_v57 }
  0x9d   :  { %5028 = vmatpush3.bf16.msra.mxu0 %v5027_v34  ;;  %v5075_v10 = vpack.c.bf16 %v220_v6, %v219_v5  ;;  %v5077_v11 = vpack.c.bf16 %v238_v8, %v237_v7  ;;  %v221_v12 = vld [vmem:[#allocation6 + $0x240] sm:$0xff]  ;;  %v222_v13 = vld [vmem:[#allocation6 + $0x248] sm:$0xff]  ;;  %v239_v14 = vld [vmem:[#allocation6 + $0x2d0] sm:$0xff] }
  0x9e   :  { %5062 = vmatprep.subr.bf16.mxu0 %v5061_v36  ;;  %v240_v15 = vld [vmem:[#allocation6 + $0x2d8] sm:$0xff]  ;;  %v5079_v16 = vpack.c.bf16 %v222_v13, %v221_v12  ;;  %v223_v18 = vld [vmem:[#allocation6 + $0x250] sm:$0xff]  ;;  %v241_v20 = vld [vmem:[#allocation6 + $0x2e0] sm:$0xff]  ;;  %vm513_vm1 = vcmp.ge.s32.totalorder %v512_v58, 64  ;;  %vm514_vm2 = vcmp.lt.s32.totalorder %v512_v58, 96 }
  0x9f   :  { %5060 = vmatpush3.bf16.msra.mxu1 %v5059_v35  ;;  %v5081_v17 = vpack.c.bf16 %v240_v15, %v239_v14  ;;  %v224_v19 = vld [vmem:[#allocation6 + $0x258] sm:$0xff]  ;;  %v242_v21 = vld [vmem:[#allocation6 + $0x2e8] sm:$0xff]  ;;  %v225_v24 = vld [vmem:[#allocation6 + $0x260] sm:$0xff] }
  0xa0   :  { %5093 = vmatprep.subr.bf16.mxu1 %v5662_v50  ;;  %317 = vmatmul.mubr.f32.vlgmr.msra.gmra.mrb[0].mxu0 %v137_v41  ;;  %v5083_v22 = vpack.c.bf16 %v224_v19, %v223_v18  ;;  %v5085_v23 = vpack.c.bf16 %v242_v21, %v241_v20  ;;  %v226_v25 = vld [vmem:[#allocation6 + $0x268] sm:$0xff]  ;;  %v243_v26 = vld [vmem:[#allocation6 + $0x2f0] sm:$0xff]  ;;  %v244_v27 = vld [vmem:[#allocation6 + $0x2f8] sm:$0xff] }
  0xa1   :  { %5064 = vmatpush3.bf16.msra.mxu0 %v5063_v42  ;;  %321 = vmatprep.mubr.f32.mxu0 %v144_v49  ;;  %v5087_v28 = vpack.c.bf16 %v226_v25, %v225_v24  ;;  %v5089_v29 = vpack.c.bf16 %v244_v27, %v243_v26  ;;  %v227_v30 = vld [vmem:[#allocation6 + $0x270] sm:$0xff]  ;;  %v228_v31 = vld [vmem:[#allocation6 + $0x278] sm:$0xff]  ;;  %v141_v33 = vld [vmem:[#allocation3 + $0x20] sm:$0xff] }
  0xa2   :  { %392 = vmatmul.mubr.f32.vlgmr.msra.gmra.mrb[0].mxu1 %v139_v43  ;;  %5066 = vmatprep.subr.bf16.mxu0 %v5065_v44  ;;  %v5091_v32 = vpack.c.bf16 %v228_v31, %v227_v30  ;;  %v148_v34 = vld [vmem:[#allocation3 + $0x58] sm:$0xff]  ;;  %v147_v35 = vld [vmem:[#allocation3 + $0x50] sm:$0xff]  ;;  %vm5863_vm3 = vmand %vm513_vm1, %vm514_vm2 }
  0xa3   :  { %396 = vmatprep.mubr.f32.mxu1 %v146_v52  ;;  %5095 = vmatpush3.bf16.msra.mxu1 %v5844_v56  ;;  %v4181_v37 = vld [vmem:[%s6496_s3] ss:$0 sm:$0xff]  ;;  %s5666_s3 = smov 64   ;;  %v485_v19 = vld [vmem:[#allocation11] sm:$0xff]  ;;  %v486_v20 = vld [vmem:[#allocation11 + $0x8] sm:$0xff] }
  0xa4   :  { %322 = vmatmul.mubr.f32.gmra.mrb[2].mxu0 %v143_v55  ;;  %5096 = vmatprep.subr.bf16.mxu1 %v5662_v50  ;;  %v487_v21 = vld [vmem:[#allocation11 + $0x10] sm:$0xff]  ;;  %v493_v25 = vld [vmem:[#allocation14] sm:$0xff]  ;;  %v494_v26 = vld [vmem:[#allocation14 + $0x8] sm:$0xff] }
  0xa5   :  { %5068 = vmatpush3.bf16.msra.mxu0 %v5067_v54  ;;  %466 = vmatprep.mubr.f32.mxu0 %v142_v1  ;;  %v5665_v1 = vmov 0.5   ;;  %v5891_v27 = vpack.c.bf16 %v494_v26, %v493_v25  ;;  %v491_v25 = vld [vmem:[#allocation12 + $0x10] sm:$0xff] }
  0xa6   :  { %397 = vmatmul.mubr.f32.gmra.mrb[2].mxu1 %v145_v62  ;;  %5070 = vmatprep.subr.bf16.mxu0 %v5069_v59  ;;  %v4056_v62 = vld [vmem:[%s6503_s10 + $0x8] sm:$0xff] }
  0xa7   :  { %5098 = vmatpush3.bf16.msra.mxu1 %v5847_v2  ;;  %4554 = vmatprep.mubr.msk.f32.mxu1 %vm5663_vm0, %v5664_v9 }
  0xa8   :  { %5099 = vmatprep.subr.bf16.mxu1 %v5662_v50 }
  0xa9   :  { %5072 = vmatpush3.bf16.msra.mxu0 %v5071_v3  ;;  %v5871_v3 = vsel %vm5863_vm3, 1.0, %v5665_v1 }
  0xaa   :  { %5074 = vmatprep.subr.bf16.mxu0 %v5073_v4  ;;  %4555 = vmatmul.mubr.f32.vlgmr.msra.gmra.mrb[4].mxu1 %v5664_v9 }
  0xab   :  { %4565 = vmatprep.mubr.msk.f32.mxu1 %vm5663_vm0, %v5664_v9 }
  0xad   :  { %5076 = vmatpush3.bf16.msra.mxu0 %v5075_v10 }
  0xae   :  { %5078 = vmatprep.subr.bf16.mxu0 %v5077_v11 }
  0xb1   :  { %5080 = vmatpush3.bf16.msra.mxu0 %v5079_v16 }
  0xb2   :  { %5082 = vmatprep.subr.bf16.mxu0 %v5081_v17 }
  0xb5   :  { %5084 = vmatpush3.bf16.msra.mxu0 %v5083_v22  ;;  %v5884_v22 = vpack.c.bf16 %v486_v20, %v485_v19 }
  0xb6   :  { %5086 = vmatprep.subr.bf16.mxu0 %v5085_v23  ;;  %v488_v23 = vld [vmem:[#allocation11 + $0x18] sm:$0xff] }
  0xb7   :  { %5101 = vmatpush3.bf16.msra.mxu1 %v5884_v22  ;;  %v5887_v24 = vpack.c.bf16 %v488_v23, %v487_v21  ;;  %v489_v21 = vld [vmem:[#allocation12] sm:$0xff]  ;;  %v490_v23 = vld [vmem:[#allocation12 + $0x8] sm:$0xff] }
  0xb8   :  { %5102 = vmatprep.subr.bf16.mxu1 %v5662_v50  ;;  %v5957_v26 = vpack.c.bf16 %v490_v23, %v489_v21 }
  0xb9   :  { %5088 = vmatpush3.bf16.msra.mxu0 %v5087_v28  ;;  %v495_v28 = vld [vmem:[#allocation14 + $0x10] sm:$0xff] }
  0xba   :  { %5090 = vmatprep.subr.bf16.mxu0 %v5089_v29  ;;  %v496_v29 = vld [vmem:[#allocation14 + $0x18] sm:$0xff] }
  0xbb   :  { %5104 = vmatpush3.bf16.msra.mxu1 %v5887_v24  ;;  %v5897_v31 = vpack.c.bf16 %v496_v29, %v495_v28  ;;  %v492_v28 = vld [vmem:[#allocation12 + $0x18] sm:$0xff] }
  0xbc   :  { %5105 = vmatprep.subr.bf16.mxu1 %v5662_v50  ;;  %v5960_v29 = vpack.c.bf16 %v492_v28, %v491_v25 }
  0xbd   :  { %5092 = vmatpush3.bf16.msra.mxu0 %v5091_v32  ;;  %v481_v32 = vld [vmem:[#allocation9] sm:$0xff] }
  0xbe   :  { %5117 = vmatprep.subr.bf16.mxu0 %v5662_v50  ;;  %4566 = vmatmul.mubr.f32.vlgmr.msra.gmra.mrb[6].mxu1 %v5664_v9 }
  0xbf   :  { %5107 = vmatpush3.bf16.msra.mxu1 %v5891_v27  ;;  %4576 = vmatprep.mubr.msk.f32.mxu1 %vm5663_vm0, %v5664_v9 }
  0xc0   :  { %467 = vmatmul.mubr.f32.vlgmr.msra.gmra.mrb[4].mxu0 %v141_v33  ;;  %5108 = vmatprep.subr.bf16.mxu1 %v5662_v50  ;;  %v482_v33 = vld [vmem:[#allocation9 + $0x8] sm:$0xff] }
  0xc1   :  { %471 = vmatprep.mubr.f32.mxu0 %v148_v34  ;;  %v5903_v34 = vpack.c.bf16 %v482_v33, %v481_v32  ;;  %5119 = vmatpush3.bf16.msra.mxu0 %v5957_v26 }
  0xc2   :  { %5120 = vmatprep.subr.bf16.mxu0 %v5662_v50 }
  0xc3   :  { %5110 = vmatpush3.bf16.msra.mxu1 %v5897_v31 }
  0xc4   :  { %472 = vmatmul.mubr.f32.gmra.mrb[6].mxu0 %v147_v35  ;;  %5111 = vmatprep.subr.bf16.mxu1 %v5662_v50  ;;  %v483_v35 = vld [vmem:[#allocation9 + $0x10] sm:$0xff] }
  0xc5   :  { %4598 = vmatprep.mubr.msk.f32.mxu0 %vm5663_vm0, %v5664_v9  ;;  %5122 = vmatpush3.bf16.msra.mxu0 %v5960_v29 }
  0xc6   :  { %4577 = vmatmul.mubr.f32.vlgmr.msra.gmra.mrb[8].mxu1 %v5664_v9  ;;  %5129 = vmatprep.subr.bf16.mxu0 %v5662_v50 }
  0xc7   :  { %5113 = vmatpush3.bf16.msra.mxu1 %v5903_v34  ;;  %4587 = vmatprep.mubr.msk.f32.mxu1 %vm5663_vm0, %v5664_v9 }
  0xc8   :  { %5114 = vmatprep.subr.bf16.mxu1 %v5662_v50 }
 0x173   :  { %v4258_v36 = vpop.f32.mrb[0].mxu0 }
 0x174   :  { %v4259_v38 = vpop.f32.mrb[1].mxu0 }
 0x175   :  { %v4296_v39 = vpop.f32.mrb[0].mxu1  ;;  %v4260_v40 = vadd.f32 %v4259_v38, %v4258_v36  ;;  %v484_v36 = vld [vmem:[#allocation9 + $0x18] sm:$0xff] }
 0x176   :  { %v4297_v41 = vpop.f32.mrb[1].mxu1 }
 0x177   :  { %v4298_v42 = vadd.f32 %v4297_v41, %v4296_v39  ;;  %v319_v43 = vadd.f32 %v4260_v40, %v4181_v37  ;;  %v4261_v44 = vpop.f32.mrb[2].mxu0 }
 0x178   :  { %v4262_v45 = vpop.f32.mrb[3].mxu0 }
 0x179   :  { %v4299_v46 = vpop.f32.mrb[2].mxu1  ;;  %v394_v47 = vadd.f32 %v4298_v42, %v319_v43  ;;  %v4263_v48 = vadd.f32 %v4262_v45, %v4261_v44  ;;  %v5935_v45 = vld [vmem:[%s6499_s6] ss:$0 sm:$0xff] }
 0x17a   :  { %v4300_v49 = vpop.f32.mrb[3].mxu1 }
 0x17b   :  { %v4301_v51 = vadd.f32 %v4300_v49, %v4299_v46  ;;  %v324_v52 = vadd.f32 %v4263_v48, %v4181_v37  ;;  %v5908_v37 = vpack.c.bf16 %v484_v36, %v483_v35 }
 0x17d   :  { %v399_v53 = vadd.f32 %v4301_v51, %v324_v52  ;;  %v587_v54 = vpop.f32.mrb[4].mxu1  ;;  %5116 = vmatpush3.bf16.msra.mxu1 %v5908_v37 }
 0x17e   :  { %v4556_v55 = vpop.f32.mrb[5].mxu1  ;;  %5123 = vmatprep.subr.bf16.mxu1 %v5662_v50 }
 0x191   :  { %v657_v40 = vpop.f32.mrb[6].mxu1 }
 0x192   :  { %v4567_v41 = vpop.f32.mrb[7].mxu1 }
 0x193   :  { %v4334_v59 = vpop.f32.mrb[4].mxu0 }
 0x194   :  { %v4335_v60 = vpop.f32.mrb[5].mxu0 }
 0x195   :  { %v4336_v61 = vadd.f32 %v4335_v60, %v4334_v59 }
 0x197   :  { %v5867_v63 = vadd.f32 %v4336_v61, %v394_v47  ;;  %v4337_v0 = vpop.f32.mrb[6].mxu0 }
 0x198   :  { %v4338_v4 = vpop.f32.mrb[7].mxu0 }
 0x199   :  { %v731_v5 = vadd.f32 %v587_v54, %v5867_v63  ;;  %v4339_v6 = vadd.f32 %v4338_v4, %v4337_v0  ;;  %v5916_v42 = vpop.f32.mrb[8].mxu1 }
 0x19a   :  { %v4578_v43 = vpop.f32.mrb[9].mxu1 }
 0x19b   :  { %v732_v7 = vmul.f32 %v731_v5, %v5871_v3  ;;  %v5875_v8 = vadd.f32 %v4339_v6, %v399_v53 }
 0x19d   :  { %5359 = vtanh.f32 %v732_v7 }
 0x1a7   :  { %v5360_v10 = vpop.eup %5359 }
 0x1a8   :  { %v734_v11 = vmul.f32 0.5, %v5360_v10 }
 0x1aa   :  { %v735_v12 = vadd.f32 0.5, %v734_v11 }
 0x1ac   :  { %v736_v13 = vsel %vm5863_vm3, %v5360_v10, %v735_v12 }
 0x1ad   :  { %739 = vrot.lane.b32.xlu0 %v736_v13, %s5666_s3  ;;  %v737_v16 = vmul.f32 0.0, %v736_v13 }
 0x21f   :  { %v740_v14 = vpop.permute.xlu0 %739 }
 0x220   :  { %v742_v15 = vmul.f32 %v740_v14, %v736_v13 }
 0x222   :  { %744 = vrot.lane.b32.xlu0 %v742_v15, %s5667_s16 }
 0x294   :  { %v745_v17 = vpop.permute.xlu0 %744 }
 0x295   :  { %v5881_v18 = vadd.f32 %v745_v17, %v737_v16 }
 0x297   :  { %5361 = vtanh.f32 %v5881_v18  ;;  %v1178_v15 = vrot.slane %v5881_v18, 6 }
 0x2a1   :  { %v5362_v30 = vpop.eup %5361 }
 0x2a2   :  { %750 = vrot.lane.b32.xlu1 %v5362_v30, %s5666_s3 }
 0x314   :  { %v751_v38 = vpop.permute.xlu1 %750 }
 0x315   :  { %v753_v39 = vmul.f32 %v751_v38, %v736_v13 }
 0x317   :  { %755 = vrot.lane.b32.xlu1 %v753_v39, %s5667_s16 }
 0x389   :  { %v756_v44 = vpop.permute.xlu1 %755 }
 0x38a   :  { %4588 = vmatmul.mubr.msk.f32.vlgmr.msra.gmra.mrb[10].mxu1 %vm517_vm4, %v756_v44 }
 0x38b   :  { %5125 = vmatpush3.bf16.msra.mxu1 %v5844_v56  ;;  %4609 = vmatprep.mubr.msk.f32.mxu1 %vm5663_vm0, %v5664_v9 }
 0x38c   :  { %5126 = vmatprep.subr.bf16.mxu1 %v5662_v50 }
 0x38f   :  { %5128 = vmatpush3.bf16.msra.mxu1 %v5847_v2 }
 0x390   :  { %5135 = vmatprep.subr.bf16.mxu1 %v5662_v50 }
 0x392   :  { %4610 = vmatmul.mubr.msk.f32.vlgmr.msra.gmra.mrb[12].mxu1 %vm517_vm4, %v756_v44 }
 0x393   :  { %5137 = vmatpush3.bf16.msra.mxu1 %v5891_v27  ;;  %4631 = vmatprep.mubr.msk.f32.mxu1 %vm5663_vm0, %v5664_v9 }
 0x394   :  { %5138 = vmatprep.subr.bf16.mxu1 %v5662_v50 }
 0x397   :  { %5140 = vmatpush3.bf16.msra.mxu1 %v5897_v31 }
 0x398   :  { %5147 = vmatprep.subr.bf16.mxu1 %v5662_v50 }
 0x45d   :  { %v825_v46 = vpop.f32.mrb[10].mxu1 }
 0x45e   :  { %v826_v47 = vadd.f32 %v825_v46, %v657_v40  ;;  %v4589_v48 = vpop.f32.mrb[11].mxu1  ;;  %v5999_v40 = vld [vmem:[%s6502_s9] ss:$0 sm:$0xff] }
 0x460   :  { %v829_v49 = vadd.f32 %v5935_v45, %v826_v47 }
 0x462   :  { %v830_v51 = vmul.f32 %v829_v49, %v5871_v3 }
 0x464   :  { %5363 = vtanh.f32 %v830_v51 }
 0x465   :  { %v1022_v52 = vpop.f32.mrb[12].mxu1 }
 0x466   :  { %v1169_v53 = vrot.slane %v1022_v52, 6  ;;  %v4611_v54 = vpop.f32.mrb[13].mxu1 }
 0x468   :  { %v1171_v55 = vadd.f32 %v1169_v53, %v5867_v63 }
 0x46a   :  { %v1172_v57 = vmul.f32 %v1171_v55, %v5871_v3 }
 0x46c   :  { %5365 = vtanh.f32 %v1172_v57 }
 0x46e   :  { %v5364_v58 = vpop.eup %5363 }
 0x46f   :  { %v832_v59 = vmul.f32 0.5, %v5364_v58 }
 0x471   :  { %v833_v60 = vadd.f32 0.5, %v832_v59 }
 0x473   :  { %v834_v61 = vsel %vm5863_vm3, %v5364_v58, %v833_v60 }
 0x474   :  { %837 = vrot.lane.b32.xlu0 %v834_v61, %s5666_s3  ;;  %v835_v12 = vmul.f32 0.0, %v834_v61 }
 0x476   :  { %v5366_v0 = vpop.eup %5365 }
 0x477   :  { %v1174_v1 = vmul.f32 0.5, %v5366_v0 }
 0x479   :  { %v1175_v4 = vadd.f32 0.5, %v1174_v1 }
 0x47b   :  { %v1176_v5 = vsel %vm5863_vm3, %v5366_v0, %v1175_v4 }
 0x47c   :  { %1182 = vrot.lane.b32.xlu1 %v1176_v5, %s5666_s3  ;;  %v1180_v16 = vmul.f32 %v1178_v15, %v1176_v5 }
 0x4e6   :  { %v838_v6 = vpop.permute.xlu0 %837 }
 0x4e7   :  { %v840_v7 = vmul.f32 %v838_v6, %v834_v61 }
 0x4e9   :  { %842 = vrot.lane.b32.xlu0 %v840_v7, %s5667_s16 }
 0x4ee   :  { %v1183_v10 = vpop.permute.xlu1 %1182 }
 0x4ef   :  { %v1185_v11 = vmul.f32 %v1183_v10, %v1176_v5 }
 0x4f1   :  { %1187 = vrot.lane.b32.xlu1 %v1185_v11, %s5667_s16 }
 0x55b   :  { %v843_v13 = vpop.permute.xlu0 %842 }
 0x55c   :  { %v5949_v14 = vadd.f32 %v843_v13, %v835_v12 }
 0x55e   :  { %5367 = vtanh.f32 %v5949_v14 }
 0x563   :  { %v1188_v17 = vpop.permute.xlu1 %1187 }
 0x564   :  { %v5953_v19 = vadd.f32 %v1188_v17, %v1180_v16 }
 0x566   :  { %5369 = vtanh.f32 %v5953_v19 }
 0x568   :  { %v5368_v20 = vpop.eup %5367 }
 0x569   :  { %848 = vrot.lane.b32.xlu0 %v5368_v20, %s5666_s3 }
 0x570   :  { %v5370_v18 = vpop.eup %5369 }
 0x571   :  { %1193 = vrot.lane.b32.xlu1 %v5370_v18, %s5666_s3 }
 0x5db   :  { %v849_v30 = vpop.permute.xlu0 %848 }
 0x5dc   :  { %v851_v32 = vmul.f32 %v849_v30, %v834_v61 }
 0x5de   :  { %853 = vrot.lane.b32.xlu0 %v851_v32, %s5667_s16 }
 0x5e3   :  { %v1194_v33 = vpop.permute.xlu1 %1193 }
 0x5e4   :  { %v1196_v35 = vmul.f32 %v1194_v33, %v1176_v5 }
 0x5e6   :  { %v1198_v36 = vrot.slane %v1196_v35, 2 }
 0x5e8   :  { %1199 = vrot.lane.b32.xlu1 %v1198_v36, %s5667_s16 }
 0x650   :  { %v854_v38 = vpop.permute.xlu0 %853 }
 0x651   :  { %4599 = vmatmul.mubr.msk.f32.vlgmr.msra.gmra.mrb[8].mxu0 %vm517_vm4, %v854_v38 }
 0x652   :  { %5131 = vmatpush3.bf16.msra.mxu0 %v5884_v22  ;;  %4620 = vmatprep.mubr.msk.f32.mxu0 %vm5663_vm0, %v5664_v9 }
 0x653   :  { %5132 = vmatprep.subr.bf16.mxu0 %v5662_v50 }
 0x656   :  { %5134 = vmatpush3.bf16.msra.mxu0 %v5887_v24 }
 0x657   :  { %5141 = vmatprep.subr.bf16.mxu0 %v5662_v50 }
 0x659   :  { %4621 = vmatmul.mubr.msk.f32.vlgmr.msra.gmra.mrb[10].mxu0 %vm517_vm4, %v854_v38  ;;  %v1621_v38 = vrot.slane %v5953_v19, 6 }
 0x65a   :  { %5143 = vmatpush3.bf16.msra.mxu0 %v5903_v34  ;;  %4642 = vmatprep.mubr.msk.f32.mxu0 %vm5663_vm0, %v5664_v9  ;;  %v1200_v39 = vpop.permute.xlu1 %1199 }
 0x65b   :  { %5144 = vmatprep.subr.bf16.mxu0 %v5662_v50 }
 0x65e   :  { %5146 = vmatpush3.bf16.msra.mxu0 %v5908_v37 }
 0x65f   :  { %5153 = vmatprep.subr.bf16.mxu0 %v5662_v50 }
 0x661   :  { %4643 = vmatmul.mubr.msk.f32.vlgmr.msra.gmra.mrb[12].mxu0 %vm517_vm4, %v1200_v39 }
 0x662   :  { %5155 = vmatpush3.bf16.msra.mxu0 %v5844_v56  ;;  %4664 = vmatprep.mubr.msk.f32.mxu0 %vm5663_vm0, %v5664_v9 }
 0x663   :  { %5156 = vmatprep.subr.bf16.mxu0 %v5662_v50 }
 0x666   :  { %5158 = vmatpush3.bf16.msra.mxu0 %v5847_v2 }
 0x667   :  { %5165 = vmatprep.subr.bf16.mxu0 %v5662_v50 }
 0x669   :  { %4665 = vmatmul.mubr.msk.f32.vlgmr.msra.gmra.mrb[14].mxu0 %vm517_vm4, %v1200_v39 }
 0x66a   :  { %5167 = vmatpush3.bf16.msra.mxu0 %v5891_v27  ;;  %4686 = vmatprep.mubr.msk.f32.mxu0 %vm5663_vm0, %v5664_v9 }
 0x66b   :  { %5168 = vmatprep.subr.bf16.mxu0 %v5662_v50 }
 0x66e   :  { %5170 = vmatpush3.bf16.msra.mxu0 %v5897_v31 }
 0x66f   :  { %5177 = vmatprep.subr.bf16.mxu0 %v5662_v50 }
 0x724   :  { %v923_v41 = vpop.f32.mrb[8].mxu0 }
 0x725   :  { %v924_v43 = vadd.f32 %v923_v41, %v5916_v42  ;;  %v4600_v44 = vpop.f32.mrb[9].mxu0 }
 0x727   :  { %v927_v46 = vadd.f32 %v5999_v40, %v924_v43 }
 0x729   :  { %v928_v47 = vmul.f32 %v927_v46, %v5871_v3 }
 0x72b   :  { %5371 = vtanh.f32 %v928_v47 }
 0x72c   :  { %v1092_v48 = vpop.f32.mrb[10].mxu0 }
 0x72d   :  { %v4622_v49 = vpop.f32.mrb[11].mxu0 }
 0x734   :  { %v1269_v51 = vpop.f32.mrb[12].mxu0 }
 0x735   :  { %v5372_v52 = vpop.eup %5371  ;;  %v1270_v53 = vadd.f32 %v1269_v51, %v1092_v48  ;;  %v4644_v54 = vpop.f32.mrb[13].mxu0 }
 0x736   :  { %v930_v55 = vmul.f32 0.5, %v5372_v52 }
 0x737   :  { %v1273_v57 = vadd.f32 %v5935_v45, %v1270_v53 }
 0x738   :  { %v931_v58 = vadd.f32 0.5, %v930_v55 }
 0x739   :  { %v1274_v59 = vmul.f32 %v1273_v57, %v5871_v3 }
 0x73a   :  { %v932_v42 = vsel %vm5863_vm3, %v5372_v52, %v931_v58 }
 0x73b   :  { %5373 = vtanh.f32 %v1274_v59  ;;  %935 = vrot.lane.b32.xlu0 %v932_v42, %s5666_s3  ;;  %v933_v28 = vmul.f32 0.0, %v932_v42 }
 0x73c   :  { %v1465_v60 = vpop.f32.mrb[14].mxu0 }
 0x73d   :  { %v1612_v61 = vrot.slane %v1465_v60, 4  ;;  %v4666_v0 = vpop.f32.mrb[15].mxu0 }
 0x73f   :  { %v1614_v1 = vadd.f32 %v1612_v61, %v5867_v63 }
 0x741   :  { %v1615_v4 = vmul.f32 %v1614_v1, %v5871_v3 }
 0x743   :  { %5375 = vtanh.f32 %v1615_v4 }
 0x745   :  { %v5374_v5 = vpop.eup %5373 }
 0x746   :  { %v1276_v6 = vmul.f32 0.5, %v5374_v5 }
 0x748   :  { %v1277_v7 = vadd.f32 0.5, %v1276_v6 }
 0x74a   :  { %v1278_v10 = vsel %vm5863_vm3, %v5374_v5, %v1277_v7 }
 0x74b   :  { %1281 = vrot.lane.b32.xlu1 %v1278_v10, %s5666_s3  ;;  %v1279_v33 = vmul.f32 %v1278_v10, %v5949_v14 }
 0x74d   :  { %v5376_v11 = vpop.eup %5375 }
 0x74e   :  { %v1617_v12 = vmul.f32 0.5, %v5376_v11 }
 0x750   :  { %v1618_v13 = vadd.f32 0.5, %v1617_v12 }
 0x752   :  { %v1619_v15 = vsel %vm5863_vm3, %v5376_v11, %v1618_v13 }
 0x753   :  { %1625 = vrot.lane.b32.xlu0 %v1619_v15, %s5666_s3  ;;  %v1623_v39 = vmul.f32 %v1621_v38, %v1619_v15 }
 0x7ad   :  { %v936_v16 = vpop.permute.xlu0 %935 }
 0x7ae   :  { %v938_v17 = vmul.f32 %v936_v16, %v932_v42 }
 0x7b0   :  { %940 = vrot.lane.b32.xlu1 %v938_v17, %s5667_s16 }
 0x7bd   :  { %v1282_v20 = vpop.permute.xlu1 %1281 }
 0x7be   :  { %v1284_v21 = vmul.f32 %v1282_v20, %v1278_v10 }
 0x7c0   :  { %1286 = vrot.lane.b32.xlu0 %v1284_v21, %s5667_s16 }
 0x7c5   :  { %v1626_v23 = vpop.permute.xlu0 %1625 }
 0x7c6   :  { %v1628_v25 = vmul.f32 %v1626_v23, %v1619_v15 }
 0x7c8   :  { %1630 = vrot.lane.b32.xlu1 %v1628_v25, %s5667_s16 }
 0x822   :  { %v941_v18 = vpop.permute.xlu1 %940 }
 0x823   :  { %v6020_v30 = vadd.f32 %v941_v18, %v933_v28 }
 0x825   :  { %5377 = vtanh.f32 %v6020_v30 }
 0x82f   :  { %v5378_v32 = vpop.eup %5377 }
 0x830   :  { %946 = vrot.lane.b32.xlu0 %v5378_v32, %s5666_s3 }
 0x832   :  { %v1287_v35 = vpop.permute.xlu0 %1286 }
 0x833   :  { %v6025_v36 = vadd.f32 %v1287_v35, %v1279_v33 }
 0x835   :  { %5379 = vtanh.f32 %v6025_v36 }
 0x83a   :  { %v1631_v41 = vpop.permute.xlu1 %1630 }
 0x83b   :  { %v6029_v43 = vadd.f32 %v1631_v41, %v1623_v39 }
 0x83d   :  { %5381 = vtanh.f32 %v6029_v43 }
 0x83f   :  { %v5380_v44 = vpop.eup %5379 }
 0x840   :  { %1292 = vrot.lane.b32.xlu1 %v5380_v44, %s5666_s3 }
 0x847   :  { %v5382_v46 = vpop.eup %5381 }
 0x848   :  { %1636 = vrot.lane.b32.xlu0 %v5382_v46, %s5666_s3 }
 0x8a2   :  { %v947_v14 = vpop.permute.xlu0 %946 }
 0x8a3   :  { %v949_v47 = vmul.f32 %v947_v14, %v932_v42 }
 0x8a5   :  { %951 = vrot.lane.b32.xlu1 %v949_v47, %s5667_s16 }
 0x8b2   :  { %v1293_v48 = vpop.permute.xlu1 %1292 }
 0x8b3   :  { %v1295_v49 = vmul.f32 %v1293_v48, %v1278_v10 }
 0x8b5   :  { %1297 = vrot.lane.b32.xlu0 %v1295_v49, %s5667_s16 }
 0x8ba   :  { %v1637_v19 = vpop.permute.xlu0 %1636 }
 0x8bb   :  { %v1639_v51 = vmul.f32 %v1637_v19, %v1619_v15 }
 0x8bd   :  { %v1641_v52 = vrot.slane %v1639_v51, 4 }
 0x8bf   :  { %1642 = vrot.lane.b32.xlu1 %v1641_v52, %s5667_s16 }
 0x917   :  { %v952_v53 = vpop.permute.xlu1 %951 }
 0x918   :  { %955 = vst.msk [vmem:[#allocation2] sm:$0x3] %vm954_vm5, %v952_v53  ;;  %4632 = vmatmul.mubr.msk.f32.vlgmr.msra.gmra.mrb[14].mxu1 %vm517_vm4, %v952_v53 }
 0x919   :  { %5149 = vmatpush3.bf16.msra.mxu1 %v5957_v26  ;;  %4653 = vmatprep.mubr.msk.f32.mxu1 %vm5663_vm0, %v5664_v9 }
 0x91a   :  { %5150 = vmatprep.subr.bf16.mxu1 %v5662_v50 }
 0x91d   :  { %5152 = vmatpush3.bf16.msra.mxu1 %v5960_v29 }
 0x91e   :  { %5159 = vmatprep.subr.bf16.mxu1 %v5662_v50 }
 0x927   :  { %v1298_v54 = vpop.permute.xlu0 %1297 }
 0x928   :  { %4654 = vmatmul.mubr.msk.f32.vlgmr.msra.gmra.mrb[16].mxu1 %vm517_vm4, %v1298_v54 }
 0x929   :  { %5161 = vmatpush3.bf16.msra.mxu1 %v5884_v22  ;;  %4675 = vmatprep.mubr.msk.f32.mxu1 %vm5663_vm0, %v5664_v9 }
 0x92a   :  { %5162 = vmatprep.subr.bf16.mxu1 %v5662_v50 }
 0x92d   :  { %5164 = vmatpush3.bf16.msra.mxu1 %v5887_v24 }
 0x92e   :  { %5171 = vmatprep.subr.bf16.mxu1 %v5662_v50 }
 0x930   :  { %4676 = vmatmul.mubr.msk.f32.vlgmr.msra.gmra.mrb[18].mxu1 %vm517_vm4, %v1298_v54 }
 0x931   :  { %5173 = vmatpush3.bf16.msra.mxu1 %v5903_v34  ;;  %4697 = vmatprep.mubr.msk.f32.mxu1 %vm5663_vm0, %v5664_v9  ;;  %v1643_v55 = vpop.permute.xlu1 %1642 }
 0x932   :  { %5174 = vmatprep.subr.bf16.mxu1 %v5662_v50 }
 0x935   :  { %5176 = vmatpush3.bf16.msra.mxu1 %v5908_v37 }
 0x936   :  { %5183 = vmatprep.subr.bf16.mxu1 %v5662_v50 }
 0x938   :  { %4698 = vmatmul.mubr.msk.f32.vlgmr.msra.gmra.mrb[20].mxu1 %vm517_vm4, %v1643_v55 }
 0x939   :  { %5185 = vmatpush3.bf16.msra.mxu1 %v5844_v56  ;;  %4719 = vmatprep.mubr.msk.f32.mxu1 %vm5663_vm0, %v5664_v9 }
 0x93a   :  { %5186 = vmatprep.subr.bf16.mxu1 %v5662_v50 }
 0x93d   :  { %5188 = vmatpush3.bf16.msra.mxu1 %v5847_v2 }
 0x93e   :  { %5195 = vmatprep.subr.bf16.mxu1 %v5662_v50 }
 0x940   :  { %4720 = vmatmul.mubr.msk.f32.vlgmr.msra.gmra.mrb[22].mxu1 %vm517_vm4, %v1643_v55 }
 0x941   :  { %5197 = vmatpush3.bf16.msra.mxu1 %v5891_v27  ;;  %4741 = vmatprep.mubr.msk.f32.mxu1 %vm5663_vm0, %v5664_v9 }
 0x942   :  { %5198 = vmatprep.subr.bf16.mxu1 %v5662_v50 }
 0x945   :  { %5200 = vmatpush3.bf16.msra.mxu1 %v5897_v31 }
 0x946   :  { %5207 = vmatprep.subr.bf16.mxu1 %v5662_v50 }
 0x9eb   :  { %v1164_v57 = vpop.f32.mrb[14].mxu1 }
 0x9ec   :  { %v4633_v58 = vpop.f32.mrb[15].mxu1 }
 0x9fb   :  { %v1367_v59 = vpop.f32.mrb[16].mxu1 }
 0x9fc   :  { %v1368_v42 = vadd.f32 %v1367_v59, %v1164_v57  ;;  %v4655_v60 = vpop.f32.mrb[17].mxu1  ;;  %v2064_v57 = vrot.slane %v6029_v43, 6 }
 0x9fe   :  { %v1371_v61 = vadd.f32 %v5999_v40, %v1368_v42 }
 0xa00   :  { %v1372_v0 = vmul.f32 %v1371_v61, %v5871_v3 }
 0xa02   :  { %5383 = vtanh.f32 %v1372_v0 }
 0xa03   :  { %v1535_v1 = vpop.f32.mrb[18].mxu1 }
 0xa04   :  { %v4677_v4 = vpop.f32.mrb[19].mxu1 }
 0xa0b   :  { %v1712_v5 = vpop.f32.mrb[20].mxu1 }
 0xa0c   :  { %v5384_v6 = vpop.eup %5383  ;;  %v1713_v7 = vadd.f32 %v1712_v5, %v1535_v1  ;;  %v4699_v10 = vpop.f32.mrb[21].mxu1 }
 0xa0d   :  { %v1374_v11 = vmul.f32 0.5, %v5384_v6 }
 0xa0e   :  { %v1716_v12 = vadd.f32 %v5935_v45, %v1713_v7 }
 0xa0f   :  { %v1375_v13 = vadd.f32 0.5, %v1374_v11 }
 0xa10   :  { %v1717_v15 = vmul.f32 %v1716_v12, %v5871_v3 }
 0xa11   :  { %v1376_v16 = vsel %vm5863_vm3, %v5384_v6, %v1375_v13 }
 0xa12   :  { %5385 = vtanh.f32 %v1717_v15  ;;  %1379 = vrot.lane.b32.xlu0 %v1376_v16, %s5666_s3  ;;  %v1377_v49 = vmul.f32 %v1376_v16, %v6020_v30 }
 0xa13   :  { %v1908_v17 = vpop.f32.mrb[22].mxu1 }
 0xa14   :  { %v2055_v20 = vrot.slane %v1908_v17, 2  ;;  %v4721_v21 = vpop.f32.mrb[23].mxu1 }
 0xa16   :  { %v2057_v23 = vadd.f32 %v2055_v20, %v5867_v63 }
 0xa18   :  { %v2058_v25 = vmul.f32 %v2057_v23, %v5871_v3 }
 0xa1a   :  { %5387 = vtanh.f32 %v2058_v25 }
 0xa1c   :  { %v5386_v28 = vpop.eup %5385 }
 0xa1d   :  { %v1719_v18 = vmul.f32 0.5, %v5386_v28 }
 0xa1f   :  { %v1720_v32 = vadd.f32 0.5, %v1719_v18 }
 0xa21   :  { %v1721_v33 = vsel %vm5863_vm3, %v5386_v28, %v1720_v32 }
 0xa22   :  { %1724 = vrot.lane.b32.xlu1 %v1721_v33, %s5666_s3  ;;  %v1722_v53 = vmul.f32 %v1721_v33, %v6025_v36 }
 0xa24   :  { %v5388_v35 = vpop.eup %5387 }
 0xa25   :  { %v2060_v38 = vmul.f32 0.5, %v5388_v35 }
 0xa27   :  { %v2061_v39 = vadd.f32 0.5, %v2060_v38 }
 0xa29   :  { %v2062_v41 = vsel %vm5863_vm3, %v5388_v35, %v2061_v39 }
 0xa2a   :  { %2068 = vrot.lane.b32.xlu0 %v2062_v41, %s5666_s3  ;;  %v2066_v58 = vmul.f32 %v2064_v57, %v2062_v41 }
 0xa84   :  { %v1380_v63 = vpop.permute.xlu0 %1379 }
 0xa85   :  { %v1382_v44 = vmul.f32 %v1380_v63, %v1376_v16 }
 0xa87   :  { %1384 = vrot.lane.b32.xlu1 %v1382_v44, %s5667_s16 }
 0xa94   :  { %v1725_v46 = vpop.permute.xlu1 %1724 }
 0xa95   :  { %v1727_v14 = vmul.f32 %v1725_v46, %v1721_v33 }
 0xa97   :  { %1729 = vrot.lane.b32.xlu0 %v1727_v14, %s5667_s16 }
 0xa9c   :  { %v2069_v47 = vpop.permute.xlu0 %2068 }
 0xa9d   :  { %v2071_v48 = vmul.f32 %v2069_v47, %v2062_v41 }
 0xa9f   :  { %2073 = vrot.lane.b32.xlu1 %v2071_v48, %s5667_s16 }
 0xaf9   :  { %v1385_v19 = vpop.permute.xlu1 %1384 }
 0xafa   :  { %v6092_v51 = vadd.f32 %v1385_v19, %v1377_v49 }
 0xafc   :  { %5389 = vtanh.f32 %v6092_v51 }
 0xb06   :  { %v5390_v52 = vpop.eup %5389 }
 0xb07   :  { %1390 = vrot.lane.b32.xlu0 %v5390_v52, %s5666_s3 }
 0xb09   :  { %v1730_v54 = vpop.permute.xlu0 %1729 }
 0xb0a   :  { %v6097_v55 = vadd.f32 %v1730_v54, %v1722_v53 }
 0xb0c   :  { %5391 = vtanh.f32 %v6097_v55 }
 0xb11   :  { %v2074_v59 = vpop.permute.xlu1 %2073 }
 0xb12   :  { %v6101_v30 = vadd.f32 %v2074_v59, %v2066_v58 }
 0xb14   :  { %5393 = vtanh.f32 %v6101_v30 }
 0xb16   :  { %v5392_v42 = vpop.eup %5391 }
 0xb17   :  { %1735 = vrot.lane.b32.xlu1 %v5392_v42, %s5666_s3 }
 0xb1e   :  { %v5394_v60 = vpop.eup %5393 }
 0xb1f   :  { %2079 = vrot.lane.b32.xlu0 %v5394_v60, %s5666_s3 }
 0xb79   :  { %v1391_v36 = vpop.permute.xlu0 %1390 }
 0xb7a   :  { %v1393_v61 = vmul.f32 %v1391_v36, %v1376_v16 }
 0xb7c   :  { %1395 = vrot.lane.b32.xlu1 %v1393_v61, %s5667_s16 }
 0xb89   :  { %v1736_v0 = vpop.permute.xlu1 %1735 }
 0xb8a   :  { %v1738_v1 = vmul.f32 %v1736_v0, %v1721_v33 }
 0xb8c   :  { %1740 = vrot.lane.b32.xlu0 %v1738_v1, %s5667_s16 }
 0xb91   :  { %v2080_v43 = vpop.permute.xlu0 %2079 }
 0xb92   :  { %v2082_v4 = vmul.f32 %v2080_v43, %v2062_v41 }
 0xb94   :  { %v2084_v5 = vrot.slane %v2082_v4, 6 }
 0xb96   :  { %2085 = vrot.lane.b32.xlu1 %v2084_v5, %s5667_s16 }
 0xbee   :  { %v1396_v6 = vpop.permute.xlu1 %1395 }
 0xbef   :  { %1398 = vst.msk [vmem:[#allocation2 + $0x2] sm:$0x3] %vm954_vm5, %v1396_v6  ;;  %4687 = vmatmul.mubr.msk.f32.vlgmr.msra.gmra.mrb[16].mxu0 %vm517_vm4, %v1396_v6 }
 0xbf0   :  { %5179 = vmatpush3.bf16.msra.mxu0 %v5957_v26  ;;  %4708 = vmatprep.mubr.msk.f32.mxu0 %vm5663_vm0, %v5664_v9 }
 0xbf1   :  { %5180 = vmatprep.subr.bf16.mxu0 %v5662_v50 }
 0xbf4   :  { %5182 = vmatpush3.bf16.msra.mxu0 %v5960_v29 }
 0xbf5   :  { %5189 = vmatprep.subr.bf16.mxu0 %v5662_v50 }
 0xbfe   :  { %v1741_v7 = vpop.permute.xlu0 %1740 }
 0xbff   :  { %4709 = vmatmul.mubr.msk.f32.vlgmr.msra.gmra.mrb[18].mxu0 %vm517_vm4, %v1741_v7 }
 0xc00   :  { %5191 = vmatpush3.bf16.msra.mxu0 %v5884_v22  ;;  %4730 = vmatprep.mubr.msk.f32.mxu0 %vm5663_vm0, %v5664_v9 }
 0xc01   :  { %5192 = vmatprep.subr.bf16.mxu0 %v5662_v50 }
 0xc04   :  { %5194 = vmatpush3.bf16.msra.mxu0 %v5887_v24 }
 0xc05   :  { %5201 = vmatprep.subr.bf16.mxu0 %v5662_v50 }
 0xc07   :  { %4731 = vmatmul.mubr.msk.f32.vlgmr.msra.gmra.mrb[20].mxu0 %vm517_vm4, %v1741_v7 }
 0xc08   :  { %5203 = vmatpush3.bf16.msra.mxu0 %v5903_v34  ;;  %4752 = vmatprep.mubr.msk.f32.mxu0 %vm5663_vm0, %v5664_v9  ;;  %v2086_v10 = vpop.permute.xlu1 %2085 }
 0xc09   :  { %5204 = vmatprep.subr.bf16.mxu0 %v5662_v50 }
 0xc0c   :  { %5206 = vmatpush3.bf16.msra.mxu0 %v5908_v37 }
 0xc0d   :  { %5213 = vmatprep.subr.bf16.mxu0 %v5662_v50 }
 0xc0f   :  { %4753 = vmatmul.mubr.msk.f32.vlgmr.msra.gmra.mrb[22].mxu0 %vm517_vm4, %v2086_v10 }
 0xc10   :  { %5215 = vmatpush3.bf16.msra.mxu0 %v5844_v56  ;;  %4774 = vmatprep.mubr.msk.f32.mxu0 %vm5663_vm0, %v5664_v9 }
 0xc11   :  { %5216 = vmatprep.subr.bf16.mxu0 %v5662_v50 }
 0xc14   :  { %5218 = vmatpush3.bf16.msra.mxu0 %v5847_v2 }
 0xc15   :  { %5225 = vmatprep.subr.bf16.mxu0 %v5662_v50 }
 0xc17   :  { %4775 = vmatmul.mubr.msk.f32.vlgmr.msra.gmra.mrb[24].mxu0 %vm517_vm4, %v2086_v10  ;;  %v2504_v10 = vrot.slane %v6101_v30, 6 }
 0xc18   :  { %5227 = vmatpush3.bf16.msra.mxu0 %v5891_v27  ;;  %4796 = vmatprep.mubr.msk.f32.mxu0 %vm5663_vm0, %v5664_v9 }
 0xc19   :  { %5228 = vmatprep.subr.bf16.mxu0 %v5662_v50 }
 0xc1c   :  { %5230 = vmatpush3.bf16.msra.mxu0 %v5897_v31 }
 0xc1d   :  { %5237 = vmatprep.subr.bf16.mxu0 %v5662_v50 }
 0xcc2   :  { %v1607_v11 = vpop.f32.mrb[16].mxu0 }
 0xcc3   :  { %v4688_v12 = vpop.f32.mrb[17].mxu0 }
 0xcd2   :  { %v1810_v13 = vpop.f32.mrb[18].mxu0 }
 0xcd3   :  { %v1811_v15 = vadd.f32 %v1810_v13, %v1607_v11  ;;  %v4710_v16 = vpop.f32.mrb[19].mxu0 }
 0xcd5   :  { %v1814_v17 = vadd.f32 %v5999_v40, %v1811_v15 }
 0xcd7   :  { %v1815_v20 = vmul.f32 %v1814_v17, %v5871_v3 }
 0xcd9   :  { %5395 = vtanh.f32 %v1815_v20 }
 0xcda   :  { %v1978_v21 = vpop.f32.mrb[20].mxu0 }
 0xcdb   :  { %v4732_v23 = vpop.f32.mrb[21].mxu0 }
 0xce2   :  { %v2155_v25 = vpop.f32.mrb[22].mxu0 }
 0xce3   :  { %v5396_v28 = vpop.eup %5395  ;;  %v2156_v18 = vadd.f32 %v2155_v25, %v1978_v21  ;;  %v4754_v32 = vpop.f32.mrb[23].mxu0 }
 0xce4   :  { %v1817_v33 = vmul.f32 0.5, %v5396_v28 }
 0xce5   :  { %v2159_v35 = vadd.f32 %v5935_v45, %v2156_v18 }
 0xce6   :  { %v1818_v38 = vadd.f32 0.5, %v1817_v33 }
 0xce7   :  { %v2160_v39 = vmul.f32 %v2159_v35, %v5871_v3 }
 0xce8   :  { %v1819_v41 = vsel %vm5863_vm3, %v5396_v28, %v1818_v38 }
 0xce9   :  { %5397 = vtanh.f32 %v2160_v39  ;;  %1822 = vrot.lane.b32.xlu0 %v1819_v41, %s5666_s3  ;;  %v1820_v0 = vmul.f32 %v1819_v41, %v6092_v51 }
 0xcea   :  { %v2351_v63 = vpop.f32.mrb[24].mxu0 }
 0xceb   :  { %v2497_v44 = vadd.f32 %v2351_v63, %v5875_v8  ;;  %v4776_v46 = vpop.f32.mrb[25].mxu0 }
 0xced   :  { %v2498_v14 = vmul.f32 %v2497_v44, %v5871_v3 }
 0xcef   :  { %5399 = vtanh.f32 %v2498_v14 }
 0xcf3   :  { %v5398_v47 = vpop.eup %5397 }
 0xcf4   :  { %v2162_v48 = vmul.f32 0.5, %v5398_v47 }
 0xcf6   :  { %v2163_v49 = vadd.f32 0.5, %v2162_v48 }
 0xcf8   :  { %v2164_v19 = vsel %vm5863_vm3, %v5398_v47, %v2163_v49 }
 0xcf9   :  { %v5400_v52 = vpop.eup %5399  ;;  %2167 = vrot.lane.b32.xlu1 %v2164_v19, %s5666_s3  ;;  %v2165_v5 = vmul.f32 %v2164_v19, %v6097_v55 }
 0xcfa   :  { %v2500_v53 = vmul.f32 0.5, %v5400_v52 }
 0xcfc   :  { %v2501_v54 = vadd.f32 0.5, %v2500_v53 }
 0xcfe   :  { %v2502_v57 = vsel %vm5863_vm3, %v5400_v52, %v2501_v54 }
 0xcff   :  { %2508 = vrot.lane.b32.xlu0 %v2502_v57, %s5666_s3  ;;  %v2506_v11 = vmul.f32 %v2504_v10, %v2502_v57 }
 0xd5b   :  { %v1823_v58 = vpop.permute.xlu0 %1822 }
 0xd5c   :  { %v1825_v59 = vmul.f32 %v1823_v58, %v1819_v41 }
 0xd5e   :  { %1827 = vrot.lane.b32.xlu1 %v1825_v59, %s5667_s16 }
 0xd6b   :  { %v2168_v42 = vpop.permute.xlu1 %2167 }
 0xd6c   :  { %v2170_v60 = vmul.f32 %v2168_v42, %v2164_v19 }
 0xd6e   :  { %2172 = vrot.lane.b32.xlu0 %v2170_v60, %s5667_s16 }
 0xd71   :  { %v2509_v36 = vpop.permute.xlu0 %2508 }
 0xd72   :  { %v2511_v61 = vmul.f32 %v2509_v36, %v2502_v57 }
 0xd74   :  { %2513 = vrot.lane.b32.xlu1 %v2511_v61, %s5667_s16 }
 0xdd0   :  { %v1828_v1 = vpop.permute.xlu1 %1827 }
 0xdd1   :  { %v6164_v43 = vadd.f32 %v1828_v1, %v1820_v0 }
 0xdd3   :  { %5401 = vtanh.f32 %v6164_v43 }
 0xddd   :  { %v5402_v4 = vpop.eup %5401 }
 0xdde   :  { %1833 = vrot.lane.b32.xlu0 %v5402_v4, %s5666_s3 }
 0xde0   :  { %v2173_v6 = vpop.permute.xlu0 %2172 }
 0xde1   :  { %v6169_v7 = vadd.f32 %v2173_v6, %v2165_v5 }
 0xde3   :  { %5403 = vtanh.f32 %v6169_v7 }
 0xde6   :  { %v2514_v12 = vpop.permute.xlu1 %2513 }
 0xde7   :  { %v6173_v51 = vadd.f32 %v2514_v12, %v2506_v11 }
 0xde9   :  { %5405 = vtanh.f32 %v6173_v51 }
 0xded   :  { %v5404_v13 = vpop.eup %5403 }
 0xdee   :  { %2178 = vrot.lane.b32.xlu1 %v5404_v13, %s5666_s3 }
 0xdf3   :  { %v5406_v15 = vpop.eup %5405 }
 0xdf4   :  { %2519 = vrot.lane.b32.xlu0 %v5406_v15, %s5666_s3 }
 0xe50   :  { %v1834_v55 = vpop.permute.xlu0 %1833 }
 0xe51   :  { %v1836_v16 = vmul.f32 %v1834_v55, %v1819_v41 }
 0xe53   :  { %1838 = vrot.lane.b32.xlu1 %v1836_v16, %s5667_s16 }
 0xe60   :  { %v2179_v17 = vpop.permute.xlu1 %2178 }
 0xe61   :  { %v2181_v30 = vmul.f32 %v2179_v17, %v2164_v19 }
 0xe63   :  { %2183 = vrot.lane.b32.xlu0 %v2181_v30, %s5667_s16 }
 0xe66   :  { %v2520_v20 = vpop.permute.xlu0 %2519 }
 0xe67   :  { %v2522_v21 = vmul.f32 %v2520_v20, %v2502_v57 }
 0xe69   :  { %2524 = vrot.lane.b32.xlu1 %v2522_v21, %s5667_s16 }
 0xec5   :  { %v1839_v23 = vpop.permute.xlu1 %1838 }
 0xec6   :  { %1841 = vst.msk [vmem:[#allocation2 + $0x4] sm:$0x3] %vm954_vm5, %v1839_v23  ;;  %4742 = vmatmul.mubr.msk.f32.vlgmr.msra.gmra.mrb[24].mxu1 %vm517_vm4, %v1839_v23 }
 0xec7   :  { %5209 = vmatpush3.bf16.msra.mxu1 %v5957_v26  ;;  %4763 = vmatprep.mubr.msk.f32.mxu1 %vm5663_vm0, %v5664_v9 }
 0xec8   :  { %5210 = vmatprep.subr.bf16.mxu1 %v5662_v50 }
 0xecb   :  { %5212 = vmatpush3.bf16.msra.mxu1 %v5960_v29 }
 0xecc   :  { %5219 = vmatprep.subr.bf16.mxu1 %v5662_v50 }
 0xed5   :  { %v2184_v25 = vpop.permute.xlu0 %2183 }
 0xed6   :  { %4764 = vmatmul.mubr.msk.f32.vlgmr.msra.gmra.mrb[26].mxu1 %vm517_vm4, %v2184_v25 }
 0xed7   :  { %5221 = vmatpush3.bf16.msra.mxu1 %v5884_v22  ;;  %4785 = vmatprep.mubr.msk.f32.mxu1 %vm5663_vm0, %v5664_v9 }
 0xed8   :  { %5222 = vmatprep.subr.bf16.mxu1 %v5662_v50 }
 0xedb   :  { %5224 = vmatpush3.bf16.msra.mxu1 %v5887_v24  ;;  %v2525_v28 = vpop.permute.xlu1 %2524 }
 0xedc   :  { %5231 = vmatprep.subr.bf16.mxu1 %v5662_v50 }
 0xede   :  { %4786 = vmatmul.mubr.msk.f32.vlgmr.msra.gmra.mrb[28].mxu1 %vm517_vm4, %v2184_v25 }
 0xedf   :  { %5233 = vmatpush3.bf16.msra.mxu1 %v5903_v34  ;;  %4807 = vmatprep.mubr.msk.f32.mxu1 %vm5663_vm0, %v5664_v9 }
 0xee0   :  { %5234 = vmatprep.subr.bf16.mxu1 %v5662_v50 }
 0xee3   :  { %5236 = vmatpush3.bf16.msra.mxu1 %v5908_v37 }
 0xee4   :  { %5243 = vmatprep.subr.bf16.mxu1 %v5662_v50 }
 0xee6   :  { %4808 = vmatmul.mubr.msk.f32.vlgmr.msra.gmra.mrb[30].mxu1 %vm517_vm4, %v2525_v28 }
 0xee7   :  { %5245 = vmatpush3.bf16.msra.mxu1 %v5844_v56  ;;  %4829 = vmatprep.mubr.msk.f32.mxu1 %vm5663_vm0, %v5664_v9 }
 0xee8   :  { %5246 = vmatprep.subr.bf16.mxu1 %v5662_v50 }
 0xeeb   :  { %5248 = vmatpush3.bf16.msra.mxu1 %v5847_v2 }
 0xeec   :  { %5255 = vmatprep.subr.bf16.mxu1 %v5662_v50 }
 0xeee   :  { %4830 = vmatmul.mubr.msk.f32.vlgmr.msra.gmra.mrb[32].mxu1 %vm517_vm4, %v2525_v28  ;;  %v2946_v28 = vrot.slane %v6173_v51, 6 }
 0xeef   :  { %5257 = vmatpush3.bf16.msra.mxu1 %v5891_v27  ;;  %4851 = vmatprep.mubr.msk.f32.mxu1 %vm5663_vm0, %v5664_v9 }
 0xef0   :  { %5258 = vmatprep.subr.bf16.mxu1 %v5662_v50 }
 0xef3   :  { %5260 = vmatpush3.bf16.msra.mxu1 %v5897_v31 }
 0xef4   :  { %5267 = vmatprep.subr.bf16.mxu1 %v5662_v50 }
 0xf99   :  { %v2050_v18 = vpop.f32.mrb[24].mxu1 }
 0xf9a   :  { %v4743_v32 = vpop.f32.mrb[25].mxu1 }
 0xfa9   :  { %v2253_v33 = vpop.f32.mrb[26].mxu1 }
 0xfaa   :  { %v2254_v35 = vadd.f32 %v2253_v33, %v2050_v18  ;;  %v4765_v38 = vpop.f32.mrb[27].mxu1 }
 0xfac   :  { %v2257_v39 = vadd.f32 %v5999_v40, %v2254_v35 }
 0xfae   :  { %v2258_v41 = vmul.f32 %v2257_v39, %v5871_v3 }
 0xfb0   :  { %5407 = vtanh.f32 %v2258_v41 }
 0xfb1   :  { %v2421_v63 = vpop.f32.mrb[28].mxu1 }
 0xfb2   :  { %v4787_v44 = vpop.f32.mrb[29].mxu1 }
 0xfb9   :  { %v2594_v46 = vpop.f32.mrb[30].mxu1 }
 0xfba   :  { %v5408_v14 = vpop.eup %5407  ;;  %v2595_v47 = vadd.f32 %v2594_v46, %v2421_v63  ;;  %v4809_v48 = vpop.f32.mrb[31].mxu1 }
 0xfbb   :  { %v2260_v49 = vmul.f32 0.5, %v5408_v14 }
 0xfbc   :  { %v2598_v19 = vadd.f32 %v5935_v45, %v2595_v47 }
 0xfbd   :  { %v2261_v52 = vadd.f32 0.5, %v2260_v49 }
 0xfbe   :  { %v2599_v53 = vmul.f32 %v2598_v19, %v5871_v3 }
 0xfbf   :  { %v2262_v54 = vsel %vm5863_vm3, %v5408_v14, %v2261_v52 }
 0xfc0   :  { %5409 = vtanh.f32 %v2599_v53  ;;  %2265 = vrot.lane.b32.xlu0 %v2262_v54, %s5666_s3  ;;  %v2263_v16 = vmul.f32 %v2262_v54, %v6164_v43 }
 0xfc1   :  { %v2790_v57 = vpop.f32.mrb[32].mxu1 }
 0xfc2   :  { %v2937_v58 = vrot.slane %v2790_v57, 6  ;;  %v4831_v59 = vpop.f32.mrb[33].mxu1 }
 0xfc4   :  { %v2939_v42 = vadd.f32 %v2937_v58, %v5875_v8 }
 0xfc6   :  { %v2940_v60 = vmul.f32 %v2939_v42, %v5871_v3 }
 0xfc8   :  { %5411 = vtanh.f32 %v2940_v60 }
 0xfca   :  { %v5410_v36 = vpop.eup %5409 }
 0xfcb   :  { %v2601_v61 = vmul.f32 0.5, %v5410_v36 }
 0xfcd   :  { %v2602_v45 = vadd.f32 0.5, %v2601_v61 }
 0xfcf   :  { %v2603_v0 = vsel %vm5863_vm3, %v5410_v36, %v2602_v45 }
 0xfd0   :  { %2606 = vrot.lane.b32.xlu1 %v2603_v0, %s5666_s3  ;;  %v2604_v21 = vmul.f32 %v2603_v0, %v6169_v7 }
 0xfd2   :  { %v5412_v1 = vpop.eup %5411 }
 0xfd3   :  { %v2942_v4 = vmul.f32 0.5, %v5412_v1 }
 0xfd5   :  { %v2943_v5 = vadd.f32 0.5, %v2942_v4 }
 0xfd7   :  { %v2944_v6 = vsel %vm5863_vm3, %v5412_v1, %v2943_v5 }
 0xfd8   :  { %2950 = vrot.lane.b32.xlu0 %v2944_v6, %s5666_s3  ;;  %v2948_v18 = vmul.f32 %v2946_v28, %v2944_v6 }
0x1032   :  { %v2266_v10 = vpop.permute.xlu0 %2265 }
0x1033   :  { %v2268_v11 = vmul.f32 %v2266_v10, %v2262_v54 }
0x1035   :  { %2270 = vrot.lane.b32.xlu1 %v2268_v11, %s5667_s16 }
0x1042   :  { %v2607_v12 = vpop.permute.xlu1 %2606 }
0x1043   :  { %v2609_v13 = vmul.f32 %v2607_v12, %v2603_v0 }
0x1045   :  { %2611 = vrot.lane.b32.xlu0 %v2609_v13, %s5667_s16 }
0x104a   :  { %v2951_v15 = vpop.permute.xlu0 %2950 }
0x104b   :  { %v2953_v55 = vmul.f32 %v2951_v15, %v2944_v6 }
0x104d   :  { %2955 = vrot.lane.b32.xlu1 %v2953_v55, %s5667_s16 }
0x10a7   :  { %v2271_v17 = vpop.permute.xlu1 %2270 }
0x10a8   :  { %v6236_v30 = vadd.f32 %v2271_v17, %v2263_v16 }
0x10aa   :  { %5413 = vtanh.f32 %v6236_v30 }
0x10b4   :  { %v5414_v20 = vpop.eup %5413 }
0x10b5   :  { %2276 = vrot.lane.b32.xlu0 %v5414_v20, %s5666_s3 }
0x10b7   :  { %v2612_v23 = vpop.permute.xlu0 %2611 }
0x10b8   :  { %v6241_v25 = vadd.f32 %v2612_v23, %v2604_v21 }
0x10ba   :  { %5415 = vtanh.f32 %v6241_v25 }
0x10bf   :  { %v2956_v32 = vpop.permute.xlu1 %2955 }
0x10c0   :  { %v6245_v43 = vadd.f32 %v2956_v32, %v2948_v18 }
0x10c2   :  { %5417 = vtanh.f32 %v6245_v43 }
0x10c4   :  { %v5416_v33 = vpop.eup %5415 }
0x10c5   :  { %2617 = vrot.lane.b32.xlu1 %v5416_v33, %s5666_s3 }
0x10cc   :  { %v5418_v35 = vpop.eup %5417 }
0x10cd   :  { %2961 = vrot.lane.b32.xlu0 %v5418_v35, %s5666_s3 }
0x1127   :  { %v2277_v7 = vpop.permute.xlu0 %2276 }
0x1128   :  { %v2279_v38 = vmul.f32 %v2277_v7, %v2262_v54 }
0x112a   :  { %2281 = vrot.lane.b32.xlu1 %v2279_v38, %s5667_s16 }
0x1137   :  { %v2618_v39 = vpop.permute.xlu1 %2617 }
0x1138   :  { %v2620_v41 = vmul.f32 %v2618_v39, %v2603_v0  ;;  %v6294_v0 = vld [vmem:[%s6499_s6] ss:$0 sm:$0xff] }
0x113a   :  { %2622 = vrot.lane.b32.xlu0 %v2620_v41, %s5667_s16 }
0x113f   :  { %v2962_v51 = vpop.permute.xlu0 %2961 }
0x1140   :  { %v2964_v63 = vmul.f32 %v2962_v51, %v2944_v6 }
0x1142   :  { %v2966_v44 = vrot.slane %v2964_v63, 2 }
0x1144   :  { %2967 = vrot.lane.b32.xlu1 %v2966_v44, %s5667_s16 }
0x119c   :  { %v2282_v46 = vpop.permute.xlu1 %2281 }
0x119d   :  { %2284 = vst.msk [vmem:[#allocation2 + $0x6] sm:$0x3] %vm954_vm5, %v2282_v46  ;;  %4797 = vmatmul.mubr.msk.f32.vlgmr.msra.gmra.mrb[26].mxu0 %vm517_vm4, %v2282_v46 }
0x119e   :  { %5239 = vmatpush3.bf16.msra.mxu0 %v5957_v26  ;;  %4818 = vmatprep.mubr.msk.f32.mxu0 %vm5663_vm0, %v5664_v9 }
0x119f   :  { %5240 = vmatprep.subr.bf16.mxu0 %v5662_v50 }
0x11a2   :  { %5242 = vmatpush3.bf16.msra.mxu0 %v5960_v29 }
0x11a3   :  { %5249 = vmatprep.subr.bf16.mxu0 %v5662_v50 }
0x11ac   :  { %v2623_v14 = vpop.permute.xlu0 %2622 }
0x11ad   :  { %4819 = vmatmul.mubr.msk.f32.vlgmr.msra.gmra.mrb[28].mxu0 %vm517_vm4, %v2623_v14 }
0x11ae   :  { %5251 = vmatpush3.bf16.msra.mxu0 %v5884_v22  ;;  %4840 = vmatprep.mubr.msk.f32.mxu0 %vm5663_vm0, %v5664_v9 }
0x11af   :  { %5252 = vmatprep.subr.bf16.mxu0 %v5662_v50 }
0x11b2   :  { %5254 = vmatpush3.bf16.msra.mxu0 %v5887_v24 }
0x11b3   :  { %5261 = vmatprep.subr.bf16.mxu0 %v5662_v50 }
0x11b5   :  { %4841 = vmatmul.mubr.msk.f32.vlgmr.msra.gmra.mrb[30].mxu0 %vm517_vm4, %v2623_v14 }
0x11b6   :  { %5263 = vmatpush3.bf16.msra.mxu0 %v5903_v34  ;;  %4862 = vmatprep.mubr.msk.f32.mxu0 %vm5663_vm0, %v5664_v9  ;;  %v2968_v47 = vpop.permute.xlu1 %2967 }
0x11b7   :  { %5264 = vmatprep.subr.bf16.mxu0 %v5662_v50 }
0x11ba   :  { %5266 = vmatpush3.bf16.msra.mxu0 %v5908_v37 }
0x11bb   :  { %5273 = vmatprep.subr.bf16.mxu0 %v5662_v50 }
0x11bd   :  { %4863 = vmatmul.mubr.msk.f32.vlgmr.msra.gmra.mrb[32].mxu0 %vm517_vm4, %v2968_v47 }
0x11be   :  { %5275 = vmatpush3.bf16.msra.mxu0 %v5844_v56  ;;  %4884 = vmatprep.mubr.msk.f32.mxu0 %vm5663_vm0, %v5664_v9 }
0x11bf   :  { %5276 = vmatprep.subr.bf16.mxu0 %v5662_v50 }
0x11c2   :  { %5278 = vmatpush3.bf16.msra.mxu0 %v5847_v2 }
0x11c3   :  { %5285 = vmatprep.subr.bf16.mxu0 %v5662_v50 }
0x11c5   :  { %4885 = vmatmul.mubr.msk.f32.vlgmr.msra.gmra.mrb[34].mxu0 %vm517_vm4, %v2968_v47  ;;  %v3389_v47 = vrot.slane %v6245_v43, 6 }
0x11c6   :  { %5287 = vmatpush3.bf16.msra.mxu0 %v5891_v27  ;;  %4906 = vmatprep.mubr.msk.f32.mxu0 %vm5663_vm0, %v5664_v9 }
0x11c7   :  { %5288 = vmatprep.subr.bf16.mxu0 %v5662_v50 }
0x11ca   :  { %5290 = vmatpush3.bf16.msra.mxu0 %v5897_v31 }
0x11cb   :  { %5297 = vmatprep.subr.bf16.mxu0 %v5662_v50 }
0x1270   :  { %v2493_v48 = vpop.f32.mrb[26].mxu0 }
0x1271   :  { %v4798_v49 = vpop.f32.mrb[27].mxu0 }
0x1280   :  { %v2692_v19 = vpop.f32.mrb[28].mxu0 }
0x1281   :  { %v2693_v52 = vadd.f32 %v2692_v19, %v2493_v48  ;;  %v4820_v53 = vpop.f32.mrb[29].mxu0 }
0x1283   :  { %v2696_v54 = vadd.f32 %v5999_v40, %v2693_v52 }
0x1285   :  { %v2697_v57 = vmul.f32 %v2696_v54, %v5871_v3 }
0x1287   :  { %5419 = vtanh.f32 %v2697_v57 }
0x1288   :  { %v2860_v58 = vpop.f32.mrb[30].mxu0 }
0x1289   :  { %v4842_v59 = vpop.f32.mrb[31].mxu0 }
0x1290   :  { %v3037_v42 = vpop.f32.mrb[32].mxu0 }
0x1291   :  { %v5420_v60 = vpop.eup %5419  ;;  %v3038_v36 = vadd.f32 %v3037_v42, %v2860_v58  ;;  %v4864_v61 = vpop.f32.mrb[33].mxu0 }
0x1292   :  { %v2699_v45 = vmul.f32 0.5, %v5420_v60 }
0x1293   :  { %v3041_v1 = vadd.f32 %v6294_v0, %v3038_v36 }
0x1294   :  { %v2700_v4 = vadd.f32 0.5, %v2699_v45 }
0x1295   :  { %v3042_v40 = vmul.f32 %v3041_v1, %v5871_v3 }
0x1296   :  { %v2701_v5 = vsel %vm5863_vm3, %v5420_v60, %v2700_v4  ;;  %v6369_v4 = vld [vmem:[%s6502_s9] ss:$0 sm:$0xff] }
0x1297   :  { %5421 = vtanh.f32 %v3042_v40  ;;  %2704 = vrot.lane.b32.xlu0 %v2701_v5, %s5666_s3  ;;  %v2702_v39 = vmul.f32 %v2701_v5, %v6236_v30 }
0x1298   :  { %v3233_v6 = vpop.f32.mrb[34].mxu0 }
0x1299   :  { %v3380_v10 = vrot.slane %v3233_v6, 4  ;;  %v4886_v11 = vpop.f32.mrb[35].mxu0 }
0x129b   :  { %v3382_v12 = vadd.f32 %v3380_v10, %v5875_v8 }
0x129d   :  { %v3383_v13 = vmul.f32 %v3382_v12, %v5871_v3 }
0x129f   :  { %5423 = vtanh.f32 %v3383_v13 }
0x12a1   :  { %v5422_v15 = vpop.eup %5421 }
0x12a2   :  { %v3044_v55 = vmul.f32 0.5, %v5422_v15 }
0x12a4   :  { %v3045_v16 = vadd.f32 0.5, %v3044_v55 }
0x12a6   :  { %v3046_v17 = vsel %vm5863_vm3, %v5422_v15, %v3045_v16 }
0x12a7   :  { %3049 = vrot.lane.b32.xlu1 %v3046_v17, %s5666_s3  ;;  %v3047_v44 = vmul.f32 %v3046_v17, %v6241_v25 }
0x12a9   :  { %v5424_v20 = vpop.eup %5423 }
0x12aa   :  { %v3385_v21 = vmul.f32 0.5, %v5424_v20 }
0x12ac   :  { %v3386_v23 = vadd.f32 0.5, %v3385_v21 }
0x12ae   :  { %v3387_v28 = vsel %vm5863_vm3, %v5424_v20, %v3386_v23 }
0x12af   :  { %3393 = vrot.lane.b32.xlu0 %v3387_v28, %s5666_s3  ;;  %v3391_v48 = vmul.f32 %v3389_v47, %v3387_v28 }
0x1309   :  { %v2705_v18 = vpop.permute.xlu0 %2704 }
0x130a   :  { %v2707_v32 = vmul.f32 %v2705_v18, %v2701_v5 }
0x130c   :  { %2709 = vrot.lane.b32.xlu1 %v2707_v32, %s5667_s16 }
0x1319   :  { %v3050_v33 = vpop.permute.xlu1 %3049 }
0x131a   :  { %v3052_v35 = vmul.f32 %v3050_v33, %v3046_v17 }
0x131c   :  { %3054 = vrot.lane.b32.xlu0 %v3052_v35, %s5667_s16 }
0x1321   :  { %v3394_v7 = vpop.permute.xlu0 %3393 }
0x1322   :  { %v3396_v38 = vmul.f32 %v3394_v7, %v3387_v28 }
0x1324   :  { %3398 = vrot.lane.b32.xlu1 %v3396_v38, %s5667_s16 }
0x137e   :  { %v2710_v41 = vpop.permute.xlu1 %2709 }
0x137f   :  { %v6313_v51 = vadd.f32 %v2710_v41, %v2702_v39 }
0x1381   :  { %5425 = vtanh.f32 %v6313_v51 }
0x138b   :  { %v5426_v63 = vpop.eup %5425 }
0x138c   :  { %2715 = vrot.lane.b32.xlu0 %v5426_v63, %s5666_s3 }
0x138e   :  { %v3055_v46 = vpop.permute.xlu0 %3054 }
0x138f   :  { %v6318_v14 = vadd.f32 %v3055_v46, %v3047_v44 }
0x1391   :  { %5427 = vtanh.f32 %v6318_v14 }
0x1396   :  { %v3399_v49 = vpop.permute.xlu1 %3398 }
0x1397   :  { %v6322_v30 = vadd.f32 %v3399_v49, %v3391_v48 }
0x1399   :  { %5429 = vtanh.f32 %v6322_v30 }
0x139b   :  { %v5428_v19 = vpop.eup %5427 }
0x139c   :  { %3060 = vrot.lane.b32.xlu1 %v5428_v19, %s5666_s3 }
0x13a3   :  { %v5430_v52 = vpop.eup %5429 }
0x13a4   :  { %3404 = vrot.lane.b32.xlu0 %v5430_v52, %s5666_s3 }
0x13fe   :  { %v2716_v25 = vpop.permute.xlu0 %2715 }
0x13ff   :  { %v2718_v53 = vmul.f32 %v2716_v25, %v2701_v5 }
0x1401   :  { %2720 = vrot.lane.b32.xlu1 %v2718_v53, %s5667_s16 }
0x140e   :  { %v3061_v54 = vpop.permute.xlu1 %3060 }
0x140f   :  { %v3063_v57 = vmul.f32 %v3061_v54, %v3046_v17 }
0x1411   :  { %3065 = vrot.lane.b32.xlu0 %v3063_v57, %s5667_s16 }
0x1416   :  { %v3405_v43 = vpop.permute.xlu0 %3404 }
0x1417   :  { %v3407_v58 = vmul.f32 %v3405_v43, %v3387_v28 }
0x1419   :  { %v3409_v59 = vrot.slane %v3407_v58, 4  ;;  %v3832_v58 = vrot.slane %v6322_v30, 6 }
0x141b   :  { %3410 = vrot.lane.b32.xlu1 %v3409_v59, %s5667_s16 }
0x1473   :  { %v2721_v42 = vpop.permute.xlu1 %2720 }
0x1474   :  { %2723 = vst.msk [vmem:[#allocation2 + $0x8] sm:$0x3] %vm954_vm5, %v2721_v42  ;;  %4852 = vmatmul.mubr.msk.f32.vlgmr.msra.gmra.mrb[34].mxu1 %vm517_vm4, %v2721_v42 }
0x1475   :  { %5269 = vmatpush3.bf16.msra.mxu1 %v5957_v26  ;;  %4873 = vmatprep.mubr.msk.f32.mxu1 %vm5663_vm0, %v5664_v9 }
0x1476   :  { %5270 = vmatprep.subr.bf16.mxu1 %v5662_v50 }
0x1479   :  { %5272 = vmatpush3.bf16.msra.mxu1 %v5960_v29 }
0x147a   :  { %5279 = vmatprep.subr.bf16.mxu1 %v5662_v50 }
0x1483   :  { %v3066_v60 = vpop.permute.xlu0 %3065 }
0x1484   :  { %4874 = vmatmul.mubr.msk.f32.vlgmr.msra.gmra.mrb[36].mxu1 %vm517_vm4, %v3066_v60 }
0x1485   :  { %5281 = vmatpush3.bf16.msra.mxu1 %v5884_v22  ;;  %4895 = vmatprep.mubr.msk.f32.mxu1 %vm5663_vm0, %v5664_v9 }
0x1486   :  { %5282 = vmatprep.subr.bf16.mxu1 %v5662_v50 }
0x1489   :  { %5284 = vmatpush3.bf16.msra.mxu1 %v5887_v24 }
0x148a   :  { %5291 = vmatprep.subr.bf16.mxu1 %v5662_v50 }
0x148c   :  { %4896 = vmatmul.mubr.msk.f32.vlgmr.msra.gmra.mrb[38].mxu1 %vm517_vm4, %v3066_v60 }
0x148d   :  { %5293 = vmatpush3.bf16.msra.mxu1 %v5903_v34  ;;  %4917 = vmatprep.mubr.msk.f32.mxu1 %vm5663_vm0, %v5664_v9  ;;  %v3411_v36 = vpop.permute.xlu1 %3410 }
0x148e   :  { %5294 = vmatprep.subr.bf16.mxu1 %v5662_v50 }
0x1491   :  { %5296 = vmatpush3.bf16.msra.mxu1 %v5908_v37 }
0x1492   :  { %5303 = vmatprep.subr.bf16.mxu1 %v5662_v50 }
0x1494   :  { %4918 = vmatmul.mubr.msk.f32.vlgmr.msra.gmra.mrb[40].mxu1 %vm517_vm4, %v3411_v36 }
0x1495   :  { %5305 = vmatpush3.bf16.msra.mxu1 %v5844_v56  ;;  %4939 = vmatprep.mubr.msk.f32.mxu1 %vm5663_vm0, %v5664_v9 }
0x1496   :  { %5306 = vmatprep.subr.bf16.mxu1 %v5662_v50 }
0x1499   :  { %5308 = vmatpush3.bf16.msra.mxu1 %v5847_v2 }
0x149a   :  { %5315 = vmatprep.subr.bf16.mxu1 %v5662_v50 }
0x149c   :  { %4940 = vmatmul.mubr.msk.f32.vlgmr.msra.gmra.mrb[42].mxu1 %vm517_vm4, %v3411_v36 }
0x149d   :  { %5317 = vmatpush3.bf16.msra.mxu1 %v5891_v27  ;;  %4961 = vmatprep.mubr.msk.f32.mxu1 %vm5663_vm0, %v5664_v9 }
0x149e   :  { %5318 = vmatprep.subr.bf16.mxu1 %v5662_v50 }
0x14a1   :  { %5320 = vmatpush3.bf16.msra.mxu1 %v5897_v31 }
0x14a2   :  { %5327 = vmatprep.subr.bf16.mxu1 %v5662_v50 }
0x1547   :  { %v2932_v56 = vpop.f32.mrb[34].mxu1 }
0x1548   :  { %v4853_v61 = vpop.f32.mrb[35].mxu1 }
0x1557   :  { %v3135_v45 = vpop.f32.mrb[36].mxu1 }
0x1558   :  { %v3136_v1 = vadd.f32 %v3135_v45, %v2932_v56  ;;  %v4875_v2 = vpop.f32.mrb[37].mxu1 }
0x155a   :  { %v3139_v27 = vadd.f32 %v6369_v4, %v3136_v1 }
0x155c   :  { %v3140_v40 = vmul.f32 %v3139_v27, %v5871_v3 }
0x155e   :  { %5431 = vtanh.f32 %v3140_v40 }
0x155f   :  { %v3303_v5 = vpop.f32.mrb[38].mxu1 }
0x1560   :  { %v4897_v6 = vpop.f32.mrb[39].mxu1 }
0x1567   :  { %v3480_v31 = vpop.f32.mrb[40].mxu1 }
0x1568   :  { %v5432_v10 = vpop.eup %5431  ;;  %v3481_v11 = vadd.f32 %v3480_v31, %v3303_v5  ;;  %v4919_v12 = vpop.f32.mrb[41].mxu1  ;;  %v4053_v5 = vld [vmem:[#allocation2] sm:$0xff] }
0x1569   :  { %v3142_v13 = vmul.f32 0.5, %v5432_v10 }
0x156a   :  { %v3484_v15 = vadd.f32 %v6294_v0, %v3481_v11 }
0x156b   :  { %v3143_v55 = vadd.f32 0.5, %v3142_v13 }
0x156c   :  { %v3485_v16 = vmul.f32 %v3484_v15, %v5871_v3 }
0x156d   :  { %v3144_v17 = vsel %vm5863_vm3, %v5432_v10, %v3143_v55 }
0x156e   :  { %5433 = vtanh.f32 %v3485_v16  ;;  %3147 = vrot.lane.b32.xlu0 %v3144_v17, %s5666_s3  ;;  %v3145_v19 = vmul.f32 %v3144_v17, %v6313_v51 }
0x156f   :  { %v3676_v20 = vpop.f32.mrb[42].mxu1 }
0x1570   :  { %v3823_v21 = vrot.slane %v3676_v20, 2  ;;  %v4941_v23 = vpop.f32.mrb[43].mxu1 }
0x1572   :  { %v3825_v28 = vadd.f32 %v3823_v21, %v5875_v8 }
0x1574   :  { %v3826_v18 = vmul.f32 %v3825_v28, %v5871_v3 }
0x1576   :  { %5435 = vtanh.f32 %v3826_v18 }
0x1578   :  { %v5434_v32 = vpop.eup %5433 }
0x1579   :  { %v3487_v33 = vmul.f32 0.5, %v5434_v32 }
0x157b   :  { %v3488_v35 = vadd.f32 0.5, %v3487_v33 }
0x157d   :  { %v3489_v7 = vsel %vm5863_vm3, %v5434_v32, %v3488_v35 }
0x157e   :  { %3492 = vrot.lane.b32.xlu1 %v3489_v7, %s5666_s3  ;;  %v3490_v54 = vmul.f32 %v3489_v7, %v6318_v14 }
0x1580   :  { %v5436_v38 = vpop.eup %5435 }
0x1581   :  { %v3828_v39 = vmul.f32 0.5, %v5436_v38 }
0x1583   :  { %v3829_v41 = vadd.f32 0.5, %v3828_v39 }
0x1585   :  { %v3830_v63 = vsel %vm5863_vm3, %v5436_v38, %v3829_v41 }
0x1586   :  { %3836 = vrot.lane.b32.xlu0 %v3830_v63, %s5666_s3  ;;  %v3834_v59 = vmul.f32 %v3832_v58, %v3830_v63 }
0x15e0   :  { %v3148_v8 = vpop.permute.xlu0 %3147 }
0x15e1   :  { %v3150_v44 = vmul.f32 %v3148_v8, %v3144_v17 }
0x15e3   :  { %3152 = vrot.lane.b32.xlu1 %v3150_v44, %s5667_s16 }
0x15f0   :  { %v3493_v46 = vpop.permute.xlu1 %3492 }
0x15f1   :  { %v3495_v47 = vmul.f32 %v3493_v46, %v3489_v7 }
0x15f3   :  { %3497 = vrot.lane.b32.xlu0 %v3495_v47, %s5667_s16 }
0x15f8   :  { %v3837_v48 = vpop.permute.xlu0 %3836 }
0x15f9   :  { %v3839_v49 = vmul.f32 %v3837_v48, %v3830_v63 }
0x15fb   :  { %3841 = vrot.lane.b32.xlu1 %v3839_v49, %s5667_s16 }
0x1655   :  { %v3153_v52 = vpop.permute.xlu1 %3152 }
0x1656   :  { %v6390_v25 = vadd.f32 %v3153_v52, %v3145_v19 }
0x1658   :  { %5437 = vtanh.f32 %v6390_v25 }
0x1662   :  { %v5438_v53 = vpop.eup %5437 }
0x1663   :  { %3158 = vrot.lane.b32.xlu0 %v5438_v53, %s5666_s3 }
0x1665   :  { %v3498_v57 = vpop.permute.xlu0 %3497 }
0x1666   :  { %v6395_v43 = vadd.f32 %v3498_v57, %v3490_v54 }
0x1668   :  { %5439 = vtanh.f32 %v6395_v43 }
0x166d   :  { %v3842_v42 = vpop.permute.xlu1 %3841 }
0x166e   :  { %v3844_v51 = vadd.f32 %v3842_v42, %v3834_v59 }
0x1670   :  { %5441 = vtanh.f32 %v3844_v51 }
0x1672   :  { %v5440_v60 = vpop.eup %5439 }
0x1673   :  { %3503 = vrot.lane.b32.xlu1 %v5440_v60, %s5666_s3 }
0x167a   :  { %v5442_v36 = vpop.eup %5441 }
0x167b   :  { %3847 = vrot.lane.b32.xlu0 %v5442_v36, %s5666_s3 }
0x16d5   :  { %v3159_v56 = vpop.permute.xlu0 %3158 }
0x16d6   :  { %v3161_v61 = vmul.f32 %v3159_v56, %v3144_v17 }
0x16d8   :  { %3163 = vrot.lane.b32.xlu1 %v3161_v61, %s5667_s16 }
0x16e5   :  { %v3504_v14 = vpop.permute.xlu1 %3503 }
0x16e6   :  { %v3506_v45 = vmul.f32 %v3504_v14, %v3489_v7 }
0x16e8   :  { %3508 = vrot.lane.b32.xlu0 %v3506_v45, %s5667_s16 }
0x16ed   :  { %v3848_v1 = vpop.permute.xlu0 %3847 }
0x16ee   :  { %v3850_v30 = vmul.f32 %v3848_v1, %v3830_v63 }
0x16f0   :  { %v3852_v2 = vrot.slane %v3850_v30, 6 }
0x16f2   :  { %3853 = vrot.lane.b32.xlu1 %v3852_v2, %s5667_s16 }
0x174a   :  { %v3164_v27 = vpop.permute.xlu1 %3163 }
0x174b   :  { %3166 = vst.msk [vmem:[#allocation2 + $0xa] sm:$0x3] %vm954_vm5, %v3164_v27  ;;  %4907 = vmatmul.mubr.msk.f32.vlgmr.msra.gmra.mrb[36].mxu0 %vm517_vm4, %v3164_v27  ;;  %v4057_v27 = vld [vmem:[%s6503_s10 + $0x10] sm:$0xff] }
0x174c   :  { %5299 = vmatpush3.bf16.msra.mxu0 %v5957_v26  ;;  %4928 = vmatprep.mubr.msk.f32.mxu0 %vm5663_vm0, %v5664_v9 }
0x174d   :  { %5300 = vmatprep.subr.bf16.mxu0 %v5662_v50 }
0x1750   :  { %5302 = vmatpush3.bf16.msra.mxu0 %v5960_v29 }
0x1751   :  { %5309 = vmatprep.subr.bf16.mxu0 %v5662_v50 }
0x175a   :  { %v3509_v40 = vpop.permute.xlu0 %3508 }
0x175b   :  { %4929 = vmatmul.mubr.msk.f32.vlgmr.msra.gmra.mrb[38].mxu0 %vm517_vm4, %v3509_v40 }
0x175c   :  { %5311 = vmatpush3.bf16.msra.mxu0 %v5884_v22  ;;  %4950 = vmatprep.mubr.msk.f32.mxu0 %vm5663_vm0, %v5664_v9 }
0x175d   :  { %5312 = vmatprep.subr.bf16.mxu0 %v5662_v50 }
0x1760   :  { %5314 = vmatpush3.bf16.msra.mxu0 %v5887_v24 }
0x1761   :  { %5321 = vmatprep.subr.bf16.mxu0 %v5662_v50 }
0x1763   :  { %4951 = vmatmul.mubr.msk.f32.vlgmr.msra.gmra.mrb[40].mxu0 %vm517_vm4, %v3509_v40  ;;  %v4058_v40 = vld [vmem:[%s6503_s10 + $0x18] sm:$0xff] }
0x1764   :  { %5323 = vmatpush3.bf16.msra.mxu0 %v5903_v34  ;;  %4972 = vmatprep.mubr.msk.f32.mxu0 %vm5663_vm0, %v5664_v9  ;;  %v3854_v22 = vpop.permute.xlu1 %3853 }
0x1765   :  { %5324 = vmatprep.subr.bf16.mxu0 %v5662_v50 }
0x1768   :  { %5326 = vmatpush3.bf16.msra.mxu0 %v5908_v37 }
0x176b   :  { %4973 = vmatmul.mubr.msk.f32.vlgmr.msra.gmra.mrb[42].mxu0 %vm517_vm4, %v3854_v22  ;;  %v5337_v22 = vpack.c.bf16 %v4058_v40, %v4057_v27 }
0x176c   :  { %4994 = vmatprep.mubr.msk.f32.mxu0 %vm517_vm4, %v4053_v5 }
0x181e   :  { %v3375_v24 = vpop.f32.mrb[36].mxu0 }
0x181f   :  { %v4908_v6 = vpop.f32.mrb[37].mxu0 }
0x182e   :  { %v3578_v31 = vpop.f32.mrb[38].mxu0 }
0x182f   :  { %v3579_v10 = vadd.f32 %v3578_v31, %v3375_v24  ;;  %v4930_v11 = vpop.f32.mrb[39].mxu0 }
0x1831   :  { %v3582_v34 = vadd.f32 %v6369_v4, %v3579_v10  ;;  %v4221_v10 = vld [vmem:[%s6504_s11] ss:$0 sm:$0xff] }
0x1833   :  { %v3583_v12 = vmul.f32 %v3582_v34, %v5871_v3 }
0x1835   :  { %5443 = vtanh.f32 %v3583_v12 }
0x1836   :  { %v3746_v13 = vpop.f32.mrb[40].mxu0 }
0x1837   :  { %v4952_v15 = vpop.f32.mrb[41].mxu0 }
0x183e   :  { %v3923_v55 = vpop.f32.mrb[42].mxu0 }
0x183f   :  { %v5444_v37 = vpop.eup %5443  ;;  %v3924_v16 = vadd.f32 %v3923_v55, %v3746_v13  ;;  %v4974_v17 = vpop.f32.mrb[43].mxu0 }
0x1840   :  { %v3585_v20 = vmul.f32 0.5, %v5444_v37 }
0x1841   :  { %v3927_v21 = vadd.f32 %v6294_v0, %v3924_v16 }
0x1842   :  { %v3586_v23 = vadd.f32 0.5, %v3585_v20 }
0x1843   :  { %v3928_v28 = vmul.f32 %v3927_v21, %v5871_v3 }
0x1844   :  { %v3587_v18 = vsel %vm5863_vm3, %v5444_v37, %v3586_v23 }
0x1845   :  { %5445 = vtanh.f32 %v3928_v28  ;;  %3590 = vrot.lane.b32.xlu0 %v3587_v18, %s5666_s3  ;;  %v3588_v63 = vmul.f32 %v3587_v18, %v6390_v25 }
0x184f   :  { %v5446_v32 = vpop.eup %5445 }
0x1850   :  { %v3930_v33 = vmul.f32 0.5, %v5446_v32 }
0x1852   :  { %v3931_v35 = vadd.f32 0.5, %v3930_v33 }
0x1854   :  { %v3932_v7 = vsel %vm5863_vm3, %v5446_v32, %v3931_v35 }
0x1855   :  { %3935 = vrot.lane.b32.xlu1 %v3932_v7, %s5666_s3  ;;  %v3933_v47 = vmul.f32 %v3932_v7, %v6395_v43 }
0x18b7   :  { %v3591_v38 = vpop.permute.xlu0 %3590 }
0x18b8   :  { %v3593_v39 = vmul.f32 %v3591_v38, %v3587_v18 }
0x18ba   :  { %3595 = vrot.lane.b32.xlu0 %v3593_v39, %s5667_s16 }
0x18c7   :  { %v3936_v0 = vpop.permute.xlu1 %3935 }
0x18c8   :  { %v3938_v41 = vmul.f32 %v3936_v0, %v3932_v7 }
0x18ca   :  { %3940 = vrot.lane.b32.xlu1 %v3938_v41, %s5667_s16 }
0x192c   :  { %v3596_v8 = vpop.permute.xlu0 %3595 }
0x192d   :  { %v3598_v44 = vadd.f32 %v3596_v8, %v3588_v63 }
0x192f   :  { %5447 = vtanh.f32 %v3598_v44 }
0x1939   :  { %v5448_v46 = vpop.eup %5447 }
0x193a   :  { %3601 = vrot.lane.b32.xlu0 %v5448_v46, %s5666_s3 }
0x193c   :  { %v3941_v48 = vpop.permute.xlu1 %3940 }
0x193d   :  { %v3943_v49 = vadd.f32 %v3941_v48, %v3933_v47 }
0x193f   :  { %5449 = vtanh.f32 %v3943_v49 }
0x1949   :  { %v5450_v19 = vpop.eup %5449 }
0x194a   :  { %3946 = vrot.lane.b32.xlu1 %v5450_v19, %s5666_s3 }
0x19ac   :  { %v3602_v52 = vpop.permute.xlu0 %3601 }
0x19ad   :  { %v3604_v53 = vmul.f32 %v3602_v52, %v3587_v18 }
0x19af   :  { %3606 = vrot.lane.b32.xlu0 %v3604_v53, %s5667_s16 }
0x19bc   :  { %v3947_v54 = vpop.permute.xlu1 %3946 }
0x19bd   :  { %v3949_v25 = vmul.f32 %v3947_v54, %v3932_v7 }
0x19bf   :  { %3951 = vrot.lane.b32.xlu1 %v3949_v25, %s5667_s16 }
0x1a21   :  { %v3607_v57 = vpop.permute.xlu0 %3606 }
0x1a22   :  { %3609 = vst.msk [vmem:[#allocation2 + $0xc] sm:$0x3] %vm954_vm5, %v3607_v57  ;;  %4962 = vmatmul.mubr.msk.f32.vlgmr.msra.gmra.mrb[44].mxu1 %vm517_vm4, %v3607_v57 }
0x1a23   :  { %5329 = vmatpush3.bf16.msra.mxu1 %v5957_v26  ;;  %4983 = vmatprep.mubr.msk.f32.mxu1 %vm5663_vm0, %v5664_v9 }
0x1a24   :  { %5330 = vmatprep.subr.bf16.mxu1 %v5662_v50 }
0x1a27   :  { %5332 = vmatpush3.bf16.msra.mxu1 %v5960_v29 }
0x1a31   :  { %v3952_v43 = vpop.permute.xlu1 %3951 }
0x1a32   :  { %4984 = vmatmul.mubr.msk.f32.vlgmr.msra.gmra.mrb[46].mxu1 %vm517_vm4, %v3952_v43 }
0x1af5   :  { %v3818_v58 = vpop.f32.mrb[44].mxu1 }
0x1af6   :  { %v4963_v59 = vpop.f32.mrb[45].mxu1 }
0x1b05   :  { %v4021_v42 = vpop.f32.mrb[46].mxu1 }
0x1b06   :  { %v4022_v51 = vadd.f32 %v4021_v42, %v3818_v58  ;;  %v4985_v60 = vpop.f32.mrb[47].mxu1 }
0x1b08   :  { %v4025_v36 = vadd.f32 %v6369_v4, %v4022_v51 }
0x1b0a   :  { %v4026_v56 = vmul.f32 %v4025_v36, %v5871_v3  ;;  %v4055_v3 = vld [vmem:[%s6503_s10] sm:$0xff]  ;;  %s5668_s10 = smov [#allocation15]  }
0x1b0b   :  { %v5333_v2 = vpack.c.bf16 %v4056_v62, %v4055_v3  ;;  %s4166_s26 = sshll.u32 %s5668_s10, 4  ;;  %s4167_s26 = int_to_ptr.vmem [resolvable:$true] %s4166_s26 }
0x1b0c   :  { %5451 = vtanh.f32 %v4026_v56  ;;  %s5619_s11 = scalar_lea.vmem %s4167_s26, 256  ;;  %p5624_p1 = scmp.lt.s32.totalorder %s4167_s26, %s4167_s26 }
0x1b0d   :  { %5334 = vmatprep.subr.bf16.mxu0 %v5333_v2  ;;  %p5620_p0 = scmp.ne.s32.totalorder %s4167_s26, %s5619_s11  ;;  %p5625_p2 = scmp.lt.s32.totalorder %s5619_s11, %s5619_s11 }
0x1b0e   :  { %5336 = vmatpush3.bf16.msra.mxu0 %v5333_v2 }
0x1b0f   :  { %5338 = vmatprep.subr.bf16.mxu0 %v5337_v22  ;;  %p5626_p3 = por %p5625_p2, %p5624_p1 }
0x1b11   :  { %p5627_p4 = pnand %p5626_p3, %p5620_p0 }
0x1b12   :  { %5340 = vmatpush3.bf16.msra.mxu0 %v5337_v22 }
0x1b16   :  { %v5452_v26 = vpop.eup %5451 }
0x1b17   :  { %v4028_v61 = vmul.f32 0.5, %v5452_v26 }
0x1b19   :  { %v4029_v9 = vadd.f32 0.5, %v4028_v61 }
0x1b1b   :  { %v4030_v50 = vsel %vm5863_vm3, %v5452_v26, %v4029_v9 }
0x1b1c   :  { %4033 = vrot.lane.b32.xlu0 %v4030_v50, %s5666_s3  ;;  %v4031_v45 = vmul.f32 %v4030_v50, %v3598_v44 }
0x1b8e   :  { %v4034_v29 = vpop.permute.xlu0 %4033 }
0x1b8f   :  { %v4036_v14 = vmul.f32 %v4034_v29, %v4030_v50 }
0x1b91   :  { %4038 = vrot.lane.b32.xlu1 %v4036_v14, %s5667_s16 }
0x1c03   :  { %v4039_v1 = vpop.permute.xlu1 %4038 }
0x1c04   :  { %v4041_v30 = vadd.f32 %v4039_v1, %v4031_v45 }
0x1c06   :  { %5453 = vtanh.f32 %v4041_v30 }
0x1c10   :  { %v5454_v4 = vpop.eup %5453 }
0x1c11   :  { %4044 = vrot.lane.b32.xlu0 %v5454_v4, %s5666_s3 }
0x1c83   :  { %v4045_v5 = vpop.permute.xlu0 %4044 }
0x1c84   :  { %v4047_v24 = vmul.f32 %v4045_v5, %v4030_v50 }
0x1c86   :  { %4049 = vrot.lane.b32.xlu1 %v4047_v24, %s5667_s16 }
0x1cf8   :  { %v4050_v6 = vpop.permute.xlu1 %4049 }
0x1cf9   :  { %4052 = vst.msk [vmem:[#allocation2 + $0xe] sm:$0x3] %vm954_vm5, %v4050_v6 }
0x1d00   :  { %v4054_v31 = vld [vmem:[#allocation2 + $0x8] sm:$0xff] }
0x1d01   :  { %4995 = vmatmul.mubr.msk.f32.vlgmr.msra.gmra.mrb[44].mxu0 %vm517_vm4, %v4054_v31 }
0x1dd4   :  { %v4996_v11 = vpop.f32.mrb[44].mxu0 }
0x1dd5   :  { %v4144_v34 = vadd.f32 %v4996_v11, %v4221_v10  ;;  %v4138_v12 = vpop.f32.mrb[45].mxu0 }
0x1dd6   :  { %v4139_v13 = vadd.f32 %v4221_v10, %v4138_v12 }
0x1dd7   :  { %v4225_v15 = vmul.f32 -1.442695, %v4144_v34 }
0x1dd8   :  { %v4224_v55 = vmul.f32 -1.442695, %v4139_v13 }
0x1dd9   :  { %5455 = vpow2.f32 %v4225_v15 }
0x1dda   :  { %5457 = vpow2.f32 %v4224_v55 }
0x1de3   :  { %v5456_v37 = vpop.eup %5455 }
0x1de4   :  { %v5458_v16 = vpop.eup %5457  ;;  %v4154_v17 = vadd.f32 1.0, %v5456_v37 }
0x1de5   :  { %v4153_v20 = vadd.f32 1.0, %v5458_v16 }
0x1de6   :  { %5459 = vrcp.f32 %v4154_v17 }
0x1de7   :  { %5461 = vrcp.f32 %v4153_v20 }
0x1df0   :  { %v5460_v21 = vpop.eup %5459 }
0x1df1   :  { %v5462_v23 = vpop.eup %5461  ;;  %4160 = vst [vmem:[#allocation15 + $0x8] sm:$0xff] %v5460_v21 }
0x1df2   :  { %4159 = vst [vmem:[#allocation15] sm:$0xff] %v5462_v23 }
0x1df3   :  { %5630 = shalt.err (!%p5627_p4)
}
0x1df4   :  { %s5631_s4 = scalar_lea.hbm %s6505_s12, 256 }
0x1df5   :  { %p5632_p5 = scmp.ne.s32.totalorder %s6505_s12, %s5631_s4  ;;  %p5635_p6 = scmp.lt.u32.totalorder %s5631_s4, %s6505_s12 }
0x1df7   :  { %p5637_p7 = pnand %p5635_p6, %p5632_p5 }
0x1df9   :  { %5640 = shalt.err (!%p5637_p7)
}
0x1dfa   :  { %4172 = dma.vmem_to_hbm [thread:$0]  %s4167_s26, 256, %s6505_s12, [#allocation5], %s5652_s13, %s5652_s13, %s5653_s14  }
0x1dfb   :  { %5649 = dma.done.wait [#allocation5], 256  }
0x1dfc   :  { %5650 = vsyncadd [#allocation5], 4294967040 }
0x1dfd   :  { %4176 = vsyncpa [#allocation4], 1 }
0x1dfe   :  { %4177 = vsyncpa [#allocation7], 1 }
0x1dff   :  { %4178 = vsyncpa [#allocation10], 1 }
0x1e00   :  { %4179 = vsyncpa [#allocation13], 1 }
0x1e01   :  { %4180 = vsyncpa [#allocation5], 1 }

</bundles_post_ra>
